<compile_context>
chip_gen: v5e
topology: v5e:2x2
jax: 0.10.0
libtpu: 0.0.40
codegen_flags: <defaults>
</compile_context>

<pallas_src>
import functools

import jax
import jax.numpy as jnp
import numpy as np
from jax.experimental import pallas as pl
from jax.experimental.pallas import tpu as pltpu


def cbam_kernel(x_ref, wmlp_ref, b1_ref, b2x2_ref, mask_ref, wconv_ref, bn_ref,
                o_ref, cp_ref, *, H, W, K, pad, Ch):
    """Fused CBAM forward for one batch element.

    x_ref:    (1, C, HW)       input block (lane-dense), any float dtype
    wmlp_ref: (C, 2*Ch)        [W1^T | W2] packed MLP weights (f32)
    b1_ref:   (1, Ch)          first Linear bias (row, f32)
    b2x2_ref: (C, 1)           2 * second Linear bias (column, f32)
    mask_ref: (K, HW)          per-dw column-validity masks (f32 0/1)
    wconv_ref:(2*K*K,) SMEM    conv weight flattened in (c, kh, kw) order
    bn_ref:   (2,)     SMEM    [bn_scale, bn_shift] (inference-folded BN)
    o_ref:    (1, C, HW)       output block (lane-dense)
    cp_ref:   (2, HW+2*LPAD)   VMEM scratch: flat, zero-padded compress map
    """
    HW = H * W
    LPAD = pad * W + pad                                 # flat padding length

    x = x_ref[0].astype(jnp.float32)                     # (C, HW), f32 compute

    # ---- ChannelGate: global avg/max pool + shared 2-layer MLP.  The matvecs
    # are tiny (C x Ch), so they run on the VPU (broadcast-multiply +
    # reduction) to avoid an MXU push/pop round trip. ----
    avg = jnp.mean(x, axis=1, keepdims=True)             # (C, 1)
    mx = jnp.max(x, axis=1, keepdims=True)               # (C, 1)

    w1t = wmlp_ref[:, :Ch]                               # (C, Ch) == W1^T
    w2 = wmlp_ref[:, Ch:]                                # (C, Ch) == W2
    b1 = b1_ref[...]                                     # (1, Ch)
    h_avg = jnp.maximum(jnp.sum(w1t * avg, axis=0, keepdims=True) + b1, 0.0)
    h_max = jnp.maximum(jnp.sum(w1t * mx, axis=0, keepdims=True) + b1, 0.0)
    h_sum = h_avg + h_max                                # (1, Ch)

    # mlp(avg) + mlp(max) == W2 @ (h_avg + h_max) + 2*b2 (2*b2 folded in
    # wrapper into b2x2).
    att = jnp.sum(w2 * h_sum, axis=1, keepdims=True) + b2x2_ref[...]   # (C, 1)

    # Channel-gated activations go straight into the output block so the
    # compiler never needs a second live (C, HW) slab (VMEM on v7x).
    o_ref[0] = (x * jax.nn.sigmoid(att)).astype(o_ref.dtype)

    # ---- ChannelPool: max / mean over C, kept FLAT, stored with a single
    # (1, HW) store per channel into the zero-padded flat scratch. ----
    yb = o_ref[0].astype(jnp.float32)                    # (C, HW) re-read
    cp_ref[...] = jnp.zeros_like(cp_ref)
    cp_ref[0:1, LPAD:LPAD + HW] = jnp.max(yb, axis=0, keepdims=True)
    cp_ref[1:2, LPAD:LPAD + HW] = jnp.mean(yb, axis=0, keepdims=True)

    # ---- SpatialGate 7x7 conv, computed directly in the flat (1, HW) layout.
    # Tap (dh, dw) <-> static lane-offset slice at LPAD + dh*W + dw.  Vertical
    # out-of-range reads land in the zero padding; horizontal cross-row reads
    # are zeroed by the per-dw column mask.  98 FMAs at full lane density. ----
    acc = jnp.zeros((1, HW), jnp.float32)
    for dw in range(-pad, pad + 1):
        part = jnp.zeros((1, HW), jnp.float32)
        for c in range(2):
            base = c * K * K
            for dh in range(-pad, pad + 1):
                wgt = wconv_ref[base + (dh + pad) * K + (dw + pad)]
                off = LPAD + dh * W + dw
                part = part + cp_ref[c:c + 1, off:off + HW] * wgt
        if dw != 0:
            part = part * mask_ref[dw + pad:dw + pad + 1, :]
        acc = acc + part

    # BatchNorm2d(1) (inference stats folded to scale/shift) + sigmoid.
    scale = jax.nn.sigmoid(acc * bn_ref[0] + bn_ref[1])  # (1, HW), flat

    # Final spatial gating: full-lane-width multiply + store.
    o_ref[0] = (o_ref[0].astype(jnp.float32) * scale).astype(o_ref.dtype)


def cbam_pallas(x, w1, b1, w2, b2, wconv, bn_scale, bn_shift):
    B, C, H, W = x.shape
    Ch = w1.shape[0]
    HW = H * W
    K = 7
    pad = (K - 1) // 2
    LPAD = pad * W + pad

    f32 = jnp.float32
    # Lane-dense view; keep the I/O dtype (bf16 stays bf16 -> half HBM traffic),
    # parameters are tiny and stay f32 for the accumulation path.
    x_flat = x.reshape(B, C, HW)
    wmlp = jnp.concatenate([jnp.asarray(w1, f32).T, jnp.asarray(w2, f32)],
                           axis=1)                        # (C, 2*Ch) = [W1^T|W2]
    b1r = jnp.asarray(b1, f32).reshape(1, Ch)
    b2x2 = 2.0 * jnp.asarray(b2, f32).reshape(C, 1)       # fold mlp(avg)+mlp(max)
    wflat = jnp.asarray(wconv, f32).reshape(-1)           # (2*K*K,), (c, kh, kw)
    bn = jnp.array([bn_scale, bn_shift], dtype=f32)

    # Per-dw column-validity masks for the flat conv (host-precomputed: no
    # in-kernel iota/mod): mask[dw+pad, j] = 1 iff 0 <= (j % W) + dw < W.
    wpos = np.arange(HW) % W
    colmask = np.stack(
        [((wpos + dw >= 0) & (wpos + dw < W)).astype(np.float32)
         for dw in range(-pad, pad + 1)], axis=0)         # (K, HW)
    colmask = jnp.asarray(colmask)

    kernel = functools.partial(cbam_kernel, H=H, W=W, K=K, pad=pad, Ch=Ch)

    out_flat = pl.pallas_call(
        kernel,
        out_shape=jax.ShapeDtypeStruct((B, C, HW), x.dtype),
        grid=(B,),
        in_specs=[
            pl.BlockSpec((1, C, HW), lambda b: (b, 0, 0)),      # x
            pl.BlockSpec((C, 2 * Ch), lambda b: (0, 0)),        # [W1^T | W2]
            pl.BlockSpec((1, Ch), lambda b: (0, 0)),            # b1 row
            pl.BlockSpec((C, 1), lambda b: (0, 0)),             # 2*b2 col
            pl.BlockSpec((K, HW), lambda b: (0, 0)),            # column masks
            pl.BlockSpec(memory_space=pltpu.MemorySpace.SMEM),  # conv weight
            pl.BlockSpec(memory_space=pltpu.MemorySpace.SMEM),  # bn params
        ],
        out_specs=pl.BlockSpec((1, C, HW), lambda b: (b, 0, 0)),
        scratch_shapes=[
            pltpu.VMEM((2, HW + 2 * LPAD), jnp.float32),        # flat padded map
        ],
        compiler_params=pltpu.CompilerParams(
            dimension_semantics=("parallel",),
            vmem_limit_bytes=48 * 1024 * 1024),
    )(x_flat, wmlp, b1r, b2x2, colmask, wflat, bn)

    return out_flat.reshape(B, C, H, W)


def cbam_ref(x, w1, b1, w2, b2, wconv, bn_scale, bn_shift):
    """Pure-JAX reference mirroring the PyTorch forward pass (f32)."""
    hi = jax.lax.Precision.HIGHEST
    avg = x.mean(axis=(2, 3))                             # (B, C)
    mx = x.max(axis=(2, 3))                               # (B, C)

    def mlp(v):
        h = jnp.maximum(jnp.dot(v, w1.T, precision=hi) + b1, 0.0)
        return jnp.dot(h, w2.T, precision=hi) + b2

    att = mlp(avg) + mlp(mx)
    scale = jax.nn.sigmoid(att)[:, :, None, None]
    y = x * scale

    comp = jnp.stack([y.max(axis=1), y.mean(axis=1)], axis=1)   # (B, 2, H, W)
    conv = jax.lax.conv_general_dilated(
        comp, wconv, window_strides=(1, 1), padding=((3, 3), (3, 3)),
        dimension_numbers=('NCHW', 'OIHW', 'NCHW'), precision=hi)
    s = jax.nn.sigmoid(conv * bn_scale + bn_shift)
    return y * s


if __name__ == "__main__":
    B, C, H, W = 2, 64, 16, 16           # gate_channels=64 (module default)
    reduction_ratio = 16
    Ch = C // reduction_ratio

    key = jax.random.PRNGKey(0)
    k1, k2, k3, k4, k5, k6 = jax.random.split(key, 6)
    x = jax.random.normal(k1, (B, C, H, W), jnp.float32)
    # Deterministic synthetic parameters (shapes match nn.Linear / nn.Conv2d).
    w1 = jax.random.normal(k2, (Ch, C), jnp.float32) * 0.1      # Linear(C, C//r).weight
    b1 = jax.random.normal(k3, (Ch,), jnp.float32) * 0.1        # Linear(C, C//r).bias
    w2 = jax.random.normal(k4, (C, Ch), jnp.float32) * 0.1      # Linear(C//r, C).weight
    b2 = jax.random.normal(k5, (C,), jnp.float32) * 0.1         # Linear(C//r, C).bias
    wconv = jax.random.normal(k6, (1, 2, 7, 7), jnp.float32) * 0.1  # Conv2d(2,1,7).weight

    # BatchNorm2d(1), inference mode, default stats: gamma=1, beta=0, mean=0, var=1.
    eps = 1e-5
    bn_scale = 1.0 / float(np.sqrt(1.0 + eps))
    bn_shift = 0.0

    # --- f32 path: exact against the reference ---
    out = cbam_pallas(x, w1, b1, w2, b2, wconv, bn_scale, bn_shift)
    out = jax.block_until_ready(out)
    ref = cbam_ref(x, w1, b1, w2, b2, wconv, bn_scale, bn_shift)
    np.testing.assert_allclose(np.asarray(out), np.asarray(ref),
                               rtol=1e-4, atol=1e-4)

    # --- bf16 I/O path (halved HBM traffic / VMEM), f32 accumulation inside ---
    x_bf16 = x.astype(jnp.bfloat16)
    out_bf16 = cbam_pallas(x_bf16, w1, b1, w2, b2, wconv, bn_scale, bn_shift)
    out_bf16 = jax.block_until_ready(out_bf16)
    ref_bf16 = cbam_ref(x_bf16.astype(jnp.float32), w1, b1, w2, b2, wconv,
                        bn_scale, bn_shift)
    np.testing.assert_allclose(np.asarray(out_bf16, dtype=np.float32),
                               np.asarray(ref_bf16),
                               rtol=5e-2, atol=5e-2)

    print("KERNEL_OK")
</pallas_src>

<mosaic_0001>
module attributes {stable_mosaic.version = 11 : i64} {
  func.func @cbam_kernel(%arg0: i32, %arg1: memref<1x64x256xf32, #tpu.memory_space<vmem>>, %arg2: memref<64x8xf32, #tpu.memory_space<vmem>>, %arg3: memref<1x4xf32, #tpu.memory_space<vmem>>, %arg4: memref<64x1xf32, #tpu.memory_space<vmem>>, %arg5: memref<7x256xf32, #tpu.memory_space<vmem>>, %arg6: memref<98xf32, #tpu.memory_space<smem>>, %arg7: memref<2xf32, #tpu.memory_space<smem>>, %arg8: memref<1x64x256xf32, #tpu.memory_space<vmem>>, %arg9: memref<2x358xf32, #tpu.memory_space<vmem>>) attributes {dimension_semantics = [#tpu.dimension_semantics<parallel>], iteration_bounds = array<i64: 2>, scalar_prefetch = 0 : i64, scratch_operands = 1 : i64, tpu.core_type = #tpu.core_type<tc>, window_params = [{transform_indices = @transform_0, window_bounds = array<i64: 1, 64, 256>}, {pipeline_mode = #tpu.pipeline_mode<synchronous>, transform_indices = @transform_1, window_bounds = array<i64: 64, 8>}, {pipeline_mode = #tpu.pipeline_mode<synchronous>, transform_indices = @transform_2, window_bounds = array<i64: 1, 4>}, {pipeline_mode = #tpu.pipeline_mode<synchronous>, transform_indices = @transform_3, window_bounds = array<i64: 64, 1>}, {pipeline_mode = #tpu.pipeline_mode<synchronous>, transform_indices = @transform_4, window_bounds = array<i64: 7, 256>}, {transform_indices = @transform_5, window_bounds = array<i64: 98>}, {transform_indices = @transform_6, window_bounds = array<i64: 2>}, {transform_indices = @transform_7, window_bounds = array<i64: 1, 64, 256>}]} {
    %c0 = arith.constant 0 : index
    %c0_0 = arith.constant 0 : index
    %c0_1 = arith.constant 0 : index
    %0 = vector.load %arg1[%c0, %c0_0, %c0_1] : memref<1x64x256xf32, #tpu.memory_space<vmem>>, vector<1x64x256xf32>
    %1 = vector.shape_cast %0 : vector<1x64x256xf32> to vector<64x256xf32>
    %cst = arith.constant dense<0.000000e+00> : vector<64xf32>
    %2 = vector.multi_reduction <add>, %1, %cst [1] : vector<64x256xf32> to vector<64xf32>
    %3 = vector.shape_cast %2 : vector<64xf32> to vector<64x1xf32>
    %cst_2 = arith.constant 2.560000e+02 : f32
    %4 = vector.broadcast %cst_2 : f32 to vector<64x1xf32>
    %5 = arith.divf %3, %4 : vector<64x1xf32>
    %cst_3 = arith.constant dense<0xFF800000> : vector<64xf32>
    %6 = vector.multi_reduction <maximumf>, %1, %cst_3 [1] : vector<64x256xf32> to vector<64xf32>
    %7 = vector.shape_cast %6 : vector<64xf32> to vector<64x1xf32>
    %c0_4 = arith.constant 0 : index
    %c0_5 = arith.constant 0 : index
    %8 = vector.load %arg2[%c0_4, %c0_5] : memref<64x8xf32, #tpu.memory_space<vmem>>, vector<64x4xf32>
    %c0_6 = arith.constant 0 : index
    %c4 = arith.constant 4 : index
    %9 = vector.load %arg2[%c0_6, %c4] : memref<64x8xf32, #tpu.memory_space<vmem>>, vector<64x4xf32>
    %c0_7 = arith.constant 0 : index
    %c0_8 = arith.constant 0 : index
    %10 = vector.load %arg3[%c0_7, %c0_8] : memref<1x4xf32, #tpu.memory_space<vmem>>, vector<1x4xf32>
    %11 = vector.broadcast %5 : vector<64x1xf32> to vector<64x4xf32>
    %12 = arith.mulf %8, %11 : vector<64x4xf32>
    %cst_9 = arith.constant dense<0.000000e+00> : vector<4xf32>
    %13 = vector.multi_reduction <add>, %12, %cst_9 [0] : vector<64x4xf32> to vector<4xf32>
    %14 = vector.shape_cast %13 : vector<4xf32> to vector<1x4xf32>
    %15 = arith.addf %14, %10 : vector<1x4xf32>
    %cst_10 = arith.constant 0.000000e+00 : f32
    %16 = vector.broadcast %cst_10 : f32 to vector<1x4xf32>
    %17 = arith.maximumf %15, %16 : vector<1x4xf32>
    %18 = vector.broadcast %7 : vector<64x1xf32> to vector<64x4xf32>
    %19 = arith.mulf %8, %18 : vector<64x4xf32>
    %cst_11 = arith.constant dense<0.000000e+00> : vector<4xf32>
    %20 = vector.multi_reduction <add>, %19, %cst_11 [0] : vector<64x4xf32> to vector<4xf32>
    %21 = vector.shape_cast %20 : vector<4xf32> to vector<1x4xf32>
    %22 = arith.addf %21, %10 : vector<1x4xf32>
    %cst_12 = arith.constant 0.000000e+00 : f32
    %23 = vector.broadcast %cst_12 : f32 to vector<1x4xf32>
    %24 = arith.maximumf %22, %23 : vector<1x4xf32>
    %25 = arith.addf %17, %24 : vector<1x4xf32>
    %26 = vector.broadcast %25 : vector<1x4xf32> to vector<64x4xf32>
    %27 = arith.mulf %9, %26 : vector<64x4xf32>
    %cst_13 = arith.constant dense<0.000000e+00> : vector<64xf32>
    %28 = vector.multi_reduction <add>, %27, %cst_13 [1] : vector<64x4xf32> to vector<64xf32>
    %29 = vector.shape_cast %28 : vector<64xf32> to vector<64x1xf32>
    %c0_14 = arith.constant 0 : index
    %c0_15 = arith.constant 0 : index
    %30 = vector.load %arg4[%c0_14, %c0_15] : memref<64x1xf32, #tpu.memory_space<vmem>>, vector<64x1xf32>
    %31 = arith.addf %29, %30 : vector<64x1xf32>
    %32 = arith.negf %31 : vector<64x1xf32>
    %33 = math.exp %32 : vector<64x1xf32>
    %cst_16 = arith.constant 1.000000e+00 : f32
    %34 = vector.broadcast %cst_16 : f32 to vector<64x1xf32>
    %35 = arith.addf %34, %33 : vector<64x1xf32>
    %36 = arith.divf %34, %35 : vector<64x1xf32>
    %37 = vector.broadcast %36 : vector<64x1xf32> to vector<64x256xf32>
    %38 = arith.mulf %1, %37 : vector<64x256xf32>
    %c0_17 = arith.constant 0 : index
    %c0_18 = arith.constant 0 : index
    %c0_19 = arith.constant 0 : index
    %39 = vector.load %arg8[%c0_17, %c0_18, %c0_19] : memref<1x64x256xf32, #tpu.memory_space<vmem>>, vector<1x64x256xf32>
    %40 = vector.shape_cast %39 : vector<1x64x256xf32> to vector<64x256xf32>
    %41 = vector.shape_cast %38 : vector<64x256xf32> to vector<1x64x256xf32>
    tpu.vector_store %arg8[%c0_17, %c0_18, %c0_19], %41 {strides = array<i32>} : memref<1x64x256xf32, #tpu.memory_space<vmem>>, vector<1x64x256xf32>,
    %c0_20 = arith.constant 0 : index
    %c0_21 = arith.constant 0 : index
    %c0_22 = arith.constant 0 : index
    %42 = vector.load %arg8[%c0_20, %c0_21, %c0_22] : memref<1x64x256xf32, #tpu.memory_space<vmem>>, vector<1x64x256xf32>
    %43 = vector.shape_cast %42 : vector<1x64x256xf32> to vector<64x256xf32>
    %cst_23 = arith.constant 0.000000e+00 : f32
    %44 = vector.broadcast %cst_23 : f32 to vector<2x358xf32>
    %c0_24 = arith.constant 0 : index
    %c0_25 = arith.constant 0 : index
    %45 = vector.load %arg9[%c0_24, %c0_25] : memref<2x358xf32, #tpu.memory_space<vmem>>, vector<2x358xf32>
    tpu.vector_store %arg9[%c0_24, %c0_25], %44 {strides = array<i32>} : memref<2x358xf32, #tpu.memory_space<vmem>>, vector<2x358xf32>,
    %cst_26 = arith.constant dense<0xFF800000> : vector<256xf32>
    %46 = vector.multi_reduction <maximumf>, %43, %cst_26 [0] : vector<64x256xf32> to vector<256xf32>
    %47 = vector.shape_cast %46 : vector<256xf32> to vector<1x256xf32>
    %c0_27 = arith.constant 0 : index
    %c51 = arith.constant 51 : index
    %48 = vector.load %arg9[%c0_27, %c51] : memref<2x358xf32, #tpu.memory_space<vmem>>, vector<1x256xf32>
    tpu.vector_store %arg9[%c0_27, %c51], %47 {strides = array<i32>} : memref<2x358xf32, #tpu.memory_space<vmem>>, vector<1x256xf32>,
    %cst_28 = arith.constant dense<0.000000e+00> : vector<256xf32>
    %49 = vector.multi_reduction <add>, %43, %cst_28 [0] : vector<64x256xf32> to vector<256xf32>
    %50 = vector.shape_cast %49 : vector<256xf32> to vector<1x256xf32>
    %cst_29 = arith.constant 6.400000e+01 : f32
    %51 = vector.broadcast %cst_29 : f32 to vector<1x256xf32>
    %52 = arith.divf %50, %51 : vector<1x256xf32>
    %c1 = arith.constant 1 : index
    %c51_30 = arith.constant 51 : index
    %53 = vector.load %arg9[%c1, %c51_30] : memref<2x358xf32, #tpu.memory_space<vmem>>, vector<1x256xf32>
    tpu.vector_store %arg9[%c1, %c51_30], %52 {strides = array<i32>} : memref<2x358xf32, #tpu.memory_space<vmem>>, vector<1x256xf32>,
    %cst_31 = arith.constant 0.000000e+00 : f32
    %54 = vector.broadcast %cst_31 : f32 to vector<1x256xf32>
    %cst_32 = arith.constant 0.000000e+00 : f32
    %55 = vector.broadcast %cst_32 : f32 to vector<1x256xf32>
    %c0_33 = arith.constant 0 : index
    %56 = memref.load %arg6[%c0_33] : memref<98xf32, #tpu.memory_space<smem>>
    %c0_34 = arith.constant 0 : index
    %c0_35 = arith.constant 0 : index
    %57 = vector.load %arg9[%c0_34, %c0_35] : memref<2x358xf32, #tpu.memory_space<vmem>>, vector<1x256xf32>
    %58 = vector.broadcast %56 : f32 to vector<1x256xf32>
    %59 = arith.mulf %57, %58 : vector<1x256xf32>
    %60 = arith.addf %55, %59 : vector<1x256xf32>
    %c7 = arith.constant 7 : index
    %61 = memref.load %arg6[%c7] : memref<98xf32, #tpu.memory_space<smem>>
    %c0_36 = arith.constant 0 : index
    %c16 = arith.constant 16 : index
    %62 = vector.load %arg9[%c0_36, %c16] : memref<2x358xf32, #tpu.memory_space<vmem>>, vector<1x256xf32>
    %63 = vector.broadcast %61 : f32 to vector<1x256xf32>
    %64 = arith.mulf %62, %63 : vector<1x256xf32>
    %65 = arith.addf %60, %64 : vector<1x256xf32>
    %c14 = arith.constant 14 : index
    %66 = memref.load %arg6[%c14] : memref<98xf32, #tpu.memory_space<smem>>
    %c0_37 = arith.constant 0 : index
    %c32 = arith.constant 32 : index
    %67 = vector.load %arg9[%c0_37, %c32] : memref<2x358xf32, #tpu.memory_space<vmem>>, vector<1x256xf32>
    %68 = vector.broadcast %66 : f32 to vector<1x256xf32>
    %69 = arith.mulf %67, %68 : vector<1x256xf32>
    %70 = arith.addf %65, %69 : vector<1x256xf32>
    %c21 = arith.constant 21 : index
    %71 = memref.load %arg6[%c21] : memref<98xf32, #tpu.memory_space<smem>>
    %c0_38 = arith.constant 0 : index
    %c48 = arith.constant 48 : index
    %72 = vector.load %arg9[%c0_38, %c48] : memref<2x358xf32, #tpu.memory_space<vmem>>, vector<1x256xf32>
    %73 = vector.broadcast %71 : f32 to vector<1x256xf32>
    %74 = arith.mulf %72, %73 : vector<1x256xf32>
    %75 = arith.addf %70, %74 : vector<1x256xf32>
    %c28 = arith.constant 28 : index
    %76 = memref.load %arg6[%c28] : memref<98xf32, #tpu.memory_space<smem>>
    %c0_39 = arith.constant 0 : index
    %c64 = arith.constant 64 : index
    %77 = vector.load %arg9[%c0_39, %c64] : memref<2x358xf32, #tpu.memory_space<vmem>>, vector<1x256xf32>
    %78 = vector.broadcast %76 : f32 to vector<1x256xf32>
    %79 = arith.mulf %77, %78 : vector<1x256xf32>
    %80 = arith.addf %75, %79 : vector<1x256xf32>
    %c35 = arith.constant 35 : index
    %81 = memref.load %arg6[%c35] : memref<98xf32, #tpu.memory_space<smem>>
    %c0_40 = arith.constant 0 : index
    %c80 = arith.constant 80 : index
    %82 = vector.load %arg9[%c0_40, %c80] : memref<2x358xf32, #tpu.memory_space<vmem>>, vector<1x256xf32>
    %83 = vector.broadcast %81 : f32 to vector<1x256xf32>
    %84 = arith.mulf %82, %83 : vector<1x256xf32>
    %85 = arith.addf %80, %84 : vector<1x256xf32>
    %c42 = arith.constant 42 : index
    %86 = memref.load %arg6[%c42] : memref<98xf32, #tpu.memory_space<smem>>
    %c0_41 = arith.constant 0 : index
    %c96 = arith.constant 96 : index
    %87 = vector.load %arg9[%c0_41, %c96] : memref<2x358xf32, #tpu.memory_space<vmem>>, vector<1x256xf32>
    %88 = vector.broadcast %86 : f32 to vector<1x256xf32>
    %89 = arith.mulf %87, %88 : vector<1x256xf32>
    %90 = arith.addf %85, %89 : vector<1x256xf32>
    %c49 = arith.constant 49 : index
    %91 = memref.load %arg6[%c49] : memref<98xf32, #tpu.memory_space<smem>>
    %c1_42 = arith.constant 1 : index
    %c0_43 = arith.constant 0 : index
    %92 = vector.load %arg9[%c1_42, %c0_43] : memref<2x358xf32, #tpu.memory_space<vmem>>, vector<1x256xf32>
    %93 = vector.broadcast %91 : f32 to vector<1x256xf32>
    %94 = arith.mulf %92, %93 : vector<1x256xf32>
    %95 = arith.addf %90, %94 : vector<1x256xf32>
    %c56 = arith.constant 56 : index
    %96 = memref.load %arg6[%c56] : memref<98xf32, #tpu.memory_space<smem>>
    %c1_44 = arith.constant 1 : index
    %c16_45 = arith.constant 16 : index
    %97 = vector.load %arg9[%c1_44, %c16_45] : memref<2x358xf32, #tpu.memory_space<vmem>>, vector<1x256xf32>
    %98 = vector.broadcast %96 : f32 to vector<1x256xf32>
    %99 = arith.mulf %97, %98 : vector<1x256xf32>
    %100 = arith.addf %95, %99 : vector<1x256xf32>
    %c63 = arith.constant 63 : index
    %101 = memref.load %arg6[%c63] : memref<98xf32, #tpu.memory_space<smem>>
    %c1_46 = arith.constant 1 : index
    %c32_47 = arith.constant 32 : index
    %102 = vector.load %arg9[%c1_46, %c32_47] : memref<2x358xf32, #tpu.memory_space<vmem>>, vector<1x256xf32>
    %103 = vector.broadcast %101 : f32 to vector<1x256xf32>
    %104 = arith.mulf %102, %103 : vector<1x256xf32>
    %105 = arith.addf %100, %104 : vector<1x256xf32>
    %c70 = arith.constant 70 : index
    %106 = memref.load %arg6[%c70] : memref<98xf32, #tpu.memory_space<smem>>
    %c1_48 = arith.constant 1 : index
    %c48_49 = arith.constant 48 : index
    %107 = vector.load %arg9[%c1_48, %c48_49] : memref<2x358xf32, #tpu.memory_space<vmem>>, vector<1x256xf32>
    %108 = vector.broadcast %106 : f32 to vector<1x256xf32>
    %109 = arith.mulf %107, %108 : vector<1x256xf32>
    %110 = arith.addf %105, %109 : vector<1x256xf32>
    %c77 = arith.constant 77 : index
    %111 = memref.load %arg6[%c77] : memref<98xf32, #tpu.memory_space<smem>>
    %c1_50 = arith.constant 1 : index
    %c64_51 = arith.constant 64 : index
    %112 = vector.load %arg9[%c1_50, %c64_51] : memref<2x358xf32, #tpu.memory_space<vmem>>, vector<1x256xf32>
    %113 = vector.broadcast %111 : f32 to vector<1x256xf32>
    %114 = arith.mulf %112, %113 : vector<1x256xf32>
    %115 = arith.addf %110, %114 : vector<1x256xf32>
    %c84 = arith.constant 84 : index
    %116 = memref.load %arg6[%c84] : memref<98xf32, #tpu.memory_space<smem>>
    %c1_52 = arith.constant 1 : index
    %c80_53 = arith.constant 80 : index
    %117 = vector.load %arg9[%c1_52, %c80_53] : memref<2x358xf32, #tpu.memory_space<vmem>>, vector<1x256xf32>
    %118 = vector.broadcast %116 : f32 to vector<1x256xf32>
    %119 = arith.mulf %117, %118 : vector<1x256xf32>
    %120 = arith.addf %115, %119 : vector<1x256xf32>
    %c91 = arith.constant 91 : index
    %121 = memref.load %arg6[%c91] : memref<98xf32, #tpu.memory_space<smem>>
    %c1_54 = arith.constant 1 : index
    %c96_55 = arith.constant 96 : index
    %122 = vector.load %arg9[%c1_54, %c96_55] : memref<2x358xf32, #tpu.memory_space<vmem>>, vector<1x256xf32>
    %123 = vector.broadcast %121 : f32 to vector<1x256xf32>
    %124 = arith.mulf %122, %123 : vector<1x256xf32>
    %125 = arith.addf %120, %124 : vector<1x256xf32>
    %c0_56 = arith.constant 0 : index
    %c0_57 = arith.constant 0 : index
    %126 = vector.load %arg5[%c0_56, %c0_57] : memref<7x256xf32, #tpu.memory_space<vmem>>, vector<1x256xf32>
    %127 = arith.mulf %125, %126 : vector<1x256xf32>
    %128 = arith.addf %54, %127 : vector<1x256xf32>
    %cst_58 = arith.constant 0.000000e+00 : f32
    %129 = vector.broadcast %cst_58 : f32 to vector<1x256xf32>
    %c1_59 = arith.constant 1 : index
    %130 = memref.load %arg6[%c1_59] : memref<98xf32, #tpu.memory_space<smem>>
    %c0_60 = arith.constant 0 : index
    %c1_61 = arith.constant 1 : index
    %131 = vector.load %arg9[%c0_60, %c1_61] : memref<2x358xf32, #tpu.memory_space<vmem>>, vector<1x256xf32>
    %132 = vector.broadcast %130 : f32 to vector<1x256xf32>
    %133 = arith.mulf %131, %132 : vector<1x256xf32>
    %134 = arith.addf %129, %133 : vector<1x256xf32>
    %c8 = arith.constant 8 : index
    %135 = memref.load %arg6[%c8] : memref<98xf32, #tpu.memory_space<smem>>
    %c0_62 = arith.constant 0 : index
    %c17 = arith.constant 17 : index
    %136 = vector.load %arg9[%c0_62, %c17] : memref<2x358xf32, #tpu.memory_space<vmem>>, vector<1x256xf32>
    %137 = vector.broadcast %135 : f32 to vector<1x256xf32>
    %138 = arith.mulf %136, %137 : vector<1x256xf32>
    %139 = arith.addf %134, %138 : vector<1x256xf32>
    %c15 = arith.constant 15 : index
    %140 = memref.load %arg6[%c15] : memref<98xf32, #tpu.memory_space<smem>>
    %c0_63 = arith.constant 0 : index
    %c33 = arith.constant 33 : index
    %141 = vector.load %arg9[%c0_63, %c33] : memref<2x358xf32, #tpu.memory_space<vmem>>, vector<1x256xf32>
    %142 = vector.broadcast %140 : f32 to vector<1x256xf32>
    %143 = arith.mulf %141, %142 : vector<1x256xf32>
    %144 = arith.addf %139, %143 : vector<1x256xf32>
    %c22 = arith.constant 22 : index
    %145 = memref.load %arg6[%c22] : memref<98xf32, #tpu.memory_space<smem>>
    %c0_64 = arith.constant 0 : index
    %c49_65 = arith.constant 49 : index
    %146 = vector.load %arg9[%c0_64, %c49_65] : memref<2x358xf32, #tpu.memory_space<vmem>>, vector<1x256xf32>
    %147 = vector.broadcast %145 : f32 to vector<1x256xf32>
    %148 = arith.mulf %146, %147 : vector<1x256xf32>
    %149 = arith.addf %144, %148 : vector<1x256xf32>
    %c29 = arith.constant 29 : index
    %150 = memref.load %arg6[%c29] : memref<98xf32, #tpu.memory_space<smem>>
    %c0_66 = arith.constant 0 : index
    %c65 = arith.constant 65 : index
    %151 = vector.load %arg9[%c0_66, %c65] : memref<2x358xf32, #tpu.memory_space<vmem>>, vector<1x256xf32>
    %152 = vector.broadcast %150 : f32 to vector<1x256xf32>
    %153 = arith.mulf %151, %152 : vector<1x256xf32>
    %154 = arith.addf %149, %153 : vector<1x256xf32>
    %c36 = arith.constant 36 : index
    %155 = memref.load %arg6[%c36] : memref<98xf32, #tpu.memory_space<smem>>
    %c0_67 = arith.constant 0 : index
    %c81 = arith.constant 81 : index
    %156 = vector.load %arg9[%c0_67, %c81] : memref<2x358xf32, #tpu.memory_space<vmem>>, vector<1x256xf32>
    %157 = vector.broadcast %155 : f32 to vector<1x256xf32>
    %158 = arith.mulf %156, %157 : vector<1x256xf32>
    %159 = arith.addf %154, %158 : vector<1x256xf32>
    %c43 = arith.constant 43 : index
    %160 = memref.load %arg6[%c43] : memref<98xf32, #tpu.memory_space<smem>>
    %c0_68 = arith.constant 0 : index
    %c97 = arith.constant 97 : index
    %161 = vector.load %arg9[%c0_68, %c97] : memref<2x358xf32, #tpu.memory_space<vmem>>, vector<1x256xf32>
    %162 = vector.broadcast %160 : f32 to vector<1x256xf32>
    %163 = arith.mulf %161, %162 : vector<1x256xf32>
    %164 = arith.addf %159, %163 : vector<1x256xf32>
    %c50 = arith.constant 50 : index
    %165 = memref.load %arg6[%c50] : memref<98xf32, #tpu.memory_space<smem>>
    %c1_69 = arith.constant 1 : index
    %c1_70 = arith.constant 1 : index
    %166 = vector.load %arg9[%c1_69, %c1_70] : memref<2x358xf32, #tpu.memory_space<vmem>>, vector<1x256xf32>
    %167 = vector.broadcast %165 : f32 to vector<1x256xf32>
    %168 = arith.mulf %166, %167 : vector<1x256xf32>
    %169 = arith.addf %164, %168 : vector<1x256xf32>
    %c57 = arith.constant 57 : index
    %170 = memref.load %arg6[%c57] : memref<98xf32, #tpu.memory_space<smem>>
    %c1_71 = arith.constant 1 : index
    %c17_72 = arith.constant 17 : index
    %171 = vector.load %arg9[%c1_71, %c17_72] : memref<2x358xf32, #tpu.memory_space<vmem>>, vector<1x256xf32>
    %172 = vector.broadcast %170 : f32 to vector<1x256xf32>
    %173 = arith.mulf %171, %172 : vector<1x256xf32>
    %174 = arith.addf %169, %173 : vector<1x256xf32>
    %c64_73 = arith.constant 64 : index
    %175 = memref.load %arg6[%c64_73] : memref<98xf32, #tpu.memory_space<smem>>
    %c1_74 = arith.constant 1 : index
    %c33_75 = arith.constant 33 : index
    %176 = vector.load %arg9[%c1_74, %c33_75] : memref<2x358xf32, #tpu.memory_space<vmem>>, vector<1x256xf32>
    %177 = vector.broadcast %175 : f32 to vector<1x256xf32>
    %178 = arith.mulf %176, %177 : vector<1x256xf32>
    %179 = arith.addf %174, %178 : vector<1x256xf32>
    %c71 = arith.constant 71 : index
    %180 = memref.load %arg6[%c71] : memref<98xf32, #tpu.memory_space<smem>>
    %c1_76 = arith.constant 1 : index
    %c49_77 = arith.constant 49 : index
    %181 = vector.load %arg9[%c1_76, %c49_77] : memref<2x358xf32, #tpu.memory_space<vmem>>, vector<1x256xf32>
    %182 = vector.broadcast %180 : f32 to vector<1x256xf32>
    %183 = arith.mulf %181, %182 : vector<1x256xf32>
    %184 = arith.addf %179, %183 : vector<1x256xf32>
    %c78 = arith.constant 78 : index
    %185 = memref.load %arg6[%c78] : memref<98xf32, #tpu.memory_space<smem>>
    %c1_78 = arith.constant 1 : index
    %c65_79 = arith.constant 65 : index
    %186 = vector.load %arg9[%c1_78, %c65_79] : memref<2x358xf32, #tpu.memory_space<vmem>>, vector<1x256xf32>
    %187 = vector.broadcast %185 : f32 to vector<1x256xf32>
    %188 = arith.mulf %186, %187 : vector<1x256xf32>
    %189 = arith.addf %184, %188 : vector<1x256xf32>
    %c85 = arith.constant 85 : index
    %190 = memref.load %arg6[%c85] : memref<98xf32, #tpu.memory_space<smem>>
    %c1_80 = arith.constant 1 : index
    %c81_81 = arith.constant 81 : index
    %191 = vector.load %arg9[%c1_80, %c81_81] : memref<2x358xf32, #tpu.memory_space<vmem>>, vector<1x256xf32>
    %192 = vector.broadcast %190 : f32 to vector<1x256xf32>
    %193 = arith.mulf %191, %192 : vector<1x256xf32>
    %194 = arith.addf %189, %193 : vector<1x256xf32>
    %c92 = arith.constant 92 : index
    %195 = memref.load %arg6[%c92] : memref<98xf32, #tpu.memory_space<smem>>
    %c1_82 = arith.constant 1 : index
    %c97_83 = arith.constant 97 : index
    %196 = vector.load %arg9[%c1_82, %c97_83] : memref<2x358xf32, #tpu.memory_space<vmem>>, vector<1x256xf32>
    %197 = vector.broadcast %195 : f32 to vector<1x256xf32>
    %198 = arith.mulf %196, %197 : vector<1x256xf32>
    %199 = arith.addf %194, %198 : vector<1x256xf32>
    %c1_84 = arith.constant 1 : index
    %c0_85 = arith.constant 0 : index
    %200 = vector.load %arg5[%c1_84, %c0_85] : memref<7x256xf32, #tpu.memory_space<vmem>>, vector<1x256xf32>
    %201 = arith.mulf %199, %200 : vector<1x256xf32>
    %202 = arith.addf %128, %201 : vector<1x256xf32>
    %cst_86 = arith.constant 0.000000e+00 : f32
    %203 = vector.broadcast %cst_86 : f32 to vector<1x256xf32>
    %c2 = arith.constant 2 : index
    %204 = memref.load %arg6[%c2] : memref<98xf32, #tpu.memory_space<smem>>
    %c0_87 = arith.constant 0 : index
    %c2_88 = arith.constant 2 : index
    %205 = vector.load %arg9[%c0_87, %c2_88] : memref<2x358xf32, #tpu.memory_space<vmem>>, vector<1x256xf32>
    %206 = vector.broadcast %204 : f32 to vector<1x256xf32>
    %207 = arith.mulf %205, %206 : vector<1x256xf32>
    %208 = arith.addf %203, %207 : vector<1x256xf32>
    %c9 = arith.constant 9 : index
    %209 = memref.load %arg6[%c9] : memref<98xf32, #tpu.memory_space<smem>>
    %c0_89 = arith.constant 0 : index
    %c18 = arith.constant 18 : index
    %210 = vector.load %arg9[%c0_89, %c18] : memref<2x358xf32, #tpu.memory_space<vmem>>, vector<1x256xf32>
    %211 = vector.broadcast %209 : f32 to vector<1x256xf32>
    %212 = arith.mulf %210, %211 : vector<1x256xf32>
    %213 = arith.addf %208, %212 : vector<1x256xf32>
    %c16_90 = arith.constant 16 : index
    %214 = memref.load %arg6[%c16_90] : memref<98xf32, #tpu.memory_space<smem>>
    %c0_91 = arith.constant 0 : index
    %c34 = arith.constant 34 : index
    %215 = vector.load %arg9[%c0_91, %c34] : memref<2x358xf32, #tpu.memory_space<vmem>>, vector<1x256xf32>
    %216 = vector.broadcast %214 : f32 to vector<1x256xf32>
    %217 = arith.mulf %215, %216 : vector<1x256xf32>
    %218 = arith.addf %213, %217 : vector<1x256xf32>
    %c23 = arith.constant 23 : index
    %219 = memref.load %arg6[%c23] : memref<98xf32, #tpu.memory_space<smem>>
    %c0_92 = arith.constant 0 : index
    %c50_93 = arith.constant 50 : index
    %220 = vector.load %arg9[%c0_92, %c50_93] : memref<2x358xf32, #tpu.memory_space<vmem>>, vector<1x256xf32>
    %221 = vector.broadcast %219 : f32 to vector<1x256xf32>
    %222 = arith.mulf %220, %221 : vector<1x256xf32>
    %223 = arith.addf %218, %222 : vector<1x256xf32>
    %c30 = arith.constant 30 : index
    %224 = memref.load %arg6[%c30] : memref<98xf32, #tpu.memory_space<smem>>
    %c0_94 = arith.constant 0 : index
    %c66 = arith.constant 66 : index
    %225 = vector.load %arg9[%c0_94, %c66] : memref<2x358xf32, #tpu.memory_space<vmem>>, vector<1x256xf32>
    %226 = vector.broadcast %224 : f32 to vector<1x256xf32>
    %227 = arith.mulf %225, %226 : vector<1x256xf32>
    %228 = arith.addf %223, %227 : vector<1x256xf32>
    %c37 = arith.constant 37 : index
    %229 = memref.load %arg6[%c37] : memref<98xf32, #tpu.memory_space<smem>>
    %c0_95 = arith.constant 0 : index
    %c82 = arith.constant 82 : index
    %230 = vector.load %arg9[%c0_95, %c82] : memref<2x358xf32, #tpu.memory_space<vmem>>, vector<1x256xf32>
    %231 = vector.broadcast %229 : f32 to vector<1x256xf32>
    %232 = arith.mulf %230, %231 : vector<1x256xf32>
    %233 = arith.addf %228, %232 : vector<1x256xf32>
    %c44 = arith.constant 44 : index
    %234 = memref.load %arg6[%c44] : memref<98xf32, #tpu.memory_space<smem>>
    %c0_96 = arith.constant 0 : index
    %c98 = arith.constant 98 : index
    %235 = vector.load %arg9[%c0_96, %c98] : memref<2x358xf32, #tpu.memory_space<vmem>>, vector<1x256xf32>
    %236 = vector.broadcast %234 : f32 to vector<1x256xf32>
    %237 = arith.mulf %235, %236 : vector<1x256xf32>
    %238 = arith.addf %233, %237 : vector<1x256xf32>
    %c51_97 = arith.constant 51 : index
    %239 = memref.load %arg6[%c51_97] : memref<98xf32, #tpu.memory_space<smem>>
    %c1_98 = arith.constant 1 : index
    %c2_99 = arith.constant 2 : index
    %240 = vector.load %arg9[%c1_98, %c2_99] : memref<2x358xf32, #tpu.memory_space<vmem>>, vector<1x256xf32>
    %241 = vector.broadcast %239 : f32 to vector<1x256xf32>
    %242 = arith.mulf %240, %241 : vector<1x256xf32>
    %243 = arith.addf %238, %242 : vector<1x256xf32>
    %c58 = arith.constant 58 : index
    %244 = memref.load %arg6[%c58] : memref<98xf32, #tpu.memory_space<smem>>
    %c1_100 = arith.constant 1 : index
    %c18_101 = arith.constant 18 : index
    %245 = vector.load %arg9[%c1_100, %c18_101] : memref<2x358xf32, #tpu.memory_space<vmem>>, vector<1x256xf32>
    %246 = vector.broadcast %244 : f32 to vector<1x256xf32>
    %247 = arith.mulf %245, %246 : vector<1x256xf32>
    %248 = arith.addf %243, %247 : vector<1x256xf32>
    %c65_102 = arith.constant 65 : index
    %249 = memref.load %arg6[%c65_102] : memref<98xf32, #tpu.memory_space<smem>>
    %c1_103 = arith.constant 1 : index
    %c34_104 = arith.constant 34 : index
    %250 = vector.load %arg9[%c1_103, %c34_104] : memref<2x358xf32, #tpu.memory_space<vmem>>, vector<1x256xf32>
    %251 = vector.broadcast %249 : f32 to vector<1x256xf32>
    %252 = arith.mulf %250, %251 : vector<1x256xf32>
    %253 = arith.addf %248, %252 : vector<1x256xf32>
    %c72 = arith.constant 72 : index
    %254 = memref.load %arg6[%c72] : memref<98xf32, #tpu.memory_space<smem>>
    %c1_105 = arith.constant 1 : index
    %c50_106 = arith.constant 50 : index
    %255 = vector.load %arg9[%c1_105, %c50_106] : memref<2x358xf32, #tpu.memory_space<vmem>>, vector<1x256xf32>
    %256 = vector.broadcast %254 : f32 to vector<1x256xf32>
    %257 = arith.mulf %255, %256 : vector<1x256xf32>
    %258 = arith.addf %253, %257 : vector<1x256xf32>
    %c79 = arith.constant 79 : index
    %259 = memref.load %arg6[%c79] : memref<98xf32, #tpu.memory_space<smem>>
    %c1_107 = arith.constant 1 : index
    %c66_108 = arith.constant 66 : index
    %260 = vector.load %arg9[%c1_107, %c66_108] : memref<2x358xf32, #tpu.memory_space<vmem>>, vector<1x256xf32>
    %261 = vector.broadcast %259 : f32 to vector<1x256xf32>
    %262 = arith.mulf %260, %261 : vector<1x256xf32>
    %263 = arith.addf %258, %262 : vector<1x256xf32>
    %c86 = arith.constant 86 : index
    %264 = memref.load %arg6[%c86] : memref<98xf32, #tpu.memory_space<smem>>
    %c1_109 = arith.constant 1 : index
    %c82_110 = arith.constant 82 : index
    %265 = vector.load %arg9[%c1_109, %c82_110] : memref<2x358xf32, #tpu.memory_space<vmem>>, vector<1x256xf32>
    %266 = vector.broadcast %264 : f32 to vector<1x256xf32>
    %267 = arith.mulf %265, %266 : vector<1x256xf32>
    %268 = arith.addf %263, %267 : vector<1x256xf32>
    %c93 = arith.constant 93 : index
    %269 = memref.load %arg6[%c93] : memref<98xf32, #tpu.memory_space<smem>>
    %c1_111 = arith.constant 1 : index
    %c98_112 = arith.constant 98 : index
    %270 = vector.load %arg9[%c1_111, %c98_112] : memref<2x358xf32, #tpu.memory_space<vmem>>, vector<1x256xf32>
    %271 = vector.broadcast %269 : f32 to vector<1x256xf32>
    %272 = arith.mulf %270, %271 : vector<1x256xf32>
    %273 = arith.addf %268, %272 : vector<1x256xf32>
    %c2_113 = arith.constant 2 : index
    %c0_114 = arith.constant 0 : index
    %274 = vector.load %arg5[%c2_113, %c0_114] : memref<7x256xf32, #tpu.memory_space<vmem>>, vector<1x256xf32>
    %275 = arith.mulf %273, %274 : vector<1x256xf32>
    %276 = arith.addf %202, %275 : vector<1x256xf32>
    %cst_115 = arith.constant 0.000000e+00 : f32
    %277 = vector.broadcast %cst_115 : f32 to vector<1x256xf32>
    %c3 = arith.constant 3 : index
    %278 = memref.load %arg6[%c3] : memref<98xf32, #tpu.memory_space<smem>>
    %c0_116 = arith.constant 0 : index
    %c3_117 = arith.constant 3 : index
    %279 = vector.load %arg9[%c0_116, %c3_117] : memref<2x358xf32, #tpu.memory_space<vmem>>, vector<1x256xf32>
    %280 = vector.broadcast %278 : f32 to vector<1x256xf32>
    %281 = arith.mulf %279, %280 : vector<1x256xf32>
    %282 = arith.addf %277, %281 : vector<1x256xf32>
    %c10 = arith.constant 10 : index
    %283 = memref.load %arg6[%c10] : memref<98xf32, #tpu.memory_space<smem>>
    %c0_118 = arith.constant 0 : index
    %c19 = arith.constant 19 : index
    %284 = vector.load %arg9[%c0_118, %c19] : memref<2x358xf32, #tpu.memory_space<vmem>>, vector<1x256xf32>
    %285 = vector.broadcast %283 : f32 to vector<1x256xf32>
    %286 = arith.mulf %284, %285 : vector<1x256xf32>
    %287 = arith.addf %282, %286 : vector<1x256xf32>
    %c17_119 = arith.constant 17 : index
    %288 = memref.load %arg6[%c17_119] : memref<98xf32, #tpu.memory_space<smem>>
    %c0_120 = arith.constant 0 : index
    %c35_121 = arith.constant 35 : index
    %289 = vector.load %arg9[%c0_120, %c35_121] : memref<2x358xf32, #tpu.memory_space<vmem>>, vector<1x256xf32>
    %290 = vector.broadcast %288 : f32 to vector<1x256xf32>
    %291 = arith.mulf %289, %290 : vector<1x256xf32>
    %292 = arith.addf %287, %291 : vector<1x256xf32>
    %c24 = arith.constant 24 : index
    %293 = memref.load %arg6[%c24] : memref<98xf32, #tpu.memory_space<smem>>
    %c0_122 = arith.constant 0 : index
    %c51_123 = arith.constant 51 : index
    %294 = vector.load %arg9[%c0_122, %c51_123] : memref<2x358xf32, #tpu.memory_space<vmem>>, vector<1x256xf32>
    %295 = vector.broadcast %293 : f32 to vector<1x256xf32>
    %296 = arith.mulf %294, %295 : vector<1x256xf32>
    %297 = arith.addf %292, %296 : vector<1x256xf32>
    %c31 = arith.constant 31 : index
    %298 = memref.load %arg6[%c31] : memref<98xf32, #tpu.memory_space<smem>>
    %c0_124 = arith.constant 0 : index
    %c67 = arith.constant 67 : index
    %299 = vector.load %arg9[%c0_124, %c67] : memref<2x358xf32, #tpu.memory_space<vmem>>, vector<1x256xf32>
    %300 = vector.broadcast %298 : f32 to vector<1x256xf32>
    %301 = arith.mulf %299, %300 : vector<1x256xf32>
    %302 = arith.addf %297, %301 : vector<1x256xf32>
    %c38 = arith.constant 38 : index
    %303 = memref.load %arg6[%c38] : memref<98xf32, #tpu.memory_space<smem>>
    %c0_125 = arith.constant 0 : index
    %c83 = arith.constant 83 : index
    %304 = vector.load %arg9[%c0_125, %c83] : memref<2x358xf32, #tpu.memory_space<vmem>>, vector<1x256xf32>
    %305 = vector.broadcast %303 : f32 to vector<1x256xf32>
    %306 = arith.mulf %304, %305 : vector<1x256xf32>
    %307 = arith.addf %302, %306 : vector<1x256xf32>
    %c45 = arith.constant 45 : index
    %308 = memref.load %arg6[%c45] : memref<98xf32, #tpu.memory_space<smem>>
    %c0_126 = arith.constant 0 : index
    %c99 = arith.constant 99 : index
    %309 = vector.load %arg9[%c0_126, %c99] : memref<2x358xf32, #tpu.memory_space<vmem>>, vector<1x256xf32>
    %310 = vector.broadcast %308 : f32 to vector<1x256xf32>
    %311 = arith.mulf %309, %310 : vector<1x256xf32>
    %312 = arith.addf %307, %311 : vector<1x256xf32>
    %c52 = arith.constant 52 : index
    %313 = memref.load %arg6[%c52] : memref<98xf32, #tpu.memory_space<smem>>
    %c1_127 = arith.constant 1 : index
    %c3_128 = arith.constant 3 : index
    %314 = vector.load %arg9[%c1_127, %c3_128] : memref<2x358xf32, #tpu.memory_space<vmem>>, vector<1x256xf32>
    %315 = vector.broadcast %313 : f32 to vector<1x256xf32>
    %316 = arith.mulf %314, %315 : vector<1x256xf32>
    %317 = arith.addf %312, %316 : vector<1x256xf32>
    %c59 = arith.constant 59 : index
    %318 = memref.load %arg6[%c59] : memref<98xf32, #tpu.memory_space<smem>>
    %c1_129 = arith.constant 1 : index
    %c19_130 = arith.constant 19 : index
    %319 = vector.load %arg9[%c1_129, %c19_130] : memref<2x358xf32, #tpu.memory_space<vmem>>, vector<1x256xf32>
    %320 = vector.broadcast %318 : f32 to vector<1x256xf32>
    %321 = arith.mulf %319, %320 : vector<1x256xf32>
    %322 = arith.addf %317, %321 : vector<1x256xf32>
    %c66_131 = arith.constant 66 : index
    %323 = memref.load %arg6[%c66_131] : memref<98xf32, #tpu.memory_space<smem>>
    %c1_132 = arith.constant 1 : index
    %c35_133 = arith.constant 35 : index
    %324 = vector.load %arg9[%c1_132, %c35_133] : memref<2x358xf32, #tpu.memory_space<vmem>>, vector<1x256xf32>
    %325 = vector.broadcast %323 : f32 to vector<1x256xf32>
    %326 = arith.mulf %324, %325 : vector<1x256xf32>
    %327 = arith.addf %322, %326 : vector<1x256xf32>
    %c73 = arith.constant 73 : index
    %328 = memref.load %arg6[%c73] : memref<98xf32, #tpu.memory_space<smem>>
    %c1_134 = arith.constant 1 : index
    %c51_135 = arith.constant 51 : index
    %329 = vector.load %arg9[%c1_134, %c51_135] : memref<2x358xf32, #tpu.memory_space<vmem>>, vector<1x256xf32>
    %330 = vector.broadcast %328 : f32 to vector<1x256xf32>
    %331 = arith.mulf %329, %330 : vector<1x256xf32>
    %332 = arith.addf %327, %331 : vector<1x256xf32>
    %c80_136 = arith.constant 80 : index
    %333 = memref.load %arg6[%c80_136] : memref<98xf32, #tpu.memory_space<smem>>
    %c1_137 = arith.constant 1 : index
    %c67_138 = arith.constant 67 : index
    %334 = vector.load %arg9[%c1_137, %c67_138] : memref<2x358xf32, #tpu.memory_space<vmem>>, vector<1x256xf32>
    %335 = vector.broadcast %333 : f32 to vector<1x256xf32>
    %336 = arith.mulf %334, %335 : vector<1x256xf32>
    %337 = arith.addf %332, %336 : vector<1x256xf32>
    %c87 = arith.constant 87 : index
    %338 = memref.load %arg6[%c87] : memref<98xf32, #tpu.memory_space<smem>>
    %c1_139 = arith.constant 1 : index
    %c83_140 = arith.constant 83 : index
    %339 = vector.load %arg9[%c1_139, %c83_140] : memref<2x358xf32, #tpu.memory_space<vmem>>, vector<1x256xf32>
    %340 = vector.broadcast %338 : f32 to vector<1x256xf32>
    %341 = arith.mulf %339, %340 : vector<1x256xf32>
    %342 = arith.addf %337, %341 : vector<1x256xf32>
    %c94 = arith.constant 94 : index
    %343 = memref.load %arg6[%c94] : memref<98xf32, #tpu.memory_space<smem>>
    %c1_141 = arith.constant 1 : index
    %c99_142 = arith.constant 99 : index
    %344 = vector.load %arg9[%c1_141, %c99_142] : memref<2x358xf32, #tpu.memory_space<vmem>>, vector<1x256xf32>
    %345 = vector.broadcast %343 : f32 to vector<1x256xf32>
    %346 = arith.mulf %344, %345 : vector<1x256xf32>
    %347 = arith.addf %342, %346 : vector<1x256xf32>
    %348 = arith.addf %276, %347 : vector<1x256xf32>
    %cst_143 = arith.constant 0.000000e+00 : f32
    %349 = vector.broadcast %cst_143 : f32 to vector<1x256xf32>
    %c4_144 = arith.constant 4 : index
    %350 = memref.load %arg6[%c4_144] : memref<98xf32, #tpu.memory_space<smem>>
    %c0_145 = arith.constant 0 : index
    %c4_146 = arith.constant 4 : index
    %351 = vector.load %arg9[%c0_145, %c4_146] : memref<2x358xf32, #tpu.memory_space<vmem>>, vector<1x256xf32>
    %352 = vector.broadcast %350 : f32 to vector<1x256xf32>
    %353 = arith.mulf %351, %352 : vector<1x256xf32>
    %354 = arith.addf %349, %353 : vector<1x256xf32>
    %c11 = arith.constant 11 : index
    %355 = memref.load %arg6[%c11] : memref<98xf32, #tpu.memory_space<smem>>
    %c0_147 = arith.constant 0 : index
    %c20 = arith.constant 20 : index
    %356 = vector.load %arg9[%c0_147, %c20] : memref<2x358xf32, #tpu.memory_space<vmem>>, vector<1x256xf32>
    %357 = vector.broadcast %355 : f32 to vector<1x256xf32>
    %358 = arith.mulf %356, %357 : vector<1x256xf32>
    %359 = arith.addf %354, %358 : vector<1x256xf32>
    %c18_148 = arith.constant 18 : index
    %360 = memref.load %arg6[%c18_148] : memref<98xf32, #tpu.memory_space<smem>>
    %c0_149 = arith.constant 0 : index
    %c36_150 = arith.constant 36 : index
    %361 = vector.load %arg9[%c0_149, %c36_150] : memref<2x358xf32, #tpu.memory_space<vmem>>, vector<1x256xf32>
    %362 = vector.broadcast %360 : f32 to vector<1x256xf32>
    %363 = arith.mulf %361, %362 : vector<1x256xf32>
    %364 = arith.addf %359, %363 : vector<1x256xf32>
    %c25 = arith.constant 25 : index
    %365 = memref.load %arg6[%c25] : memref<98xf32, #tpu.memory_space<smem>>
    %c0_151 = arith.constant 0 : index
    %c52_152 = arith.constant 52 : index
    %366 = vector.load %arg9[%c0_151, %c52_152] : memref<2x358xf32, #tpu.memory_space<vmem>>, vector<1x256xf32>
    %367 = vector.broadcast %365 : f32 to vector<1x256xf32>
    %368 = arith.mulf %366, %367 : vector<1x256xf32>
    %369 = arith.addf %364, %368 : vector<1x256xf32>
    %c32_153 = arith.constant 32 : index
    %370 = memref.load %arg6[%c32_153] : memref<98xf32, #tpu.memory_space<smem>>
    %c0_154 = arith.constant 0 : index
    %c68 = arith.constant 68 : index
    %371 = vector.load %arg9[%c0_154, %c68] : memref<2x358xf32, #tpu.memory_space<vmem>>, vector<1x256xf32>
    %372 = vector.broadcast %370 : f32 to vector<1x256xf32>
    %373 = arith.mulf %371, %372 : vector<1x256xf32>
    %374 = arith.addf %369, %373 : vector<1x256xf32>
    %c39 = arith.constant 39 : index
    %375 = memref.load %arg6[%c39] : memref<98xf32, #tpu.memory_space<smem>>
    %c0_155 = arith.constant 0 : index
    %c84_156 = arith.constant 84 : index
    %376 = vector.load %arg9[%c0_155, %c84_156] : memref<2x358xf32, #tpu.memory_space<vmem>>, vector<1x256xf32>
    %377 = vector.broadcast %375 : f32 to vector<1x256xf32>
    %378 = arith.mulf %376, %377 : vector<1x256xf32>
    %379 = arith.addf %374, %378 : vector<1x256xf32>
    %c46 = arith.constant 46 : index
    %380 = memref.load %arg6[%c46] : memref<98xf32, #tpu.memory_space<smem>>
    %c0_157 = arith.constant 0 : index
    %c100 = arith.constant 100 : index
    %381 = vector.load %arg9[%c0_157, %c100] : memref<2x358xf32, #tpu.memory_space<vmem>>, vector<1x256xf32>
    %382 = vector.broadcast %380 : f32 to vector<1x256xf32>
    %383 = arith.mulf %381, %382 : vector<1x256xf32>
    %384 = arith.addf %379, %383 : vector<1x256xf32>
    %c53 = arith.constant 53 : index
    %385 = memref.load %arg6[%c53] : memref<98xf32, #tpu.memory_space<smem>>
    %c1_158 = arith.constant 1 : index
    %c4_159 = arith.constant 4 : index
    %386 = vector.load %arg9[%c1_158, %c4_159] : memref<2x358xf32, #tpu.memory_space<vmem>>, vector<1x256xf32>
    %387 = vector.broadcast %385 : f32 to vector<1x256xf32>
    %388 = arith.mulf %386, %387 : vector<1x256xf32>
    %389 = arith.addf %384, %388 : vector<1x256xf32>
    %c60 = arith.constant 60 : index
    %390 = memref.load %arg6[%c60] : memref<98xf32, #tpu.memory_space<smem>>
    %c1_160 = arith.constant 1 : index
    %c20_161 = arith.constant 20 : index
    %391 = vector.load %arg9[%c1_160, %c20_161] : memref<2x358xf32, #tpu.memory_space<vmem>>, vector<1x256xf32>
    %392 = vector.broadcast %390 : f32 to vector<1x256xf32>
    %393 = arith.mulf %391, %392 : vector<1x256xf32>
    %394 = arith.addf %389, %393 : vector<1x256xf32>
    %c67_162 = arith.constant 67 : index
    %395 = memref.load %arg6[%c67_162] : memref<98xf32, #tpu.memory_space<smem>>
    %c1_163 = arith.constant 1 : index
    %c36_164 = arith.constant 36 : index
    %396 = vector.load %arg9[%c1_163, %c36_164] : memref<2x358xf32, #tpu.memory_space<vmem>>, vector<1x256xf32>
    %397 = vector.broadcast %395 : f32 to vector<1x256xf32>
    %398 = arith.mulf %396, %397 : vector<1x256xf32>
    %399 = arith.addf %394, %398 : vector<1x256xf32>
    %c74 = arith.constant 74 : index
    %400 = memref.load %arg6[%c74] : memref<98xf32, #tpu.memory_space<smem>>
    %c1_165 = arith.constant 1 : index
    %c52_166 = arith.constant 52 : index
    %401 = vector.load %arg9[%c1_165, %c52_166] : memref<2x358xf32, #tpu.memory_space<vmem>>, vector<1x256xf32>
    %402 = vector.broadcast %400 : f32 to vector<1x256xf32>
    %403 = arith.mulf %401, %402 : vector<1x256xf32>
    %404 = arith.addf %399, %403 : vector<1x256xf32>
    %c81_167 = arith.constant 81 : index
    %405 = memref.load %arg6[%c81_167] : memref<98xf32, #tpu.memory_space<smem>>
    %c1_168 = arith.constant 1 : index
    %c68_169 = arith.constant 68 : index
    %406 = vector.load %arg9[%c1_168, %c68_169] : memref<2x358xf32, #tpu.memory_space<vmem>>, vector<1x256xf32>
    %407 = vector.broadcast %405 : f32 to vector<1x256xf32>
    %408 = arith.mulf %406, %407 : vector<1x256xf32>
    %409 = arith.addf %404, %408 : vector<1x256xf32>
    %c88 = arith.constant 88 : index
    %410 = memref.load %arg6[%c88] : memref<98xf32, #tpu.memory_space<smem>>
    %c1_170 = arith.constant 1 : index
    %c84_171 = arith.constant 84 : index
    %411 = vector.load %arg9[%c1_170, %c84_171] : memref<2x358xf32, #tpu.memory_space<vmem>>, vector<1x256xf32>
    %412 = vector.broadcast %410 : f32 to vector<1x256xf32>
    %413 = arith.mulf %411, %412 : vector<1x256xf32>
    %414 = arith.addf %409, %413 : vector<1x256xf32>
    %c95 = arith.constant 95 : index
    %415 = memref.load %arg6[%c95] : memref<98xf32, #tpu.memory_space<smem>>
    %c1_172 = arith.constant 1 : index
    %c100_173 = arith.constant 100 : index
    %416 = vector.load %arg9[%c1_172, %c100_173] : memref<2x358xf32, #tpu.memory_space<vmem>>, vector<1x256xf32>
    %417 = vector.broadcast %415 : f32 to vector<1x256xf32>
    %418 = arith.mulf %416, %417 : vector<1x256xf32>
    %419 = arith.addf %414, %418 : vector<1x256xf32>
    %c4_174 = arith.constant 4 : index
    %c0_175 = arith.constant 0 : index
    %420 = vector.load %arg5[%c4_174, %c0_175] : memref<7x256xf32, #tpu.memory_space<vmem>>, vector<1x256xf32>
    %421 = arith.mulf %419, %420 : vector<1x256xf32>
    %422 = arith.addf %348, %421 : vector<1x256xf32>
    %cst_176 = arith.constant 0.000000e+00 : f32
    %423 = vector.broadcast %cst_176 : f32 to vector<1x256xf32>
    %c5 = arith.constant 5 : index
    %424 = memref.load %arg6[%c5] : memref<98xf32, #tpu.memory_space<smem>>
    %c0_177 = arith.constant 0 : index
    %c5_178 = arith.constant 5 : index
    %425 = vector.load %arg9[%c0_177, %c5_178] : memref<2x358xf32, #tpu.memory_space<vmem>>, vector<1x256xf32>
    %426 = vector.broadcast %424 : f32 to vector<1x256xf32>
    %427 = arith.mulf %425, %426 : vector<1x256xf32>
    %428 = arith.addf %423, %427 : vector<1x256xf32>
    %c12 = arith.constant 12 : index
    %429 = memref.load %arg6[%c12] : memref<98xf32, #tpu.memory_space<smem>>
    %c0_179 = arith.constant 0 : index
    %c21_180 = arith.constant 21 : index
    %430 = vector.load %arg9[%c0_179, %c21_180] : memref<2x358xf32, #tpu.memory_space<vmem>>, vector<1x256xf32>
    %431 = vector.broadcast %429 : f32 to vector<1x256xf32>
    %432 = arith.mulf %430, %431 : vector<1x256xf32>
    %433 = arith.addf %428, %432 : vector<1x256xf32>
    %c19_181 = arith.constant 19 : index
    %434 = memref.load %arg6[%c19_181] : memref<98xf32, #tpu.memory_space<smem>>
    %c0_182 = arith.constant 0 : index
    %c37_183 = arith.constant 37 : index
    %435 = vector.load %arg9[%c0_182, %c37_183] : memref<2x358xf32, #tpu.memory_space<vmem>>, vector<1x256xf32>
    %436 = vector.broadcast %434 : f32 to vector<1x256xf32>
    %437 = arith.mulf %435, %436 : vector<1x256xf32>
    %438 = arith.addf %433, %437 : vector<1x256xf32>
    %c26 = arith.constant 26 : index
    %439 = memref.load %arg6[%c26] : memref<98xf32, #tpu.memory_space<smem>>
    %c0_184 = arith.constant 0 : index
    %c53_185 = arith.constant 53 : index
    %440 = vector.load %arg9[%c0_184, %c53_185] : memref<2x358xf32, #tpu.memory_space<vmem>>, vector<1x256xf32>
    %441 = vector.broadcast %439 : f32 to vector<1x256xf32>
    %442 = arith.mulf %440, %441 : vector<1x256xf32>
    %443 = arith.addf %438, %442 : vector<1x256xf32>
    %c33_186 = arith.constant 33 : index
    %444 = memref.load %arg6[%c33_186] : memref<98xf32, #tpu.memory_space<smem>>
    %c0_187 = arith.constant 0 : index
    %c69 = arith.constant 69 : index
    %445 = vector.load %arg9[%c0_187, %c69] : memref<2x358xf32, #tpu.memory_space<vmem>>, vector<1x256xf32>
    %446 = vector.broadcast %444 : f32 to vector<1x256xf32>
    %447 = arith.mulf %445, %446 : vector<1x256xf32>
    %448 = arith.addf %443, %447 : vector<1x256xf32>
    %c40 = arith.constant 40 : index
    %449 = memref.load %arg6[%c40] : memref<98xf32, #tpu.memory_space<smem>>
    %c0_188 = arith.constant 0 : index
    %c85_189 = arith.constant 85 : index
    %450 = vector.load %arg9[%c0_188, %c85_189] : memref<2x358xf32, #tpu.memory_space<vmem>>, vector<1x256xf32>
    %451 = vector.broadcast %449 : f32 to vector<1x256xf32>
    %452 = arith.mulf %450, %451 : vector<1x256xf32>
    %453 = arith.addf %448, %452 : vector<1x256xf32>
    %c47 = arith.constant 47 : index
    %454 = memref.load %arg6[%c47] : memref<98xf32, #tpu.memory_space<smem>>
    %c0_190 = arith.constant 0 : index
    %c101 = arith.constant 101 : index
    %455 = vector.load %arg9[%c0_190, %c101] : memref<2x358xf32, #tpu.memory_space<vmem>>, vector<1x256xf32>
    %456 = vector.broadcast %454 : f32 to vector<1x256xf32>
    %457 = arith.mulf %455, %456 : vector<1x256xf32>
    %458 = arith.addf %453, %457 : vector<1x256xf32>
    %c54 = arith.constant 54 : index
    %459 = memref.load %arg6[%c54] : memref<98xf32, #tpu.memory_space<smem>>
    %c1_191 = arith.constant 1 : index
    %c5_192 = arith.constant 5 : index
    %460 = vector.load %arg9[%c1_191, %c5_192] : memref<2x358xf32, #tpu.memory_space<vmem>>, vector<1x256xf32>
    %461 = vector.broadcast %459 : f32 to vector<1x256xf32>
    %462 = arith.mulf %460, %461 : vector<1x256xf32>
    %463 = arith.addf %458, %462 : vector<1x256xf32>
    %c61 = arith.constant 61 : index
    %464 = memref.load %arg6[%c61] : memref<98xf32, #tpu.memory_space<smem>>
    %c1_193 = arith.constant 1 : index
    %c21_194 = arith.constant 21 : index
    %465 = vector.load %arg9[%c1_193, %c21_194] : memref<2x358xf32, #tpu.memory_space<vmem>>, vector<1x256xf32>
    %466 = vector.broadcast %464 : f32 to vector<1x256xf32>
    %467 = arith.mulf %465, %466 : vector<1x256xf32>
    %468 = arith.addf %463, %467 : vector<1x256xf32>
    %c68_195 = arith.constant 68 : index
    %469 = memref.load %arg6[%c68_195] : memref<98xf32, #tpu.memory_space<smem>>
    %c1_196 = arith.constant 1 : index
    %c37_197 = arith.constant 37 : index
    %470 = vector.load %arg9[%c1_196, %c37_197] : memref<2x358xf32, #tpu.memory_space<vmem>>, vector<1x256xf32>
    %471 = vector.broadcast %469 : f32 to vector<1x256xf32>
    %472 = arith.mulf %470, %471 : vector<1x256xf32>
    %473 = arith.addf %468, %472 : vector<1x256xf32>
    %c75 = arith.constant 75 : index
    %474 = memref.load %arg6[%c75] : memref<98xf32, #tpu.memory_space<smem>>
    %c1_198 = arith.constant 1 : index
    %c53_199 = arith.constant 53 : index
    %475 = vector.load %arg9[%c1_198, %c53_199] : memref<2x358xf32, #tpu.memory_space<vmem>>, vector<1x256xf32>
    %476 = vector.broadcast %474 : f32 to vector<1x256xf32>
    %477 = arith.mulf %475, %476 : vector<1x256xf32>
    %478 = arith.addf %473, %477 : vector<1x256xf32>
    %c82_200 = arith.constant 82 : index
    %479 = memref.load %arg6[%c82_200] : memref<98xf32, #tpu.memory_space<smem>>
    %c1_201 = arith.constant 1 : index
    %c69_202 = arith.constant 69 : index
    %480 = vector.load %arg9[%c1_201, %c69_202] : memref<2x358xf32, #tpu.memory_space<vmem>>, vector<1x256xf32>
    %481 = vector.broadcast %479 : f32 to vector<1x256xf32>
    %482 = arith.mulf %480, %481 : vector<1x256xf32>
    %483 = arith.addf %478, %482 : vector<1x256xf32>
    %c89 = arith.constant 89 : index
    %484 = memref.load %arg6[%c89] : memref<98xf32, #tpu.memory_space<smem>>
    %c1_203 = arith.constant 1 : index
    %c85_204 = arith.constant 85 : index
    %485 = vector.load %arg9[%c1_203, %c85_204] : memref<2x358xf32, #tpu.memory_space<vmem>>, vector<1x256xf32>
    %486 = vector.broadcast %484 : f32 to vector<1x256xf32>
    %487 = arith.mulf %485, %486 : vector<1x256xf32>
    %488 = arith.addf %483, %487 : vector<1x256xf32>
    %c96_205 = arith.constant 96 : index
    %489 = memref.load %arg6[%c96_205] : memref<98xf32, #tpu.memory_space<smem>>
    %c1_206 = arith.constant 1 : index
    %c101_207 = arith.constant 101 : index
    %490 = vector.load %arg9[%c1_206, %c101_207] : memref<2x358xf32, #tpu.memory_space<vmem>>, vector<1x256xf32>
    %491 = vector.broadcast %489 : f32 to vector<1x256xf32>
    %492 = arith.mulf %490, %491 : vector<1x256xf32>
    %493 = arith.addf %488, %492 : vector<1x256xf32>
    %c5_208 = arith.constant 5 : index
    %c0_209 = arith.constant 0 : index
    %494 = vector.load %arg5[%c5_208, %c0_209] : memref<7x256xf32, #tpu.memory_space<vmem>>, vector<1x256xf32>
    %495 = arith.mulf %493, %494 : vector<1x256xf32>
    %496 = arith.addf %422, %495 : vector<1x256xf32>
    %cst_210 = arith.constant 0.000000e+00 : f32
    %497 = vector.broadcast %cst_210 : f32 to vector<1x256xf32>
    %c6 = arith.constant 6 : index
    %498 = memref.load %arg6[%c6] : memref<98xf32, #tpu.memory_space<smem>>
    %c0_211 = arith.constant 0 : index
    %c6_212 = arith.constant 6 : index
    %499 = vector.load %arg9[%c0_211, %c6_212] : memref<2x358xf32, #tpu.memory_space<vmem>>, vector<1x256xf32>
    %500 = vector.broadcast %498 : f32 to vector<1x256xf32>
    %501 = arith.mulf %499, %500 : vector<1x256xf32>
    %502 = arith.addf %497, %501 : vector<1x256xf32>
    %c13 = arith.constant 13 : index
    %503 = memref.load %arg6[%c13] : memref<98xf32, #tpu.memory_space<smem>>
    %c0_213 = arith.constant 0 : index
    %c22_214 = arith.constant 22 : index
    %504 = vector.load %arg9[%c0_213, %c22_214] : memref<2x358xf32, #tpu.memory_space<vmem>>, vector<1x256xf32>
    %505 = vector.broadcast %503 : f32 to vector<1x256xf32>
    %506 = arith.mulf %504, %505 : vector<1x256xf32>
    %507 = arith.addf %502, %506 : vector<1x256xf32>
    %c20_215 = arith.constant 20 : index
    %508 = memref.load %arg6[%c20_215] : memref<98xf32, #tpu.memory_space<smem>>
    %c0_216 = arith.constant 0 : index
    %c38_217 = arith.constant 38 : index
    %509 = vector.load %arg9[%c0_216, %c38_217] : memref<2x358xf32, #tpu.memory_space<vmem>>, vector<1x256xf32>
    %510 = vector.broadcast %508 : f32 to vector<1x256xf32>
    %511 = arith.mulf %509, %510 : vector<1x256xf32>
    %512 = arith.addf %507, %511 : vector<1x256xf32>
    %c27 = arith.constant 27 : index
    %513 = memref.load %arg6[%c27] : memref<98xf32, #tpu.memory_space<smem>>
    %c0_218 = arith.constant 0 : index
    %c54_219 = arith.constant 54 : index
    %514 = vector.load %arg9[%c0_218, %c54_219] : memref<2x358xf32, #tpu.memory_space<vmem>>, vector<1x256xf32>
    %515 = vector.broadcast %513 : f32 to vector<1x256xf32>
    %516 = arith.mulf %514, %515 : vector<1x256xf32>
    %517 = arith.addf %512, %516 : vector<1x256xf32>
    %c34_220 = arith.constant 34 : index
    %518 = memref.load %arg6[%c34_220] : memref<98xf32, #tpu.memory_space<smem>>
    %c0_221 = arith.constant 0 : index
    %c70_222 = arith.constant 70 : index
    %519 = vector.load %arg9[%c0_221, %c70_222] : memref<2x358xf32, #tpu.memory_space<vmem>>, vector<1x256xf32>
    %520 = vector.broadcast %518 : f32 to vector<1x256xf32>
    %521 = arith.mulf %519, %520 : vector<1x256xf32>
    %522 = arith.addf %517, %521 : vector<1x256xf32>
    %c41 = arith.constant 41 : index
    %523 = memref.load %arg6[%c41] : memref<98xf32, #tpu.memory_space<smem>>
    %c0_223 = arith.constant 0 : index
    %c86_224 = arith.constant 86 : index
    %524 = vector.load %arg9[%c0_223, %c86_224] : memref<2x358xf32, #tpu.memory_space<vmem>>, vector<1x256xf32>
    %525 = vector.broadcast %523 : f32 to vector<1x256xf32>
    %526 = arith.mulf %524, %525 : vector<1x256xf32>
    %527 = arith.addf %522, %526 : vector<1x256xf32>
    %c48_225 = arith.constant 48 : index
    %528 = memref.load %arg6[%c48_225] : memref<98xf32, #tpu.memory_space<smem>>
    %c0_226 = arith.constant 0 : index
    %c102 = arith.constant 102 : index
    %529 = vector.load %arg9[%c0_226, %c102] : memref<2x358xf32, #tpu.memory_space<vmem>>, vector<1x256xf32>
    %530 = vector.broadcast %528 : f32 to vector<1x256xf32>
    %531 = arith.mulf %529, %530 : vector<1x256xf32>
    %532 = arith.addf %527, %531 : vector<1x256xf32>
    %c55 = arith.constant 55 : index
    %533 = memref.load %arg6[%c55] : memref<98xf32, #tpu.memory_space<smem>>
    %c1_227 = arith.constant 1 : index
    %c6_228 = arith.constant 6 : index
    %534 = vector.load %arg9[%c1_227, %c6_228] : memref<2x358xf32, #tpu.memory_space<vmem>>, vector<1x256xf32>
    %535 = vector.broadcast %533 : f32 to vector<1x256xf32>
    %536 = arith.mulf %534, %535 : vector<1x256xf32>
    %537 = arith.addf %532, %536 : vector<1x256xf32>
    %c62 = arith.constant 62 : index
    %538 = memref.load %arg6[%c62] : memref<98xf32, #tpu.memory_space<smem>>
    %c1_229 = arith.constant 1 : index
    %c22_230 = arith.constant 22 : index
    %539 = vector.load %arg9[%c1_229, %c22_230] : memref<2x358xf32, #tpu.memory_space<vmem>>, vector<1x256xf32>
    %540 = vector.broadcast %538 : f32 to vector<1x256xf32>
    %541 = arith.mulf %539, %540 : vector<1x256xf32>
    %542 = arith.addf %537, %541 : vector<1x256xf32>
    %c69_231 = arith.constant 69 : index
    %543 = memref.load %arg6[%c69_231] : memref<98xf32, #tpu.memory_space<smem>>
    %c1_232 = arith.constant 1 : index
    %c38_233 = arith.constant 38 : index
    %544 = vector.load %arg9[%c1_232, %c38_233] : memref<2x358xf32, #tpu.memory_space<vmem>>, vector<1x256xf32>
    %545 = vector.broadcast %543 : f32 to vector<1x256xf32>
    %546 = arith.mulf %544, %545 : vector<1x256xf32>
    %547 = arith.addf %542, %546 : vector<1x256xf32>
    %c76 = arith.constant 76 : index
    %548 = memref.load %arg6[%c76] : memref<98xf32, #tpu.memory_space<smem>>
    %c1_234 = arith.constant 1 : index
    %c54_235 = arith.constant 54 : index
    %549 = vector.load %arg9[%c1_234, %c54_235] : memref<2x358xf32, #tpu.memory_space<vmem>>, vector<1x256xf32>
    %550 = vector.broadcast %548 : f32 to vector<1x256xf32>
    %551 = arith.mulf %549, %550 : vector<1x256xf32>
    %552 = arith.addf %547, %551 : vector<1x256xf32>
    %c83_236 = arith.constant 83 : index
    %553 = memref.load %arg6[%c83_236] : memref<98xf32, #tpu.memory_space<smem>>
    %c1_237 = arith.constant 1 : index
    %c70_238 = arith.constant 70 : index
    %554 = vector.load %arg9[%c1_237, %c70_238] : memref<2x358xf32, #tpu.memory_space<vmem>>, vector<1x256xf32>
    %555 = vector.broadcast %553 : f32 to vector<1x256xf32>
    %556 = arith.mulf %554, %555 : vector<1x256xf32>
    %557 = arith.addf %552, %556 : vector<1x256xf32>
    %c90 = arith.constant 90 : index
    %558 = memref.load %arg6[%c90] : memref<98xf32, #tpu.memory_space<smem>>
    %c1_239 = arith.constant 1 : index
    %c86_240 = arith.constant 86 : index
    %559 = vector.load %arg9[%c1_239, %c86_240] : memref<2x358xf32, #tpu.memory_space<vmem>>, vector<1x256xf32>
    %560 = vector.broadcast %558 : f32 to vector<1x256xf32>
    %561 = arith.mulf %559, %560 : vector<1x256xf32>
    %562 = arith.addf %557, %561 : vector<1x256xf32>
    %c97_241 = arith.constant 97 : index
    %563 = memref.load %arg6[%c97_241] : memref<98xf32, #tpu.memory_space<smem>>
    %c1_242 = arith.constant 1 : index
    %c102_243 = arith.constant 102 : index
    %564 = vector.load %arg9[%c1_242, %c102_243] : memref<2x358xf32, #tpu.memory_space<vmem>>, vector<1x256xf32>
    %565 = vector.broadcast %563 : f32 to vector<1x256xf32>
    %566 = arith.mulf %564, %565 : vector<1x256xf32>
    %567 = arith.addf %562, %566 : vector<1x256xf32>
    %c6_244 = arith.constant 6 : index
    %c0_245 = arith.constant 0 : index
    %568 = vector.load %arg5[%c6_244, %c0_245] : memref<7x256xf32, #tpu.memory_space<vmem>>, vector<1x256xf32>
    %569 = arith.mulf %567, %568 : vector<1x256xf32>
    %570 = arith.addf %496, %569 : vector<1x256xf32>
    %c0_246 = arith.constant 0 : index
    %571 = memref.load %arg7[%c0_246] : memref<2xf32, #tpu.memory_space<smem>>
    %572 = vector.broadcast %571 : f32 to vector<1x256xf32>
    %573 = arith.mulf %570, %572 : vector<1x256xf32>
    %c1_247 = arith.constant 1 : index
    %574 = memref.load %arg7[%c1_247] : memref<2xf32, #tpu.memory_space<smem>>
    %575 = vector.broadcast %574 : f32 to vector<1x256xf32>
    %576 = arith.addf %573, %575 : vector<1x256xf32>
    %577 = arith.negf %576 : vector<1x256xf32>
    %578 = math.exp %577 : vector<1x256xf32>
    %cst_248 = arith.constant 1.000000e+00 : f32
    %579 = vector.broadcast %cst_248 : f32 to vector<1x256xf32>
    %580 = arith.addf %579, %578 : vector<1x256xf32>
    %581 = arith.divf %579, %580 : vector<1x256xf32>
    %c0_249 = arith.constant 0 : index
    %c0_250 = arith.constant 0 : index
    %c0_251 = arith.constant 0 : index
    %582 = vector.load %arg8[%c0_249, %c0_250, %c0_251] : memref<1x64x256xf32, #tpu.memory_space<vmem>>, vector<1x64x256xf32>
    %583 = vector.shape_cast %582 : vector<1x64x256xf32> to vector<64x256xf32>
    %584 = vector.broadcast %581 : vector<1x256xf32> to vector<64x256xf32>
    %585 = arith.mulf %583, %584 : vector<64x256xf32>
    %c0_252 = arith.constant 0 : index
    %c0_253 = arith.constant 0 : index
    %c0_254 = arith.constant 0 : index
    %586 = vector.load %arg8[%c0_252, %c0_253, %c0_254] : memref<1x64x256xf32, #tpu.memory_space<vmem>>, vector<1x64x256xf32>
    %587 = vector.shape_cast %586 : vector<1x64x256xf32> to vector<64x256xf32>
    %588 = vector.shape_cast %585 : vector<64x256xf32> to vector<1x64x256xf32>
    tpu.vector_store %arg8[%c0_252, %c0_253, %c0_254], %588 {strides = array<i32>} : memref<1x64x256xf32, #tpu.memory_space<vmem>>, vector<1x64x256xf32>,
    return
  }
  func.func @transform_0(%arg0: i32) -> (i32, i32, i32) {
    %c0_i32 = arith.constant 0 : i32
    %c0_i32_0 = arith.constant 0 : i32
    %c0_i32_1 = arith.constant 0 : i32
    return %arg0, %c0_i32, %c0_i32_0 : i32, i32, i32
  }
  func.func @transform_1(%arg0: i32) -> (i32, i32) {
    %c0_i32 = arith.constant 0 : i32
    %c0_i32_0 = arith.constant 0 : i32
    %c0_i32_1 = arith.constant 0 : i32
    return %c0_i32, %c0_i32_0 : i32, i32
  }
  func.func @transform_2(%arg0: i32) -> (i32, i32) {
    %c0_i32 = arith.constant 0 : i32
    %c0_i32_0 = arith.constant 0 : i32
    %c0_i32_1 = arith.constant 0 : i32
    return %c0_i32, %c0_i32_0 : i32, i32
  }
  func.func @transform_3(%arg0: i32) -> (i32, i32) {
    %c0_i32 = arith.constant 0 : i32
    %c0_i32_0 = arith.constant 0 : i32
    %c0_i32_1 = arith.constant 0 : i32
    return %c0_i32, %c0_i32_0 : i32, i32
  }
  func.func @transform_4(%arg0: i32) -> (i32, i32) {
    %c0_i32 = arith.constant 0 : i32
    %c0_i32_0 = arith.constant 0 : i32
    %c0_i32_1 = arith.constant 0 : i32
    return %c0_i32, %c0_i32_0 : i32, i32
  }
  func.func @transform_5(%arg0: i32) -> i32 {
    %c0_i32 = arith.constant 0 : i32
    %c0_i32_0 = arith.constant 0 : i32
    return %c0_i32 : i32
  }
  func.func @transform_6(%arg0: i32) -> i32 {
    %c0_i32 = arith.constant 0 : i32
    %c0_i32_0 = arith.constant 0 : i32
    return %c0_i32 : i32
  }
  func.func @transform_7(%arg0: i32) -> (i32, i32, i32) {
    %c0_i32 = arith.constant 0 : i32
    %c0_i32_0 = arith.constant 0 : i32
    %c0_i32_1 = arith.constant 0 : i32
    return %arg0, %c0_i32, %c0_i32_0 : i32, i32, i32
  }
}

</mosaic_0001>

<bundles_post_ra>
// kernel: tpu_custom_call.1
= control target key start
LH: loop header
LB: loop body
LE: loop exit
PB: predicated region body
PF: predicated region fallthrough
CT: control target
= control target key end

     0   :  { %s3650_s0 = inlined_call_operand.hbm [shape: f32[2,64,256], index: 0, kind: input, shape index: {}]   ;;  %s3651_s1 = inlined_call_operand.vmem [shape: f32[64,8], index: 1, kind: input, shape index: {}]   ;;  %s3652_s2 = inlined_call_operand.vmem [shape: f32[1,4], index: 2, kind: input, shape index: {}]   ;;  %s3653_s3 = inlined_call_operand.vmem [shape: f32[64,1], index: 3, kind: input, shape index: {}]   ;;  %s3654_s4 = inlined_call_operand.vmem [shape: f32[7,256], index: 4, kind: input, shape index: {}]   ;;  %s3655_s5 = inlined_call_operand.vmem [shape: f32[98], index: 5, kind: input, shape index: {}]   ;;  %s3656_s6 = inlined_call_operand.vmem [shape: f32[2], index: 6, kind: input, shape index: {}]   ;;  %s3657_s7 = inlined_call_operand.hbm [shape: f32[2,64,256], index: 7, kind: output, shape index: {}]  }
   0x1   :  { %3661 = sst [smem:[#allocation18_spill]] %s3655_s5 }
   0x2   :  { %3662 = sst [smem:[#allocation19_spill]] %s3656_s6 }
   0x3   :  { %12 = vsyncpa [#allocation4], 0 }
   0x4   :  { %14 = vsyncpa [#allocation4 + $0x1], 0 }
   0x5   :  { %15 = vsyncpa [#allocation6], 0 }
   0x6   :  { %16 = vsyncpa [#allocation9], 0 }
   0x7   :  { %17 = vsyncpa [#allocation5], 0 }
   0x8   :  { %19 = vsyncpa [#allocation5 + $0x1], 0  ;;  %s2564_s24 = smov 0   ;;  %s2566_s25 = smov 0  }
   0x9   :  { %s2568_s26 = smov 0   ;;  %s2570_s27 = smov 0  }
   0xa LB: > { %s2585_s28 = sadd.s32 4294967295, %s2494_s27   ;;  %s2092_s29 = sadd.s32 4294967294, %s2494_s27   ;;  %s2494_s27 = sphi %s2570_s27, %s3684_s27   ;;  %s2490_s26 = sphi %s2568_s26, %s3688_s26   ;;  %s2486_s25 = sphi %s2566_s25, %s3687_s25   ;;  %s2482_s24 = sphi %s2564_s24, %s3686_s24  }
   0xb   : > { %s2589_s30 = sadd.s32 1, %s2494_s27   ;;  %s32_s8 = sadd.s32 1, %s2490_s26 }
   0xc   : > { %3663 = sst [smem:[#allocation15_spill]] %s2589_s30  ;;  %s29_s9 = ssub.s32 %s2494_s27, %s2589_s30 }
   0xd   : > { %p39_p0 = scmp.ne.s32.totalorder %s2490_s26, %s2486_s25  ;;  %p30_p1 = scmp.eq.s32.totalorder %s29_s9, 0 }
   0xe   : > { %p40_p2 = scmp.eq.s32.totalorder %s2494_s27, 0  ;;  %p45_p3 = scmp.ne.s32.totalorder %s2486_s25, %s2482_s24 }
   0xf   : > { %p46_p4 = scmp.eq.s32.totalorder %s2585_s28, 0  ;;  %p195_p7 = scmp.eq.s32.totalorder %s2585_s28, 1 }
  0x10   : > { %s2601_s10 = scalar_select %p30_p1, %s2490_s26, %s32_s8  }
  0x11   : > { %p2603_p5 = por %p40_p2, %p39_p0  ;;  %p2609_p6 = por %p46_p4, %p45_p3 }
  0x12   : > { %3664 = sst [smem:[#allocation16_spill]] %s2601_s10  ;;  %p201_p8 = scmp.eq.s32.totalorder %s2092_s29, 1 }
  0x13   : > { %p2093_p9 = scmp.ge.s32.totalorder %s2494_s27, 1  ;;  %p208_p10 = scmp.lt.s32.totalorder %s2494_s27, 3 }
  0x14   : > { %p2616_p11 = por %p195_p7, %p39_p0  ;;  %p2620_p12 = por %p201_p8, %p45_p3 }
  0x15   : > { %p2624_p13 = pnand %p2093_p9, %p208_p10  ;;  %s3671_s5 = sld [smem:[#allocation18_spill]] }
  0x16   : > { %s3668_s14 = scalar_select %p2620_p12, 1, 0 }
  0x17   : > { %p2236_p1 = pneg %p2624_p13  ;;  %p2253_p2 = scmp.lt.s32.totalorder %s2494_s27, 2 }
  0x18   : > { %3669 = sst [smem:[#allocation17_spill]] %s3668_s14  ;;  %s2496_s23 = smov [#allocation7]  }
  0x19   : > { %p2237_p3 = pnand %p2236_p1, %p46_p4  ;;  %s3672_s6 = sld [smem:[#allocation19_spill]] }
  0x1a   : > { %p2642_p7 = pnand %p2253_p2, %p2603_p5  ;;  %s253_s29 = sand.u32 1, %s2490_s26  }
  0x1b   : > { %s232_s18 = sshll.u32 %s3671_s5, 4  ;;  %s2497_s8 = smov [#allocation8]   ;;  %s233_s18 = int_to_ptr.vmem [resolvable:$true] %s232_s18 }
  0x1c   : > { %2239 = dma.vmem_to_smem (!%p2237_p3), %s233_s18, 16, %s2496_s23, [#allocation6]  }
  0x1d   : > { %s2097_s9 = sshll.u32 %s253_s29, 7  ;;  %s2222_s16 = sshll.u32 %s2494_s27, 7 }
  0x1e   : > { %s262_s10 = scalar_lea.hbm %s3650_s0, %s2222_s16  ;;  %s257_s19 = scalar_lea.vmem [#allocation3], %s2097_s9 }
  0x1f   : > { %s242_s21 = sshll.u32 %s3672_s6, 4  ;;  %s265_s20 = sshll.u32 %s257_s19, 4  ;;  %s243_s21 = int_to_ptr.vmem [resolvable:$true] %s242_s21  ;;  %s266_s20 = int_to_ptr.vmem [resolvable:$true] %s265_s20 }
  0x20   : > { %2242 = dma.vmem_to_smem (!%p2237_p3), %s243_s21, 16, %s2497_s8, [#allocation9]  }
  0x21   : > { %s263_s11 = sshll.u32 %s262_s10, 4  ;;  %s254_s6 = scalar_lea.sflag [#allocation4], %s253_s29  ;;  %s264_s11 = int_to_ptr.hbm [resolvable:$true] %s263_s11 }
  0x22   : > { %s2390_s30 = sshra.s32 %s264_s11, 4  ;;  %p2394_p8 = pneg %p2642_p7  ;;  %s2391_s30 = int_to_ptr.hbm [resolvable:$true] %s2390_s30 }
  0x23   : > { %s2392_s14 = scalar_lea.hbm %s2391_s30, 128  ;;  %s2397_s23 = scalar_lea.hbm %s3650_s0, 256 }
  0x24   : > { %p2393_p5 = scmp.ne.s32.totalorder %s2391_s30, %s2392_s14  ;;  %p2398_p1 = scmp.lt.s32.totalorder %s2391_s30, %s3650_s0 }
  0x25   : > { %p2399_p2 = scmp.lt.s32.totalorder %s2397_s23, %s2392_s14 }
  0x26   : > { %p2395_p9 = pnand %p2394_p8, %p2393_p5 }
  0x27   : > { %p2400_p3 = por %p2399_p2, %p2398_p1 }
  0x28   : > { %p2396_p10 = pneg %p2395_p9 }
  0x2a   : > { %p2401_p0 = pnand %p2400_p3, %p2396_p10 }
  0x2c   : > { %2404 = shalt.err (!%p2401_p0)
}
  0x2d   : > { %s2498_s10 = smov 256   ;;  %s2499_s29 = smov 16  }
  0x2e   : > { %2246 = dma.hbm_to_vmem [thread:$0]  (!%p2642_p7), %s264_s11, 2048, %s266_s20, %s254_s6, %s2498_s10, %s2498_s10, %s2499_s29  }
  0x2f   : > { %277 = sbr.rel (%p2624_p13) target bundleno = 1397 (0x575), region = 48  ;;  %s2664_s9 = sand.u32 (!%p2624_p13), 1, %s2486_s25  }
  0x30   : > { %s2101_s30 = sshll.u32 (!%p2624_p13), %s2664_s9, 7  ;;  %s280_s14 = scalar_lea.sflag (!%p2624_p13), [#allocation4], %s2664_s9 }
  0x31   : > { %s2670_s16 = scalar_lea.vmem (!%p2624_p13), [#allocation3], %s2101_s30 }
  0x34   : > { %2465 = dma.done.wait (%p2609_p6), %s280_s14, 2048  }
  0x35   : > { %2467 = vsyncadd (%p2609_p6), %s280_s14, 4294965248 }
  0x36   : > { %2469 = dma.done.wait (%p46_p4), [#allocation6], 16  }
  0x37   : > { %2471 = vsyncadd (%p46_p4), [#allocation6], 4294967280 }
  0x38   : > { %2473 = dma.done.wait (%p46_p4), [#allocation9], 16  }
  0x39   : > { %2475 = vsyncadd (%p46_p4), [#allocation9], 4294967280 }
  0x3a   : > { %299 = sfence }
  0x3b   : > { %v2685_v0 = vld [vmem:[%s2670_s16 + $0x20] sm:$0xff]  ;;  %v2688_v1 = vld [vmem:[%s2670_s16 + $0x28] sm:$0xff]  ;;  %v2699_v5 = vld [vmem:[%s2670_s16 + $0x10] sm:$0xff]  ;;  %v2500_v32 = vmov 256.0   ;;  %vm422_vm1 = vcmask 31744   ;;  %s2501_s8 = smov 2  }
  0x3c   : > { %v2691_v2 = vld [vmem:[%s2670_s16] sm:$0xff]  ;;  %v348_v3 = vadd.f32 %v2688_v1, %v2685_v0  ;;  %v2696_v4 = vld [vmem:[%s2670_s16 + $0x8] sm:$0xff]  ;;  %v2702_v6 = vld [vmem:[%s2670_s16 + $0x18] sm:$0xff]  ;;  %v387_v17 = vmax.f32 %v2685_v0, %v2688_v1  ;;  %2320 = vrcp.f32 %v2500_v32  ;;  %s2502_s17 = smov 4   ;;  %s2503_s21 = smov 1  }
  0x3d   : > { %v342_v7 = vadd.f32 %v2696_v4, %v2691_v2  ;;  %v384_v8 = vmax.f32 %v2699_v5, %v2702_v6  ;;  %v2709_v9 = vld [vmem:[%s2670_s16 + $0x30] sm:$0xff]  ;;  %v2712_v10 = vld [vmem:[%s2670_s16 + $0x38] sm:$0xff]  ;;  %v381_v11 = vmax.f32 %v2691_v2, %v2696_v4  ;;  %v345_v12 = vadd.f32 %v2702_v6, %v2699_v5  ;;  %v2721_v14 = vld [vmem:[%s2670_s16 + $0x40] sm:$0xff]  ;;  %s2504_s23 = smov 124   ;;  %s2508_s5 = smov 51  }
  0x3e   : > { %349 = vadd.xlane.f32.xlu1 %v348_v3  ;;  %v351_v13 = vadd.f32 %v2712_v10, %v2709_v9  ;;  %v2724_v15 = vld [vmem:[%s2670_s16 + $0x48] sm:$0xff]  ;;  %v390_v18 = vmax.f32 %v2709_v9, %v2712_v10  ;;  %v2733_v19 = vld [vmem:[%s2670_s16 + $0x50] sm:$0xff]  ;;  %v2736_v20 = vld [vmem:[%s2670_s16 + $0x58] sm:$0xff]  ;;  %s2114_s10 = sld [smem:[#allocation7 + $0xe]]  ;;  %s2509_s12 = smov 80  }
  0x3f   : > { %343 = vadd.xlane.f32.xlu0 %v342_v7  ;;  %385 = vmax.xlane.f32.xlu2 %v384_v8  ;;  %v354_v16 = vadd.f32 %v2724_v15, %v2721_v14  ;;  %v2739_v21 = vld [vmem:[%s2670_s16 + $0x60] sm:$0xff]  ;;  %v2742_v22 = vld [vmem:[%s2670_s16 + $0x68] sm:$0xff]  ;;  %v393_v23 = vmax.f32 %v2721_v14, %v2724_v15  ;;  %v357_v24 = vadd.f32 %v2736_v20, %v2733_v19  ;;  %v2751_v26 = vld [vmem:[%s2670_s16 + $0x70] sm:$0xff]  ;;  %s2113_s29 = sld [smem:[#allocation7 + $0x7]]  ;;  %s2510_s15 = smov 96  }
  0x40   : > { %v360_v25 = vadd.f32 %v2742_v22, %v2739_v21  ;;  %v2754_v27 = vld [vmem:[%s2670_s16 + $0x78] sm:$0xff]  ;;  %v396_v29 = vmax.f32 %v2733_v19, %v2736_v20  ;;  %v399_v30 = vmax.f32 %v2739_v21, %v2742_v22  ;;  %v2772_v48 = vld [vmem:[%s3651_s1 + $0x8] sm:$0xff]  ;;  %v2779_v52 = vld [vmem:[%s3651_s1 + $0x10] sm:$0xff]  ;;  %s2118_s14 = sld [smem:[#allocation7 + $0x2a]]  ;;  %s2511_s22 = smov 112  }
  0x41   : > { %v363_v28 = vadd.f32 %v2754_v27, %v2751_v26  ;;  %v402_v31 = vmax.f32 %v2751_v26, %v2754_v27  ;;  %v2767_v47 = vld [vmem:[%s3651_s1] sm:$0xff]  ;;  %v2785_v58 = vld [vmem:[%s3651_s1 + $0x18] sm:$0xff]  ;;  %s2117_s16 = sld [smem:[#allocation7 + $0x23]]  ;;  %s2512_s11 = smov 32  }
  0x42   : > { %v2321_v33 = vpop.eup %2320  ;;  %v2792_v63 = vld [vmem:[%s3651_s1 + $0x20] sm:$0xff]  ;;  %s2116_s6 = sld [smem:[#allocation7 + $0x1c]]  ;;  %s2513_s18 = smov 48  }
  0x43   : > { %v367_v34 = vmul.f32 256.0, %v2321_v33  ;;  %vm371_vm0 = vweird.f32 %v2321_v33  ;;  %s2128_s19 = sld [smem:[#allocation7 + $0xf]] }
  0x44   : > { %s2127_s20 = sld [smem:[#allocation7 + $0x8]] }
  0x45   : > { %v368_v35 = vsub.f32 1.0, %v367_v34 }
  0x46   : > { %382 = vmax.xlane.f32.xlu1 %v381_v11 }
  0x47   : > { %346 = vadd.xlane.f32.xlu0 %v345_v12  ;;  %352 = vadd.xlane.f32.xlu2 %v351_v13  ;;  %v369_v36 = vmul.f32 %v2321_v33, %v368_v35  ;;  %v2155_v13 = vld [vmem:[%s3654_s4 + $0x2] ss:$8 sm:$0x3] }
  0x49   : > { %v370_v40 = vadd.f32 %v2321_v33, %v369_v36 }
  0x4b   : > { %v372_v41 = vsel %vm371_vm0, %v2321_v33, %v370_v40 }
  0x4e   : > { %355 = vadd.xlane.f32.xlu1 %v354_v16 }
  0x4f   : > { %388 = vmax.xlane.f32.xlu0 %v387_v17  ;;  %391 = vmax.xlane.f32.xlu2 %v390_v18 }
  0x56   : > { %394 = vmax.xlane.f32.xlu1 %v393_v23 }
  0x57   : > { %358 = vadd.xlane.f32.xlu0 %v357_v24  ;;  %361 = vadd.xlane.f32.xlu2 %v360_v25  ;;  %v2807_v24 = vld [vmem:[%s3651_s1 + $0x28] sm:$0xff] }
  0x5e   : > { %364 = vadd.xlane.f32.xlu1 %v363_v28 }
  0x5f   : > { %397 = vmax.xlane.f32.xlu0 %v396_v29  ;;  %400 = vmax.xlane.f32.xlu2 %v399_v30 }
  0x67   : > { %403 = vmax.xlane.f32.xlu0 %v402_v31  ;;  %v2813_v31 = vld [vmem:[%s3651_s1 + $0x30] sm:$0xff] }
  0x77   : > { %1315 = vrot.lane.b32.xlu1 %v2155_v13, %s2501_s8  ;;  %s2115_s8 = sld [smem:[#allocation7 + $0x15]] }
  0xb1   : > { %v350_v37 = vpop.xlane.xlu1 %349 }
  0xb2   : > { %v344_v38 = vpop.xlane.xlu0 %343  ;;  %v386_v39 = vpop.xlane.xlu2 %385  ;;  %v375_v50 = vmul.f32 %v372_v41, %v350_v37 }
  0xb3   : > { %v373_v46 = vmul.f32 %v372_v41, %v344_v38  ;;  %v447_v11 = vmul.f32 %v2772_v48, %v386_v39 }
  0xb4   : > { %v416_v59 = vmul.f32 %v2779_v52, %v375_v50  ;;  %v2827_v50 = vld [vmem:[%s3651_s1 + $0x38] sm:$0xff] }
  0xb5   : > { %v414_v51 = vmul.f32 %v2767_v47, %v373_v46  ;;  %v455_v33 = vsel %vm422_vm1, %v447_v11, 0.0 }
  0xb6   : > { %v426_v8 = vsel %vm422_vm1, %v416_v59, 0.0 }
  0xb7   : > { %v423_v60 = vsel %vm422_vm1, %v414_v51, 0.0 }
  0xb9   : > { %v383_v42 = vpop.xlane.xlu1 %382 }
  0xba   : > { %v347_v43 = vpop.xlane.xlu0 %346  ;;  %v353_v44 = vpop.xlane.xlu2 %352  ;;  %v446_v7 = vmul.f32 %v2767_v47, %v383_v42 }
  0xbb   : > { %v374_v45 = vmul.f32 %v372_v41, %v347_v43  ;;  %v376_v55 = vmul.f32 %v372_v41, %v353_v44 }
  0xbc   : > { %v454_v29 = vsel %vm422_vm1, %v446_v7, 0.0 }
  0xbd   : > { %v415_v49 = vmul.f32 %v2772_v48, %v374_v45  ;;  %v417_v3 = vmul.f32 %v2785_v58, %v376_v55  ;;  %v456_v39 = vadd.f32 %v455_v33, %v454_v29 }
  0xbf   : > { %v424_v54 = vsel %vm422_vm1, %v415_v49, 0.0  ;;  %v428_v23 = vsel %vm422_vm1, %v417_v3, 0.0 }
  0xc0   : > { %v425_v62 = vadd.f32 %v424_v54, %v423_v60 }
  0xc1   : > { %v356_v53 = vpop.xlane.xlu1 %355 }
  0xc2   : > { %v389_v56 = vpop.xlane.xlu0 %388  ;;  %v392_v57 = vpop.xlane.xlu2 %391  ;;  %v377_v61 = vmul.f32 %v372_v41, %v356_v53  ;;  %v427_v16 = vadd.f32 %v426_v8, %v425_v62 }
  0xc3   : > { %v448_v17 = vmul.f32 %v2779_v52, %v389_v56  ;;  %v449_v37 = vmul.f32 %v2785_v58, %v392_v57 }
  0xc4   : > { %v418_v12 = vmul.f32 %v2792_v63, %v377_v61  ;;  %v429_v35 = vadd.f32 %v428_v23, %v427_v16 }
  0xc5   : > { %v457_v36 = vsel %vm422_vm1, %v448_v17, 0.0  ;;  %v459_v46 = vsel %vm422_vm1, %v449_v37, 0.0 }
  0xc6   : > { %v430_v34 = vsel %vm422_vm1, %v418_v12, 0.0  ;;  %v458_v45 = vadd.f32 %v457_v36, %v456_v39  ;;  %v413_v39 = vld [vmem:[%s3652_s2] sm:$0x1] }
  0xc7   : > { %v431_v42 = vadd.f32 %v430_v34, %v429_v35 }
  0xc8   : > { %v460_v60 = vadd.f32 %v459_v46, %v458_v45 }
  0xc9   : > { %v395_v18 = vpop.xlane.xlu1 %394 }
  0xca   : > { %v359_v25 = vpop.xlane.xlu0 %358  ;;  %v362_v28 = vpop.xlane.xlu2 %361  ;;  %v450_v43 = vmul.f32 %v2792_v63, %v395_v18 }
  0xcb   : > { %v378_v30 = vmul.f32 %v372_v41, %v359_v25  ;;  %v379_v32 = vmul.f32 %v372_v41, %v362_v28 }
  0xcc   : > { %v461_v57 = vsel %vm422_vm1, %v450_v43, 0.0 }
  0xcd   : > { %v419_v38 = vmul.f32 %v2807_v24, %v378_v30  ;;  %v420_v40 = vmul.f32 %v2813_v31, %v379_v32  ;;  %v462_v8 = vadd.f32 %v461_v57, %v460_v60 }
  0xcf   : > { %v432_v44 = vsel %vm422_vm1, %v419_v38, 0.0  ;;  %v434_v53 = vsel %vm422_vm1, %v420_v40, 0.0 }
  0xd0   : > { %v433_v49 = vadd.f32 %v432_v44, %v431_v42 }
  0xd1   : > { %v365_v51 = vpop.xlane.xlu1 %364 }
  0xd2   : > { %v380_v54 = vmul.f32 %v372_v41, %v365_v51  ;;  %v398_v55 = vpop.xlane.xlu0 %397  ;;  %v401_v56 = vpop.xlane.xlu2 %400  ;;  %v435_v62 = vadd.f32 %v434_v53, %v433_v49  ;;  %v2140_v53 = vld [vmem:[%s3654_s4 + $0x1] ss:$8 sm:$0x3] }
  0xd3   : > { %v451_v59 = vmul.f32 %v2807_v24, %v398_v55  ;;  %v452_v7 = vmul.f32 %v2813_v31, %v401_v56  ;;  %1169 = vrot.lane.b32.xlu0 %v2140_v53, %s2503_s21  ;;  %v548_v53 = vld [vmem:[%s3653_s3 + $0x8] sm:$0xff]  ;;  %s2514_s21 = smov 64  }
  0xd4   : > { %v421_v61 = vmul.f32 %v2827_v50, %v380_v54  ;;  %v2184_v54 = vld [vmem:[%s3654_s4 + $0x4] ss:$8 sm:$0x3] }
  0xd5   : > { %v463_v3 = vsel %vm422_vm1, %v451_v59, 0.0  ;;  %v465_v16 = vsel %vm422_vm1, %v452_v7, 0.0  ;;  %1597 = vrot.lane.b32.xlu2 %v2184_v54, %s2502_s17 }
  0xd6   : > { %v436_v11 = vsel %vm422_vm1, %v421_v61, 0.0  ;;  %v464_v13 = vadd.f32 %v463_v3, %v462_v8 }
  0xd7   : > { %v437_v12 = vadd.f32 %v436_v11, %v435_v62 }
  0xd8   : > { %v466_v25 = vadd.f32 %v465_v16, %v464_v13 }
  0xd9   : > { %v438_v41 = vrot.slane %v437_v12, 4 }
  0xda   : > { %v404_v17 = vpop.xlane.xlu0 %403 }
  0xdb   : > { %v439_v18 = vadd.f32 %v438_v41, %v437_v12  ;;  %v453_v23 = vmul.f32 %v2827_v50, %v404_v17 }
  0xdd   : > { %v440_v28 = vrot.slane %v439_v18, 2  ;;  %v467_v29 = vsel %vm422_vm1, %v453_v23, 0.0 }
  0xde   : > { %v468_v30 = vadd.f32 %v467_v29, %v466_v25  ;;  %v547_v29 = vld [vmem:[%s3653_s3] sm:$0xff] }
  0xdf   : > { %v441_v32 = vadd.f32 %v440_v28, %v439_v18 }
  0xe0   : > { %v469_v33 = vrot.slane %v468_v30, 4 }
  0xe1   : > { %v442_v35 = vrot.slane %v441_v32, 1 }
  0xe2   : > { %v470_v34 = vadd.f32 %v469_v33, %v468_v30  ;;  %v2505_v30 = vmov 0  }
  0xe3   : > { %v443_v38 = vadd.f32 %v442_v35, %v441_v32  ;;  %2317 = vset.pattern.permute.xlu0 %v2505_v30  ;;  %2319 = vset.pattern.permute.xlu1 %v2505_v30  ;;  %v549_v35 = vld [vmem:[%s3653_s3 + $0x10] sm:$0xff] }
  0xe4   : > { %v471_v36 = vrot.slane %v470_v34, 2  ;;  %2318 = vset.pattern.permute.xlu2 %v2505_v30 }
  0xe5   : > { %v444_v42 = vadd.f32 %v443_v38, %v413_v39 }
  0xe6   : > { %v472_v37 = vadd.f32 %v471_v36, %v470_v34 }
  0xe7   : > { %v445_v45 = vmax.f32 %v444_v42, 0.0  ;;  %v552_v42 = vld [vmem:[%s3653_s3 + $0x28] sm:$0xff] }
  0xe8   : > { %v473_v40 = vrot.slane %v472_v37, 1 }
  0xe9   : > { %v2848_v55 = vpop.permute.xlu1 %1315 }
  0xea   : > { %v474_v43 = vadd.f32 %v473_v40, %v472_v37 }
  0xec   : > { %v475_v44 = vadd.f32 %v474_v43, %v413_v39 }
  0xee   : > { %v476_v46 = vmax.f32 %v475_v44, 0.0 }
  0xf0   : > { %v477_v49 = vadd.f32 %v476_v46, %v445_v45 }
  0xf2   : > { %v478_v51 = vperm.slane %v477_v49, 0 }
  0xf4   : > { %480 = vrot.lane.b32.xlu1 %v478_v51, %s2502_s17  ;;  %v550_v51 = vld [vmem:[%s3653_s3 + $0x18] sm:$0xff]  ;;  %s2129_s17 = sld [smem:[#allocation7 + $0x16]] }
 0x145   : > { %v2870_v8 = vpop.permute.xlu0 %1169 }
 0x166   : > { %v481_v56 = vpop.permute.xlu1 %480 }
 0x167   : > { %v486_v57 = vmul.f32 %v481_v56, %v2785_v58  ;;  %v484_v59 = vmul.f32 %v481_v56, %v2772_v48  ;;  %v483_v60 = vmul.f32 %v481_v56, %v2767_v47  ;;  %v489_v61 = vmul.f32 %v481_v56, %v2813_v31  ;;  %v2866_v58 = vpop.permute.xlu2 %1597 }
 0x168   : > { %v487_v62 = vmul.f32 %v481_v56, %v2792_v63  ;;  %v485_v3 = vmul.f32 %v481_v56, %v2779_v52  ;;  %v490_v47 = vmul.f32 %v481_v56, %v2827_v50  ;;  %v488_v48 = vmul.f32 %v481_v56, %v2807_v24 }
 0x169   : > { %505 = vrot.lane.b32.xlu1 %v486_v57, %s2504_s23  ;;  %501 = vrot.lane.b32.xlu0 %v484_v59, %s2504_s23 }
 0x16a   : > { %499 = vrot.lane.b32.xlu2 %v483_v60, %s2504_s23 }
 0x171   : > { %511 = vrot.lane.b32.xlu1 %v489_v61, %s2504_s23  ;;  %507 = vrot.lane.b32.xlu0 %v487_v62, %s2504_s23 }
 0x172   : > { %503 = vrot.lane.b32.xlu2 %v485_v3, %s2504_s23 }
 0x179   : > { %513 = vrot.lane.b32.xlu0 %v490_v47, %s2504_s23 }
 0x17a   : > { %509 = vrot.lane.b32.xlu2 %v488_v48, %s2504_s23 }
 0x1c4   : > { %v500_v31 = vpop.permute.xlu2 %499 }
 0x1c5   : > { %v523_v63 = vsel %vm422_vm1, %v500_v31, 0.0 }
 0x1c6   : > { %524 = vadd.xlane.f32.xlu2 %v523_v63 }
 0x1cc   : > { %v504_v52 = vpop.permute.xlu2 %503 }
 0x1cd   : > { %v529_v7 = vsel %vm422_vm1, %v504_v52, 0.0 }
 0x1ce   : > { %530 = vadd.xlane.f32.xlu0 %v529_v7 }
 0x1d4   : > { %v510_v11 = vpop.permute.xlu2 %509 }
 0x1d5   : > { %v538_v50 = vsel %vm422_vm1, %v510_v11, 0.0 }
 0x1d6   : > { %539 = vadd.xlane.f32.xlu0 %v538_v50 }
 0x1db   : > { %v506_v24 = vpop.permute.xlu1 %505  ;;  %v502_v12 = vpop.permute.xlu0 %501 }
 0x1dc   : > { %v532_v13 = vsel %vm422_vm1, %v506_v24, 0.0  ;;  %v526_v41 = vsel %vm422_vm1, %v502_v12, 0.0  ;;  %v553_v24 = vld [vmem:[%s3653_s3 + $0x30] sm:$0xff]  ;;  %v551_v12 = vld [vmem:[%s3653_s3 + $0x20] sm:$0xff] }
 0x1dd   : > { %533 = vadd.xlane.f32.xlu2 %v532_v13  ;;  %527 = vadd.xlane.f32.xlu1 %v526_v41 }
 0x1e3   : > { %v512_v16 = vpop.permute.xlu1 %511  ;;  %v508_v17 = vpop.permute.xlu0 %507 }
 0x1e4   : > { %v541_v18 = vsel %vm422_vm1, %v512_v16, 0.0  ;;  %v535_v23 = vsel %vm422_vm1, %v508_v17, 0.0 }
 0x1e5   : > { %542 = vadd.xlane.f32.xlu2 %v541_v18  ;;  %536 = vadd.xlane.f32.xlu1 %v535_v23 }
 0x1eb   : > { %v514_v25 = vpop.permute.xlu0 %513 }
 0x1ec   : > { %v544_v28 = vsel %vm422_vm1, %v514_v25, 0.0 }
 0x1ed   : > { %545 = vadd.xlane.f32.xlu1 %v544_v28 }
 0x239   : > { %v525_v32 = vpop.xlane.xlu2 %524 }
 0x23a   : > { %v555_v33 = vadd.f32 %v547_v29, %v525_v32 }
 0x23c   : > { %v2105_v34 = vmul.f32 -1.442695, %v555_v33 }
 0x23e   : > { %2322 = vpow2.f32 %v2105_v34 }
 0x241   : > { %v531_v36 = vpop.xlane.xlu0 %530 }
 0x242   : > { %v557_v37 = vadd.f32 %v549_v35, %v531_v36 }
 0x244   : > { %v2323_v38 = vpop.eup %2322  ;;  %v2107_v39 = vmul.f32 -1.442695, %v557_v37 }
 0x245   : > { %v587_v40 = vadd.f32 1.0, %v2323_v38 }
 0x246   : > { %2324 = vpow2.f32 %v2107_v39 }
 0x247   : > { %2326 = vrcp.f32 %v587_v40  ;;  %v606_v3 = vand.u32 2147483648, %v587_v40  ;;  %v604_v48 = vand.u32 2147483647, %v587_v40  ;;  %vm600_vm3 = vweird.f32 %v587_v40 }
 0x249   : > { %v540_v43 = vpop.xlane.xlu0 %539  ;;  %v607_v11 = vor.u32 1.1754944e-38, %v606_v3  ;;  %vm605_vm5 = vcmp.eq.f32.partialorder %v604_v48, 8.507059e+37 }
 0x24a   : > { %v560_v45 = vadd.f32 %v552_v42, %v540_v43 }
 0x24c   : > { %v2325_v44 = vpop.eup %2324  ;;  %v2110_v56 = vmul.f32 -1.442695, %v560_v45 }
 0x24d   : > { %v2327_v46 = vpop.eup %2326  ;;  %v589_v49 = vadd.f32 1.0, %v2325_v44  ;;  %v554_v44 = vld [vmem:[%s3653_s3 + $0x38] sm:$0xff] }
 0x24e   : > { %v596_v54 = vmul.f32 %v2327_v46, %v587_v40  ;;  %vm601_vm2 = vweird.f32 %v2327_v46 }
 0x24f   : > { %2328 = vrcp.f32 %v589_v49  ;;  %vm602_vm4 = vmor %vm600_vm3, %vm601_vm2  ;;  %v636_v28 = vand.u32 2147483648, %v589_v49  ;;  %v634_v32 = vand.u32 2147483647, %v589_v49  ;;  %vm630_vm7 = vweird.f32 %v589_v49 }
 0x250   : > { %v534_v57 = vpop.xlane.xlu2 %533  ;;  %v528_v59 = vpop.xlane.xlu1 %527  ;;  %v597_v60 = vsub.f32 1.0, %v596_v54  ;;  %2330 = vpow2.f32 %v2110_v56 }
 0x251   : > { %v558_v61 = vadd.f32 %v550_v51, %v534_v57  ;;  %v556_v62 = vadd.f32 %v548_v53, %v528_v59  ;;  %v637_v40 = vor.u32 1.1754944e-38, %v636_v28  ;;  %vm635_vm9 = vcmp.eq.f32.partialorder %v634_v32, 8.507059e+37 }
 0x252   : > { %v598_v47 = vmul.f32 %v2327_v46, %v597_v60 }
 0x253   : > { %v2108_v31 = vmul.f32 -1.442695, %v558_v61  ;;  %v2106_v63 = vmul.f32 -1.442695, %v556_v62 }
 0x254   : > { %v599_v52 = vadd.f32 %v2327_v46, %v598_v47 }
 0x255   : > { %v2329_v7 = vpop.eup %2328  ;;  %2332 = vpow2.f32 %v2108_v31 }
 0x256   : > { %2334 = vpow2.f32 %v2106_v63  ;;  %v603_v50 = vsel %vm602_vm4, %v2327_v46, %v599_v52  ;;  %v626_v13 = vmul.f32 %v2329_v7, %v589_v49  ;;  %v2331_v29 = vpop.eup %2330  ;;  %vm631_vm6 = vweird.f32 %v2329_v7 }
 0x257   : > { %v608_v41 = vsel %vm605_vm5, %v607_v11, %v603_v50  ;;  %vm632_vm8 = vmor %vm630_vm7, %vm631_vm6  ;;  %v2901_v42 = vadd.f32 1.0, %v2331_v29 }
 0x258   : > { %717 = vperm.xlu0 %2317, %v608_v41   ;;  %v543_v16 = vpop.xlane.xlu2 %542  ;;  %v537_v17 = vpop.xlane.xlu1 %536  ;;  %v627_v18 = vsub.f32 1.0, %v626_v13 }
 0x259   : > { %v561_v23 = vadd.f32 %v553_v24, %v543_v16  ;;  %v559_v25 = vadd.f32 %v551_v12, %v537_v17 }
 0x25a   : > { %v628_v30 = vmul.f32 %v2329_v7, %v627_v18 }
 0x25b   : > { %v2333_v33 = vpop.eup %2332  ;;  %v2111_v34 = vmul.f32 -1.442695, %v561_v23  ;;  %v2109_v37 = vmul.f32 -1.442695, %v559_v25 }
 0x25c   : > { %v2335_v35 = vpop.eup %2334  ;;  %v2899_v36 = vadd.f32 1.0, %v2333_v33  ;;  %v629_v38 = vadd.f32 %v2329_v7, %v628_v30 }
 0x25d   : > { %v588_v39 = vadd.f32 1.0, %v2335_v35  ;;  %2336 = vpow2.f32 %v2111_v34 }
 0x25e   : > { %2338 = vrcp.f32 %v2899_v36  ;;  %v633_v43 = vsel %vm632_vm8, %v2329_v7, %v629_v38  ;;  %v651_v30 = vand.u32 2147483648, %v2899_v36  ;;  %vm645_vm15 = vweird.f32 %v2899_v36 }
 0x25f   : > { %2340 = vrcp.f32 %v588_v39  ;;  %v638_v45 = vsel %vm635_vm9, %v637_v40, %v633_v43  ;;  %v621_v31 = vand.u32 2147483648, %v588_v39  ;;  %v619_v52 = vand.u32 2147483647, %v588_v39 }
 0x260   : > { %2342 = vpow2.f32 %v2109_v37  ;;  %727 = vperm.xlu1 %2319, %v638_v45   ;;  %v546_v46 = vpop.xlane.xlu1 %545  ;;  %vm615_vm11 = vweird.f32 %v588_v39  ;;  %v649_v32 = vand.u32 2147483647, %v2899_v36  ;;  %v652_v45 = vor.u32 1.1754944e-38, %v651_v30 }
 0x261   : > { %v562_v49 = vadd.f32 %v554_v44, %v546_v46  ;;  %2344 = vrcp.f32 %v2901_v42  ;;  %v622_v41 = vor.u32 1.1754944e-38, %v621_v31  ;;  %vm620_vm13 = vcmp.eq.f32.partialorder %v619_v52, 8.507059e+37 }
 0x262   : > { %vm650_vm3 = vcmp.eq.f32.partialorder %v649_v32, 8.507059e+37 }
 0x263   : > { %v2337_v51 = vpop.eup %2336  ;;  %v2112_v53 = vmul.f32 -1.442695, %v562_v49 }
 0x264   : > { %v2339_v54 = vpop.eup %2338  ;;  %v2908_v56 = vadd.f32 1.0, %v2337_v51 }
 0x265   : > { %v2341_v57 = vpop.eup %2340  ;;  %2346 = vpow2.f32 %v2112_v53  ;;  %v641_v59 = vmul.f32 %v2339_v54, %v2899_v36  ;;  %vm646_vm14 = vweird.f32 %v2339_v54  ;;  %v681_v36 = vand.u32 2147483648, %v2901_v42 }
 0x266   : > { %v2343_v60 = vpop.eup %2342  ;;  %2348 = vrcp.f32 %v2908_v56  ;;  %v611_v61 = vmul.f32 %v2341_v57, %v588_v39  ;;  %vm616_vm10 = vweird.f32 %v2341_v57  ;;  %vm2926_vm0 = vmor %vm645_vm15, %vm646_vm14  ;;  %vm690_vm14 = vweird.f32 %v2908_v56 }
 0x267   : > { %v591_v62 = vadd.f32 1.0, %v2343_v60  ;;  %v2912_v3 = vpop.eup %2344  ;;  %v642_v48 = vsub.f32 1.0, %v641_v59  ;;  %vm617_vm12 = vmor %vm615_vm11, %vm616_vm10  ;;  %vm675_vm10 = vweird.f32 %v2901_v42 }
 0x268   : > { %v612_v47 = vsub.f32 1.0, %v611_v61  ;;  %v671_v11 = vmul.f32 %v2912_v3, %v2901_v42  ;;  %vm676_vm6 = vweird.f32 %v2912_v3 }
 0x269   : > { %2350 = vrcp.f32 %v591_v62  ;;  %v643_v13 = vmul.f32 %v2339_v54, %v642_v48  ;;  %v666_v37 = vand.u32 2147483648, %v591_v62  ;;  %v664_v44 = vand.u32 2147483647, %v591_v62 }
 0x26a   : > { %v613_v63 = vmul.f32 %v2341_v57, %v612_v47  ;;  %v672_v25 = vsub.f32 1.0, %v671_v11  ;;  %vm660_vm4 = vweird.f32 %v591_v62 }
 0x26b   : > { %v2347_v7 = vpop.eup %2346  ;;  %v644_v28 = vadd.f32 %v2339_v54, %v643_v13  ;;  %vm665_vm7 = vcmp.eq.f32.partialorder %v664_v44, 8.507059e+37  ;;  %v694_v13 = vand.u32 2147483647, %v2908_v56 }
 0x26c   : > { %v2916_v50 = vpop.eup %2348  ;;  %v2918_v24 = vadd.f32 1.0, %v2347_v7  ;;  %v614_v12 = vadd.f32 %v2341_v57, %v613_v63  ;;  %v673_v38 = vmul.f32 %v2912_v3, %v672_v25  ;;  %v679_v63 = vand.u32 2147483647, %v2901_v42 }
 0x26d   : > { %v686_v17 = vmul.f32 %v2916_v50, %v2908_v56  ;;  %v648_v40 = vsel %vm2926_vm0, %v2339_v54, %v644_v28  ;;  %vm691_vm9 = vweird.f32 %v2916_v50  ;;  %v696_v7 = vand.u32 2147483648, %v2908_v56 }
 0x26e   : > { %2352 = vrcp.f32 %v2918_v24  ;;  %v618_v16 = vsel %vm617_vm12, %v2341_v57, %v614_v12  ;;  %v653_v53 = vsel %vm650_vm3, %v652_v45, %v648_v40  ;;  %v667_v57 = vor.u32 1.1754944e-38, %v666_v37  ;;  %vm2948_vm12 = vmor %vm675_vm10, %vm676_vm6 }
 0x26f   : > { %v2351_v18 = vpop.eup %2350  ;;  %v623_v23 = vsel %vm620_vm13, %v622_v41, %v618_v16  ;;  %v687_v34 = vsub.f32 1.0, %v686_v17  ;;  %v711_v60 = vand.u32 2147483648, %v2918_v24  ;;  %v674_v61 = vadd.f32 %v2912_v3, %v673_v38  ;;  %vm692_vm0 = vmor %vm690_vm14, %vm691_vm9 }
 0x270   : > { %722 = vperm.xlu2 %2318, %v623_v23   ;;  %v656_v29 = vmul.f32 %v2351_v18, %v591_v62  ;;  %vm661_vm2 = vweird.f32 %v2351_v18  ;;  %v709_v62 = vand.u32 2147483647, %v2918_v24  ;;  %vm705_vm11 = vweird.f32 %v2918_v24 }
 0x271   : > { %v688_v51 = vmul.f32 %v2916_v50, %v687_v34  ;;  %vm662_vm5 = vmor %vm660_vm4, %vm661_vm2  ;;  %v712_v12 = vor.u32 1.1754944e-38, %v711_v60  ;;  %v678_v42 = vsel %vm2948_vm12, %v2912_v3, %v674_v61  ;;  %vm680_vm2 = vcmp.eq.f32.partialorder %v679_v63, 8.507059e+37 }
 0x272   : > { %v657_v33 = vsub.f32 1.0, %v656_v29  ;;  %vm710_vm15 = vcmp.eq.f32.partialorder %v709_v62, 8.507059e+37  ;;  %vm695_vm3 = vcmp.eq.f32.partialorder %v694_v13, 8.507059e+37  ;;  %v2506_v38 = vmov 64.0  }
 0x273   : > { %v689_v31 = vadd.f32 %v2916_v50, %v688_v51  ;;  %2354 = vrcp.f32 %v2506_v38  ;;  %vm803_vm4 = vcmask 1041408   ;;  %vm806_vm6 = vcmask 832516  }
 0x274   : > { %v2353_v39 = vpop.eup %2352  ;;  %v658_v43 = vmul.f32 %v2351_v18, %v657_v33  ;;  %vm838_vm10 = vcmask 1040384  }
 0x275   : > { %v701_v46 = vmul.f32 %v2353_v39, %v2918_v24  ;;  %vm706_vm8 = vweird.f32 %v2353_v39  ;;  %v682_v24 = vor.u32 1.1754944e-38, %v681_v36  ;;  %v693_v17 = vsel %vm692_vm0, %v2916_v50, %v689_v31 }
 0x276   : > { %v659_v49 = vadd.f32 %v2351_v18, %v658_v43  ;;  %vm707_vm13 = vmor %vm705_vm11, %vm706_vm8  ;;  %vm921_vm0 = vcmask 785408  }
 0x277   : > { %v702_v59 = vsub.f32 1.0, %v701_v46  ;;  %v683_v23 = vsel %vm680_vm2, %v682_v24, %v678_v42  ;;  %v2507_v46 = vmov 0.0   ;;  %vm932_vm2 = vcmask 654336  }
 0x278   : > { %732 = vperm.xlu2 %2318, %v653_v53   ;;  %v663_v54 = vsel %vm662_vm5, %v2351_v18, %v659_v49  ;;  %v697_v18 = vor.u32 1.1754944e-38, %v696_v7  ;;  %vm804_vm5 = vcmask 1043458  }
 0x279   : > { %v668_v47 = vsel %vm665_vm7, %v667_v57, %v663_v54  ;;  %v703_v48 = vmul.f32 %v2353_v39, %v702_v59  ;;  %vm805_vm7 = vmor %vm804_vm5, %vm803_vm4  ;;  %v2355_v36 = vpop.eup %2354  ;;  %vm954_vm4 = vcmask 392192   ;;  %vm965_vm5 = vcmask 261120  }
 0x27a   : > { %737 = vperm.xlu1 %2319, %v668_v47   ;;  %v698_v25 = vsel %vm695_vm3, %v697_v18, %v693_v17  ;;  %vm807_vm8 = vmor %vm806_vm6, %vm805_vm7  ;;  %v878_v61 = vmul.f32 64.0, %v2355_v36  ;;  %vm882_vm9 = vweird.f32 %v2355_v36  ;;  %vm943_vm3 = vcmask 523264  }
 0x27b   : > { %v704_v52 = vadd.f32 %v2353_v39, %v703_v48  ;;  %808 = vst.msk [vmem:[#allocation2] sm:$0x3f] %vm807_vm8, %v2507_v46  ;;  %vm1172_vm6 = vcmask 7168   ;;  %vm1318_vm7 = vcmask 15360   ;;  %vm1891_vm8 = vcmask 48128  }
 0x27d   : > { %v708_v41 = vsel %vm707_vm13, %v2353_v39, %v704_v52  ;;  %vm843_vm13 = vcmask 416768  }
 0x27e   : > { %v713_v16 = vsel %vm710_vm15, %v712_v12, %v708_v41  ;;  %v879_v41 = vsub.f32 1.0, %v878_v61  ;;  %vm910_vm15 = vcmask 916480  }
 0x27f   : > { %752 = vperm.xlu0 %2317, %v713_v16  }
 0x280   : > { %742 = vperm.xlu2 %2318, %v683_v23  }
 0x282   : > { %747 = vperm.xlu1 %2319, %v698_v25  }
 0x2ca   : > { %v723_v56 = vpop.permute.xlu2 %722  ;;  %v718_v28 = vpop.permute.xlu0 %717 }
 0x2cb   : > { %v2959_v3 = vmul.f32 %v723_v56, %v2699_v5  ;;  %v2962_v32 = vmul.f32 %v723_v56, %v2702_v6  ;;  %v2965_v50 = vmul.f32 %v718_v28, %v2691_v2  ;;  %v2968_v33 = vmul.f32 %v718_v28, %v2696_v4 }
 0x2cc   : > { %v880_v56 = vmul.f32 %v2355_v36, %v879_v41  ;;  %v915_v41 = vstv %s2114_s10  ;;  %s2130_s10 = sld [smem:[#allocation7 + $0x1d]] }
 0x2cd   : > { %v851_v37 = vadd.f32 %v2959_v3, %v2965_v50  ;;  %v864_v5 = vadd.f32 %v2962_v32, %v2968_v33 }
 0x2d2   : > { %v733_v29 = vpop.permute.xlu2 %732  ;;  %v728_v30 = vpop.permute.xlu1 %727 }
 0x2d3   : > { %v2971_v34 = vmul.f32 %v728_v30, %v2685_v0  ;;  %v2974_v35 = vmul.f32 %v728_v30, %v2688_v1  ;;  %v2983_v4 = vmul.f32 %v733_v29, %v2709_v9  ;;  %v2986_v0 = vmul.f32 %v733_v29, %v2712_v10 }
 0x2d5   : > { %v852_v6 = vadd.f32 %v851_v37, %v2971_v34  ;;  %v865_v2 = vadd.f32 %v864_v5, %v2974_v35  ;;  %v810_v51 = vmax.f32 %v2959_v3, %v2983_v4  ;;  %v823_v53 = vmax.f32 %v2962_v32, %v2986_v0 }
 0x2d6   : > { %v809_v57 = vmax.f32 %v2965_v50, %v2971_v34  ;;  %v822_v59 = vmax.f32 %v2968_v33, %v2974_v35 }
 0x2d7   : > { %v853_v44 = vadd.f32 %v852_v6, %v2983_v4  ;;  %v866_v9 = vadd.f32 %v865_v2, %v2986_v0 }
 0x2da   : > { %v743_v1 = vpop.permute.xlu2 %742 }
 0x2db   : > { %v2997_v10 = vmul.f32 %v743_v1, %v2733_v19  ;;  %v3000_v45 = vmul.f32 %v743_v1, %v2736_v20  ;;  %v881_v1 = vadd.f32 %v2355_v36, %v880_v56 }
 0x2dd   : > { %v812_v54 = vmax.f32 %v810_v51, %v2997_v10  ;;  %v825_v60 = vmax.f32 %v823_v53, %v3000_v45  ;;  %v883_v53 = vsel %vm882_vm9, %v2355_v36, %v881_v1  ;;  %vm1180_vm9 = vcmask 1039360  }
 0x2ec   : > { %v738_v39 = vpop.permute.xlu1 %737 }
 0x2ed   : > { %v2989_v40 = vmul.f32 %v738_v39, %v2721_v14  ;;  %v2992_v43 = vmul.f32 %v738_v39, %v2724_v15 }
 0x2ef   : > { %v854_v14 = vadd.f32 %v853_v44, %v2989_v40  ;;  %v867_v15 = vadd.f32 %v866_v9, %v2992_v43  ;;  %v811_v48 = vmax.f32 %v809_v57, %v2989_v40 }
 0x2f1   : > { %v753_v49 = vpop.permute.xlu0 %752  ;;  %v855_v62 = vadd.f32 %v854_v14, %v2997_v10 }
 0x2f2   : > { %v3009_v19 = vmul.f32 %v753_v49, %v2751_v26  ;;  %v3012_v20 = vmul.f32 %v753_v49, %v2754_v27  ;;  %v824_v26 = vmax.f32 %v822_v59, %v2992_v43  ;;  %v868_v27 = vadd.f32 %v867_v15, %v3000_v45 }
 0x2f4   : > { %v748_v47 = vpop.permute.xlu1 %747  ;;  %v814_v52 = vmax.f32 %v812_v54, %v3009_v19  ;;  %v827_v7 = vmax.f32 %v825_v60, %v3012_v20 }
 0x2f5   : > { %v3025_v31 = vmul.f32 %v748_v47, %v2739_v21  ;;  %v3028_v63 = vmul.f32 %v748_v47, %v2742_v22 }
 0x2f7   : > { %v813_v11 = vmax.f32 %v811_v48, %v3025_v31  ;;  %v826_v12 = vmax.f32 %v824_v26, %v3028_v63  ;;  %v856_v13 = vadd.f32 %v855_v62, %v3025_v31  ;;  %v869_v42 = vadd.f32 %v868_v27, %v3028_v63 }
 0x2f9   : > { %v815_v24 = vmax.f32 %v813_v11, %v814_v52  ;;  %v828_v16 = vmax.f32 %v826_v12, %v827_v7  ;;  %v857_v21 = vadd.f32 %v856_v13, %v3009_v19  ;;  %v870_v22 = vadd.f32 %v869_v42, %v3012_v20 }
 0x2fa   : > { %v846_v52 = vlaneseq  ;;  %v926_v42 = vstv %s2115_s8  ;;  %s2131_s8 = sld [smem:[#allocation7 + $0x24]] }
 0x2fb   : > { %v816_v17 = vrot.slane %v815_v24, 4  ;;  %v829_v18 = vrot.slane %v828_v16, 4  ;;  %v858_v23 = vrot.slane %v857_v21, 4  ;;  %v871_v25 = vrot.slane %v870_v22, 4 }
 0x2fc   : > { %vm3038_vm11 = vcmp.ge.s32.totalorder %v846_v52, 51  ;;  %vm3042_vm12 = vcmp.lt.s32.totalorder %v846_v52, 307 }
 0x2fd   : > { %v817_v28 = vmax.f32 %v815_v24, %v816_v17  ;;  %v830_v29 = vmax.f32 %v828_v16, %v829_v18  ;;  %v859_v30 = vadd.f32 %v858_v23, %v857_v21  ;;  %v872_v37 = vadd.f32 %v871_v25, %v870_v22  ;;  %vm849_vm14 = vmand %vm3038_vm11, %vm3042_vm12 }
 0x2fe   : > { %v904_v24 = vstv %s2113_s29  ;;  %v959_v18 = vstv %s2118_s14  ;;  %v948_v23 = vstv %s2117_s16  ;;  %v937_v25 = vstv %s2116_s6  ;;  %s2142_s29 = sld [smem:[#allocation7 + $0x9]] }
 0x2ff   : > { %v818_v5 = vrot.slane %v817_v28, 2  ;;  %v831_v6 = vrot.slane %v830_v29, 2  ;;  %v860_v2 = vrot.slane %v859_v30, 2  ;;  %v873_v38 = vrot.slane %v872_v37, 2  ;;  %s2144_s14 = sld [smem:[#allocation7 + $0x17]] }
 0x300   : > { %s2143_s16 = sld [smem:[#allocation7 + $0x10]]  ;;  %vm1462_vm11 = vcmask 1022976   ;;  %vm1607_vm12 = vcmask 1014784  }
 0x301   : > { %v819_v39 = vmax.f32 %v817_v28, %v818_v5  ;;  %v832_v44 = vmax.f32 %v830_v29, %v831_v6  ;;  %v861_v9 = vadd.f32 %v860_v2, %v859_v30  ;;  %v874_v46 = vadd.f32 %v873_v38, %v872_v37  ;;  %s2145_s6 = sld [smem:[#allocation7 + $0x1e]] }
 0x302   : > { %v1063_v30 = vstv %s2129_s17  ;;  %v1053_v37 = vstv %s2128_s19  ;;  %v1043_v6 = vstv %s2127_s20  ;;  %s2147_s17 = sld [smem:[#allocation7 + $0x2c]] }
 0x303   : > { %v820_v14 = vrot.slane %v819_v39, 1  ;;  %v833_v15 = vrot.slane %v832_v44, 1  ;;  %v862_v49 = vrot.slane %v861_v9, 1  ;;  %v875_v51 = vrot.slane %v874_v46, 1  ;;  %s2146_s19 = sld [smem:[#allocation7 + $0x25]] }
 0x304   : > { %s2158_s20 = sld [smem:[#allocation7 + $0x11]] }
 0x305   : > { %v834_v57 = vmax.f32 %v832_v44, %v833_v15  ;;  %v863_v59 = vadd.f32 %v862_v49, %v861_v9  ;;  %v876_v54 = vadd.f32 %v875_v51, %v874_v46  ;;  %v821_v60 = vmax.f32 %v819_v39, %v820_v14 }
 0x306   : > { %v1083_v46 = vstv %s2131_s8  ;;  %v1073_v14 = vstv %s2130_s10  ;;  %s2159_s8 = sld [smem:[#allocation7 + $0x18]] }
 0x307   : > { %v837_v61 = vrot.slane %v834_v57, 7  ;;  %v885_v47 = vmul.f32 %v883_v53, %v876_v54  ;;  %v884_v26 = vmul.f32 %v883_v53, %v863_v59  ;;  %v1189_v53 = vstv %s2142_s29  ;;  %s2171_s10 = sld [smem:[#allocation7 + $0xb]] }
 0x308   : > { %v1209_v57 = vstv %s2144_s14  ;;  %v1199_v59 = vstv %s2143_s16  ;;  %s2160_s29 = sld [smem:[#allocation7 + $0x1f]] }
 0x309   : > { %v839_v48 = vsel %vm838_vm10, %v821_v60, %v837_v61  ;;  %v888_v62 = vrot.slane %v885_v47, 7  ;;  %v1219_v47 = vstv %s2145_s6  ;;  %s2172_s14 = sld [smem:[#allocation7 + $0x12]] }
 0x30a   : > { %840 = vrot.lane.b32.xlu2 %v839_v48, %s2508_s5  ;;  %v1239_v48 = vstv %s2147_s17  ;;  %v1345_v7 = vstv %s2158_s20  ;;  %s2173_s16 = sld [smem:[#allocation7 + $0x19]] }
 0x30b   : > { %v889_v27 = vsel %vm838_vm10, %v884_v26, %v888_v62  ;;  %v1229_v26 = vstv %s2146_s19  ;;  %s2186_s6 = sld [smem:[#allocation7 + $0xc]]  ;;  %vm1326_vm10 = vcmask 1031168  }
 0x30c   : > { %890 = vrot.lane.b32.xlu1 %v889_v27, %s2508_s5  ;;  %s2132_s5 = sld [smem:[#allocation7 + $0x2b]] }
 0x30d   : > { %s2187_s17 = sld [smem:[#allocation7 + $0x13]] }
 0x30e   : > { %s2174_s19 = sld [smem:[#allocation7 + $0x20]] }
 0x30f   : > { %s2201_s20 = sld [smem:[#allocation7 + $0xd]] }
 0x312   : > { %v1093_v9 = vstv %s2132_s5  ;;  %s2157_s5 = sld [smem:[#allocation7 + $0xa]] }
 0x318   : > { %v1335_v36 = vstv %s2157_s5  ;;  %s2188_s5 = sld [smem:[#allocation7 + $0x1a]] }
 0x364   : > { %v841_v11 = vpop.permute.xlu2 %840 }
 0x365   : > { %v842_v12 = vrot.slane %v841_v11, 7 }
 0x367   : > { %v844_v13 = vsel %vm843_vm13, %v842_v12, %v841_v11  ;;  %v1355_v11 = vstv %s2159_s8  ;;  %s2161_s8 = sld [smem:[#allocation7 + $0x26]] }
 0x368   : > { %850 = vst.msk [vmem:[#allocation2] ss:$2 sm:$0x7] %vm849_vm14, %v844_v13 }
 0x36f   : > { %v3056_v16 = vld [vmem:[#allocation2] ss:$2 sm:$0x7] }
 0x370   : > { %v927_v21 = vmul.f32 %v926_v42, %v3056_v16  ;;  %v916_v22 = vmul.f32 %v915_v41, %v3056_v16  ;;  %v905_v17 = vmul.f32 %v904_v24, %v3056_v16  ;;  %v960_v56 = vmul.f32 %v959_v18, %v3056_v16 }
 0x371   : > { %v949_v28 = vmul.f32 %v948_v23, %v3056_v16  ;;  %v938_v29 = vmul.f32 %v937_v25, %v3056_v16  ;;  %v1064_v38 = vmul.f32 %v1063_v30, %v3056_v16  ;;  %v1054_v1 = vmul.f32 %v1053_v37, %v3056_v16 }
 0x372   : > { %929 = vrot.lane.b32.xlu1 %v927_v21, %s2509_s12  ;;  %918 = vrot.lane.b32.xlu2 %v916_v22, %s2510_s15  ;;  %v1044_v44 = vmul.f32 %v1043_v6, %v3056_v16  ;;  %v1094_v15 = vmul.f32 %v1093_v9, %v3056_v16  ;;  %v1084_v49 = vmul.f32 %v1083_v46, %v3056_v16  ;;  %v1471_v41 = vstv %s2171_s10  ;;  %s2202_s10 = sld [smem:[#allocation7 + $0x14]] }
 0x373   : > { %907 = vrot.lane.b32.xlu0 %v905_v17, %s2511_s22  ;;  %v1074_v51 = vmul.f32 %v1073_v14, %v3056_v16  ;;  %v1190_v54 = vmul.f32 %v1189_v53, %v3056_v16  ;;  %v1210_v60 = vmul.f32 %v1209_v57, %v3056_v16  ;;  %v1200_v61 = vmul.f32 %v1199_v59, %v3056_v16 }
 0x374   : > { %v1220_v62 = vmul.f32 %v1219_v47, %v3056_v16  ;;  %v1240_v27 = vmul.f32 %v1239_v48, %v3056_v16  ;;  %v1230_v52 = vmul.f32 %v1229_v26, %v3056_v16  ;;  %v1346_v12 = vmul.f32 %v1345_v7, %v3056_v16 }
 0x375   : > { %v1336_v13 = vmul.f32 %v1335_v36, %v3056_v16  ;;  %v1356_v42 = vmul.f32 %v1355_v11, %v3056_v16  ;;  %v1365_v24 = vstv %s2160_s29  ;;  %v1481_v21 = vstv %s2172_s14  ;;  %s2175_s29 = sld [smem:[#allocation7 + $0x27]] }
 0x376   : > { %v1472_v22 = vmul.f32 %v1471_v41, %v3056_v16  ;;  %v1366_v17 = vmul.f32 %v1365_v24, %v3056_v16  ;;  %v1482_v18 = vmul.f32 %v1481_v21, %v3056_v16  ;;  %v1491_v23 = vstv %s2173_s16  ;;  %s2203_s14 = sld [smem:[#allocation7 + $0x1b]] }
 0x377   : > { %v1616_v25 = vstv %s2186_s6  ;;  %v1501_v37 = vstv %s2174_s19  ;;  %v1636_v6 = vstv %s2188_s5  ;;  %s2189_s16 = sld [smem:[#allocation7 + $0x21]] }
 0x378   : > { %s2162_s6 = sld [smem:[#allocation7 + $0x2d]] }
 0x379   : > { %s2176_s19 = sld [smem:[#allocation7 + $0x2e]] }
 0x37a   : > { %962 = vrot.lane.b32.xlu1 %v960_v56, %s2512_s11  ;;  %951 = vrot.lane.b32.xlu2 %v949_v28, %s2513_s18  ;;  %v1626_v56 = vstv %s2187_s17  ;;  %v1492_v28 = vmul.f32 %v1491_v23, %v3056_v16  ;;  %s2190_s17 = sld [smem:[#allocation7 + $0x28]] }
 0x37b   : > { %940 = vrot.lane.b32.xlu0 %v938_v29, %s2514_s21  ;;  %v1617_v29 = vmul.f32 %v1616_v25, %v3056_v16  ;;  %v1627_v30 = vmul.f32 %v1626_v56, %v3056_v16  ;;  %v1511_v9 = vstv %s2175_s29  ;;  %s2205_s5 = sld [smem:[#allocation7 + $0x29]] }
 0x37c   : > { %s2206_s29 = sld [smem:[#allocation7 + $0x30]] }
 0x37e   : > { %v891_v5 = vpop.permute.xlu1 %890  ;;  %v1385_v53 = vstv %s2162_s6  ;;  %s897_s6 = sld [smem:[#allocation7]] }
 0x37f   : > { %v892_v2 = vrot.slane %v891_v5, 7  ;;  %v1521_v47 = vstv %s2176_s19  ;;  %s2124_s19 = sld [smem:[#allocation7 + $0x54]] }
 0x381   : > { %v893_v39 = vsel %vm843_vm13, %v892_v2, %v891_v5  ;;  %v1762_v5 = vstv %s2201_s20  ;;  %v1502_v2 = vmul.f32 %v1501_v37, %v3056_v16  ;;  %s2204_s20 = sld [smem:[#allocation7 + $0x22]]  ;;  %v1802_v7 = vstv %s2205_s5 }
 0x382   : > { %896 = vst.msk [vmem:[#allocation2 + $0x1] ss:$2 sm:$0x7] %vm849_vm14, %v893_v39  ;;  %1066 = vrot.lane.b32.xlu1 %v1064_v38, %s2509_s12  ;;  %1056 = vrot.lane.b32.xlu2 %v1054_v1, %s2510_s15  ;;  %v1763_v38 = vmul.f32 %v1762_v5, %v3056_v16  ;;  %v1637_v1 = vmul.f32 %v1636_v6, %v3056_v16  ;;  %v1375_v39 = vstv %s2161_s8  ;;  %s2191_s8 = sld [smem:[#allocation7 + $0x2f]]  ;;  %v1812_v21 = vstv %s2206_s29 }
 0x383   : > { %1046 = vrot.lane.b32.xlu0 %v1044_v44, %s2511_s22  ;;  %v1772_v44 = vstv %s2202_s10  ;;  %v1376_v46 = vmul.f32 %v1375_v39, %v3056_v16  ;;  %s2120_s10 = sld [smem:[#allocation7 + $0x38]]  ;;  %vm1753_vm13 = vcmask 1006592   ;;  %vm1899_vm14 = vcmask 998400  }
 0x384   : > { %v1773_v14 = vmul.f32 %v1772_v44, %v3056_v16  ;;  %s3164_s5 = sld [smem:[#allocation7 + $0x5b]] }
 0x385   : > { %v1016_v6 = vstv %s2124_s19  ;;  %s3180_s29 = sld [smem:[#allocation7 + $0x1]] }
 0x386   : > { %s3210_s19 = sld [smem:[#allocation7 + $0x5c]] }
 0x387   : > { %v1792_v48 = vstv %s2204_s20  ;;  %s2134_s20 = sld [smem:[#allocation7 + $0x39]] }
 0x388   : > { %v1666_v36 = vstv %s2191_s8  ;;  %s3166_s8 = sld [smem:[#allocation7 + $0x40]] }
 0x389   : > { %v3146_v11 = vld [vmem:[#allocation2 + $0x1] ss:$2 sm:$0x7] }
 0x38a   : > { %1096 = vrot.lane.b32.xlu1 %v1094_v15, %s2512_s11  ;;  %1086 = vrot.lane.b32.xlu2 %v1084_v49, %s2513_s18  ;;  %v1512_v15 = vmul.f32 %v1511_v9, %v3056_v16  ;;  %v1782_v49 = vstv %s2203_s14  ;;  %s2121_s14 = sld [smem:[#allocation7 + $0x3f]] }
 0x38b   : > { %1076 = vrot.lane.b32.xlu0 %v1074_v51, %s2514_s21  ;;  %v1646_v51 = vstv %s2189_s16  ;;  %v1783_v57 = vmul.f32 %v1782_v49, %v3056_v16  ;;  %s2123_s16 = sld [smem:[#allocation7 + $0x4d]] }
 0x38c   : > { %v1647_v59 = vmul.f32 %v1646_v51, %v3056_v16 }
 0x392   : > { %1192 = vrot.lane.b32.xlu1 %v1190_v54, %s2511_s22  ;;  %1212 = vrot.lane.b32.xlu2 %v1210_v60, %s2509_s12  ;;  %v1386_v54 = vmul.f32 %v1385_v53, %v3056_v16 }
 0x393   : > { %1202 = vrot.lane.b32.xlu0 %v1200_v61, %s2510_s15  ;;  %v1656_v61 = vstv %s2190_s17  ;;  %s2122_s17 = sld [smem:[#allocation7 + $0x46]] }
 0x394   : > { %v1657_v26 = vmul.f32 %v1656_v61, %v3056_v16 }
 0x399   : > { %v996_v5 = vstv %s2122_s17  ;;  %s3204_s17 = sld [smem:[#allocation7 + $0x3]] }
 0x39a   : > { %1222 = vrot.lane.b32.xlu1 %v1220_v62, %s2514_s21  ;;  %1242 = vrot.lane.b32.xlu2 %v1240_v27, %s2512_s11  ;;  %v1522_v62 = vmul.f32 %v1521_v47, %v3056_v16  ;;  %v1793_v27 = vmul.f32 %v1792_v48, %v3056_v16  ;;  %v1026_v47 = vstv %s3164_s5  ;;  %v1117_v48 = vstv %s3166_s8  ;;  %s3220_s5 = sld [smem:[#allocation7 + $0x56]] }
 0x39b   : > { %1232 = vrot.lane.b32.xlu0 %v1230_v52, %s2513_s18  ;;  %s3231_s8 = sld [smem:[#allocation7 + $0x32]] }
 0x3a2   : > { %1348 = vrot.lane.b32.xlu1 %v1346_v12, %s2510_s15  ;;  %1338 = vrot.lane.b32.xlu2 %v1336_v13, %s2511_s22  ;;  %v976_v12 = vstv %s2120_s10  ;;  %v1803_v13 = vmul.f32 %v1802_v7, %v3056_v16  ;;  %s3169_s10 = sld [smem:[#allocation7 + $0x4e]] }
 0x3a3   : > { %1358 = vrot.lane.b32.xlu0 %v1356_v42, %s2509_s12  ;;  %v1667_v42 = vmul.f32 %v1666_v36, %v3056_v16  ;;  %v977_v41 = vmul.f32 %v976_v12, %v3146_v11  ;;  %v1027_v12 = vmul.f32 %v1026_v47, %v3146_v11 }
 0x3aa   : > { %1474 = vrot.lane.b32.xlu1 %v1472_v22, %s2511_s22  ;;  %1368 = vrot.lane.b32.xlu2 %v1366_v17, %s2514_s21  ;;  %v986_v22 = vstv %s2121_s14  ;;  %v1006_v17 = vstv %s2123_s16  ;;  %s3185_s14 = sld [smem:[#allocation7 + $0x47]] }
 0x3ab   : > { %1484 = vrot.lane.b32.xlu0 %v1482_v18, %s2510_s15  ;;  %v1813_v18 = vmul.f32 %v1812_v21, %v3056_v16  ;;  %v987_v23 = vmul.f32 %v986_v22, %v3146_v11  ;;  %v1007_v25 = vmul.f32 %v1006_v17, %v3146_v11  ;;  %s3189_s16 = sld [smem:[#allocation7 + $0x55]] }
 0x3b2   : > { %1494 = vrot.lane.b32.xlu1 %v1492_v28, %s2509_s12  ;;  %1619 = vrot.lane.b32.xlu2 %v1617_v29, %s2511_s22  ;;  %v899_v29 = vstv %s897_s6  ;;  %s3193_s6 = sld [smem:[#allocation7 + $0x41]] }
 0x3b3   : > { %1629 = vrot.lane.b32.xlu0 %v1627_v30, %s2510_s15  ;;  %v898_v30 = vld [vmem:[#allocation2] ss:$2 sm:$0x3] }
 0x3b4   : > { %v900_v39 = vmul.f32 %v899_v29, %v898_v30  ;;  %v1147_v29 = vstv %s3189_s16  ;;  %s3247_s16 = sld [smem:[#allocation7 + $0x3b]] }
 0x3ba   : > { %1504 = vrot.lane.b32.xlu1 %v1502_v2, %s2514_s21  ;;  %1765 = vrot.lane.b32.xlu2 %v1763_v38, %s2511_s22 }
 0x3bb   : > { %1639 = vrot.lane.b32.xlu0 %v1637_v1, %s2509_s12  ;;  %v1107_v1 = vstv %s2134_s20  ;;  %s3214_s20 = sld [smem:[#allocation7 + $0x48]] }
 0x3bc   : > { %v1108_v49 = vmul.f32 %v1107_v1, %v3146_v11 }
 0x3c1   : > { %v1273_v47 = vstv %s3214_s20  ;;  %s3277_s20 = sld [smem:[#allocation7 + $0x42]] }
 0x3c2   : > { %1378 = vrot.lane.b32.xlu1 %v1376_v46, %s2513_s18  ;;  %1775 = vrot.lane.b32.xlu2 %v1773_v14, %s2510_s15  ;;  %v997_v46 = vmul.f32 %v996_v5, %v3146_v11  ;;  %v1017_v14 = vmul.f32 %v1016_v6, %v3146_v11  ;;  %v1263_v6 = vstv %s3193_s6  ;;  %s3263_s6 = sld [smem:[#allocation7 + $0x5]] }
 0x3c3   : > { %1514 = vrot.lane.b32.xlu0 %v1512_v15, %s2513_s18 }
 0x3ca   : > { %1785 = vrot.lane.b32.xlu1 %v1783_v57, %s2509_s12  ;;  %1649 = vrot.lane.b32.xlu2 %v1647_v59, %s2514_s21 }
 0x3cb   : > { %1388 = vrot.lane.b32.xlu0 %v1386_v54, %s2512_s11 }
 0x3cc   : > { %v3136_v60 = vpop.permute.xlu2 %918 }
 0x3cd   : > { %v920_v2 = vrot.slane %v3136_v60, 1 }
 0x3cf   : > { %v922_v51 = vsel %vm921_vm0, %v3136_v60, %v920_v2 }
 0x3d2   : > { %1659 = vrot.lane.b32.xlu1 %v1657_v26, %s2513_s18  ;;  %1524 = vrot.lane.b32.xlu2 %v1522_v62, %s2512_s11 }
 0x3d3   : > { %1795 = vrot.lane.b32.xlu0 %v1793_v27, %s2514_s21  ;;  %v1137_v27 = vstv %s3169_s10  ;;  %s3235_s10 = sld [smem:[#allocation7 + $0x2]] }
 0x3d4   : > { %v3144_v52 = vpop.permute.xlu2 %951 }
 0x3d5   : > { %v953_v26 = vrot.slane %v3144_v52, 1 }
 0x3d7   : > { %v955_v21 = vsel %vm954_vm4, %v3144_v52, %v953_v26  ;;  %v1127_v52 = vstv %s3185_s14  ;;  %s3242_s14 = sld [smem:[#allocation7 + $0x5d]] }
 0x3da   : > { %1805 = vrot.lane.b32.xlu1 %v1803_v13, %s2513_s18  ;;  %1669 = vrot.lane.b32.xlu2 %v1667_v42, %s2512_s11  ;;  %v1118_v13 = vmul.f32 %v1117_v48, %v3146_v11 }
 0x3db   : > { %979 = vrot.lane.b32.xlu0 %v977_v41, %s2511_s22  ;;  %v1138_v41 = vmul.f32 %v1137_v27, %v3146_v11  ;;  %v1293_v27 = vstv %s3220_s5  ;;  %s3287_s5 = sld [smem:[#allocation7 + $0x33]] }
 0x3dc   : > { %v3154_v24 = vpop.permute.xlu2 %1056 }
 0x3e2   : > { %1815 = vrot.lane.b32.xlu1 %v1813_v18, %s2512_s11  ;;  %989 = vrot.lane.b32.xlu2 %v987_v23, %s2510_s15 }
 0x3e3   : > { %1009 = vrot.lane.b32.xlu0 %v1007_v25, %s2514_s21  ;;  %v1039_v25 = vstv %s3180_s29  ;;  %s3239_s29 = sld [smem:[#allocation7 + $0x3a]] }
 0x3e4   : > { %v930_v56 = vpop.permute.xlu1 %929  ;;  %v3162_v28 = vpop.permute.xlu2 %1086  ;;  %v1040_v2 = vmul.f32 %v1039_v25, %v3056_v16 }
 0x3e5   : > { %v908_v37 = vpop.permute.xlu0 %907  ;;  %v931_v44 = vrot.slane %v930_v56, 1  ;;  %v1088_v48 = vrot.slane %v3162_v28, 1 }
 0x3e6   : > { %v909_v38 = vrot.slane %v908_v37, 1 }
 0x3e7   : > { %v933_v57 = vsel %vm932_vm2, %v930_v56, %v931_v44  ;;  %v1148_v44 = vmul.f32 %v1147_v29, %v3146_v11 }
 0x3e8   : > { %v911_v9 = vsel %vm910_vm15, %v908_v37, %v909_v38  ;;  %v1058_v37 = vrot.slane %v3154_v24, 1 }
 0x3e9   : > { %v913_v15 = vadd.f32 %v911_v9, %v900_v39  ;;  %v1128_v39 = vmul.f32 %v1127_v52, %v3146_v11 }
 0x3ea   : > { %999 = vrot.lane.b32.xlu1 %v997_v46, %s2509_s12  ;;  %1019 = vrot.lane.b32.xlu2 %v1017_v14, %s2513_s18  ;;  %v1264_v46 = vmul.f32 %v1263_v6, %v3146_v11  ;;  %v1059_v14 = vsel %vm921_vm0, %v3154_v24, %v1058_v37 }
 0x3eb   : > { %v924_v53 = vadd.f32 %v922_v51, %v913_v15  ;;  %1110 = vrot.lane.b32.xlu0 %v1108_v49, %s2511_s22  ;;  %v1331_v49 = vstv %s3204_s17  ;;  %s3269_s17 = sld [smem:[#allocation7 + $0x4f]] }
 0x3ec   : > { %v963_v59 = vpop.permute.xlu1 %962  ;;  %v3183_v54 = vpop.permute.xlu2 %1212  ;;  %v1332_v26 = vmul.f32 %v1331_v49, %v3056_v16 }
 0x3ed   : > { %v941_v61 = vpop.permute.xlu0 %940  ;;  %v935_v60 = vadd.f32 %v933_v57, %v924_v53  ;;  %v964_v7 = vrot.slane %v963_v59, 1 }
 0x3ee   : > { %v942_v62 = vrot.slane %v941_v61, 1 }
 0x3ef   : > { %v966_v17 = vsel %vm965_vm5, %v963_v59, %v964_v7  ;;  %v1157_v59 = vstv %s3210_s19  ;;  %s3272_s19 = sld [smem:[#allocation7 + $0x3c]] }
 0x3f0   : > { %v944_v36 = vsel %vm943_vm3, %v941_v61, %v942_v62 }
 0x3f1   : > { %v946_v42 = vadd.f32 %v944_v36, %v935_v60  ;;  %v1158_v36 = vmul.f32 %v1157_v59, %v3146_v11 }
 0x3f2   : > { %1029 = vrot.lane.b32.xlu1 %v1027_v12, %s2512_s11  ;;  %1120 = vrot.lane.b32.xlu2 %v1118_v13, %s2510_s15 }
 0x3f3   : > { %v957_v22 = vadd.f32 %v955_v21, %v946_v42  ;;  %1140 = vrot.lane.b32.xlu0 %v1138_v41, %s2514_s21  ;;  %v1274_v41 = vmul.f32 %v1273_v47, %v3146_v11 }
 0x3f4   : > { %v1067_v18 = vpop.permute.xlu1 %1066  ;;  %v3207_v23 = vpop.permute.xlu2 %1242 }
 0x3f5   : > { %v1047_v56 = vpop.permute.xlu0 %1046  ;;  %v3216_v30 = vadd.f32 %v966_v17, %v957_v22  ;;  %v1068_v38 = vrot.slane %v1067_v18, 1  ;;  %v1294_v22 = vmul.f32 %v1293_v27, %v3146_v11  ;;  %v1089_v17 = vsel %vm954_vm4, %v3162_v28, %v1088_v48 }
 0x3f6   : > { %v1048_v5 = vrot.slane %v1047_v56, 1 }
 0x3f7   : > { %v1069_v51 = vsel %vm932_vm2, %v1067_v18, %v1068_v38  ;;  %v1103_v18 = vstv %s3231_s8  ;;  %s3295_s8 = sld [smem:[#allocation7 + $0x6]] }
 0x3f8   : > { %v1049_v1 = vsel %vm910_vm15, %v1047_v56, %v1048_v5  ;;  %v1185_v56 = vstv %s3235_s10  ;;  %v1253_v5 = vstv %s3239_s29  ;;  %s3297_s10 = sld [smem:[#allocation7 + $0x3d]] }
 0x3f9   : > { %v1051_v9 = vadd.f32 %v1049_v1, %v1040_v2  ;;  %v1303_v2 = vstv %s3242_s14  ;;  %v1104_v1 = vmul.f32 %v1103_v18, %v3146_v11  ;;  %s3301_s29 = sld [smem:[#allocation7 + $0x43]] }
 0x3fa   : > { %1130 = vrot.lane.b32.xlu1 %v1128_v39, %s2509_s12  ;;  %1150 = vrot.lane.b32.xlu2 %v1148_v44, %s2513_s18  ;;  %v1186_v39 = vmul.f32 %v1185_v56, %v3056_v16  ;;  %s3305_s14 = sld [smem:[#allocation7 + $0x49]] }
 0x3fb   : > { %v1061_v15 = vadd.f32 %v1059_v14, %v1051_v9  ;;  %1266 = vrot.lane.b32.xlu0 %v1264_v46, %s2510_s15  ;;  %v1399_v9 = vstv %s3247_s16  ;;  %v1214_v46 = vrot.slane %v3183_v54, 1  ;;  %s3323_s16 = sld [smem:[#allocation7 + $0x4]] }
 0x3fc   : > { %v1097_v53 = vpop.permute.xlu1 %1096  ;;  %v1339_v57 = vpop.permute.xlu2 %1338  ;;  %v1400_v59 = vmul.f32 %v1399_v9, %v3146_v11 }
 0x3fd   : > { %v1340_v24 = vrot.slane %v1339_v57, 1  ;;  %v1071_v61 = vadd.f32 %v1069_v51, %v1061_v15  ;;  %v1077_v60 = vpop.permute.xlu0 %1076  ;;  %v1098_v12 = vrot.slane %v1097_v53, 1  ;;  %v1254_v51 = vmul.f32 %v1253_v5, %v3146_v11 }
 0x3fe   : > { %v1078_v62 = vrot.slane %v1077_v60, 1 }
 0x3ff   : > { %v1341_v7 = vsel %vm910_vm15, %v1339_v57, %v1340_v24  ;;  %v1099_v52 = vsel %vm965_vm5, %v1097_v53, %v1098_v12  ;;  %v1304_v53 = vmul.f32 %v1303_v2, %v3146_v11  ;;  %v1535_v12 = vstv %s3272_s19  ;;  %s3334_s19 = sld [smem:[#allocation7 + $0x3e]] }
 0x400   : > { %v3251_v13 = vadd.f32 %v1341_v7, %v1332_v26  ;;  %v1079_v42 = vsel %vm943_vm3, %v1077_v60, %v1078_v62  ;;  %v1612_v60 = vstv %s3263_s6  ;;  %s3325_s6 = sld [smem:[#allocation7 + $0x44]] }
 0x401   : > { %v1081_v21 = vadd.f32 %v1079_v42, %v1071_v61  ;;  %v1215_v61 = vsel %vm932_vm2, %v3183_v54, %v1214_v46  ;;  %v1613_v54 = vmul.f32 %v1612_v60, %v3056_v16 }
 0x402   : > { %1160 = vrot.lane.b32.xlu1 %v1158_v36, %s2512_s11  ;;  %1276 = vrot.lane.b32.xlu2 %v1274_v41, %s2509_s12  ;;  %v1283_v36 = vstv %s3269_s17  ;;  %v1409_v41 = vstv %s3277_s20  ;;  %s3330_s17 = sld [smem:[#allocation7 + $0x4a]] }
 0x403   : > { %v1091_v25 = vadd.f32 %v1089_v17, %v1081_v21  ;;  %1296 = vrot.lane.b32.xlu0 %v1294_v22, %s2513_s18  ;;  %v1244_v21 = vrot.slane %v3207_v23, 1  ;;  %v1284_v56 = vmul.f32 %v1283_v36, %v3146_v11  ;;  %v1410_v5 = vmul.f32 %v1409_v41, %v3146_v11  ;;  %s3352_s20 = sld [smem:[#allocation7 + $0x51]] }
 0x404   : > { %v1193_v29 = vpop.permute.xlu1 %1192  ;;  %v3266_v37 = vpop.permute.xlu2 %1368 }
 0x405   : > { %v1194_v28 = vrot.slane %v1193_v29, 1  ;;  %v1203_v6 = vpop.permute.xlu0 %1202  ;;  %v1101_v38 = vadd.f32 %v1099_v52, %v1091_v25  ;;  %v1536_v52 = vmul.f32 %v1535_v12, %v3146_v11  ;;  %v1245_v2 = vsel %vm965_vm5, %v3207_v23, %v1244_v21 }
 0x406   : > { %v1204_v44 = vrot.slane %v1203_v6, 1 }
 0x407   : > { %v1195_v14 = vsel %vm910_vm15, %v1193_v29, %v1194_v28  ;;  %v3281_v15 = vadd.f32 %v1104_v1, %v1101_v38  ;;  %v1249_v28 = vstv %s3287_s5  ;;  %v1758_v38 = vstv %s3295_s8  ;;  %s3358_s5 = sld [smem:[#allocation7 + $0x50]] }
 0x408   : > { %v1197_v49 = vadd.f32 %v1195_v14, %v1186_v39  ;;  %v1205_v57 = vsel %vm921_vm0, %v1203_v6, %v1204_v44  ;;  %v1250_v9 = vmul.f32 %v1249_v28, %v3146_v11  ;;  %v1759_v23 = vmul.f32 %v1758_v38, %v3056_v16  ;;  %s2195_s8 = sld [smem:[#allocation7 + $0x4b]] }
 0x40a   : > { %v1207_v24 = vadd.f32 %v1205_v57, %v1197_v49  ;;  %1256 = vrot.lane.b32.xlu1 %v1254_v51, %s2511_s22  ;;  %1306 = vrot.lane.b32.xlu2 %v1304_v53, %s2512_s11  ;;  %v1680_v51 = vstv %s3297_s10  ;;  %v1545_v53 = vstv %s3301_s29  ;;  %s3373_s10 = sld [smem:[#allocation7 + $0x57]] }
 0x40b   : > { %1402 = vrot.lane.b32.xlu0 %v1400_v59, %s2511_s22  ;;  %v1419_v59 = vstv %s3305_s14  ;;  %s3377_s29 = sld [smem:[#allocation7 + $0x45]] }
 0x40c   : > { %v1223_v47 = vpop.permute.xlu1 %1222  ;;  %v1217_v48 = vadd.f32 %v1215_v61, %v1207_v24  ;;  %v1620_v26 = vpop.permute.xlu2 %1619  ;;  %v1370_v61 = vrot.slane %v3266_v37, 1  ;;  %v1420_v36 = vmul.f32 %v1419_v59, %v3146_v11  ;;  %s2182_s14 = sld [smem:[#allocation7 + $0x58]] }
 0x40d   : > { %v1224_v62 = vrot.slane %v1223_v47, 1  ;;  %v1621_v27 = vrot.slane %v1620_v26, 1  ;;  %v1233_v7 = vpop.permute.xlu0 %1232 }
 0x40e   : > { %v1234_v42 = vrot.slane %v1233_v7, 1  ;;  %v1700_v59 = vstv %s2195_s8  ;;  %s3438_s8 = sld [smem:[#allocation7 + $0x60]] }
 0x40f   : > { %v1225_v22 = vsel %vm943_vm3, %v1223_v47, %v1224_v62  ;;  %v1622_v17 = vsel %vm910_vm15, %v1620_v26, %v1621_v27  ;;  %v1681_v62 = vmul.f32 %v1680_v51, %v3146_v11  ;;  %v1546_v27 = vmul.f32 %v1545_v53, %v3146_v11 }
 0x410   : > { %v1227_v18 = vadd.f32 %v1225_v22, %v1217_v48  ;;  %v3310_v25 = vadd.f32 %v1622_v17, %v1613_v54  ;;  %v1235_v29 = vsel %vm954_vm4, %v1233_v7, %v1234_v42  ;;  %v1467_v54 = vstv %s3323_s16  ;;  %s3392_s16 = sld [smem:[#allocation7 + $0x52]] }
 0x411   : > { %v1565_v53 = vstv %s3352_s20  ;;  %s3413_s20 = sld [smem:[#allocation7 + $0x5f]] }
 0x412   : > { %v1237_v6 = vadd.f32 %v1235_v29, %v1227_v18  ;;  %1286 = vrot.lane.b32.xlu1 %v1284_v56, %s2514_s21  ;;  %1538 = vrot.lane.b32.xlu2 %v1536_v52, %s2511_s22  ;;  %v1690_v56 = vstv %s3325_s6  ;;  %v1555_v52 = vstv %s3330_s17  ;;  %v1468_v29 = vmul.f32 %v1467_v54, %v3056_v16  ;;  %s3394_s6 = sld [smem:[#allocation7 + $0x5e]] }
 0x413   : > { %1412 = vrot.lane.b32.xlu0 %v1410_v5, %s2510_s15  ;;  %v1439_v54 = vstv %s3373_s10  ;;  %s3397_s17 = sld [smem:[#allocation7 + $0x35]] }
 0x414   : > { %v1247_v1 = vadd.f32 %v1245_v2, %v1237_v6  ;;  %v1349_v39 = vpop.permute.xlu1 %1348  ;;  %v1766_v44 = vpop.permute.xlu2 %1765  ;;  %s3447_s10 = sld [smem:[#allocation7 + $0x36]] }
 0x415   : > { %v1350_v46 = vrot.slane %v1349_v39, 1  ;;  %v1767_v14 = vrot.slane %v1766_v44, 1  ;;  %v1359_v49 = vpop.permute.xlu0 %1358 }
 0x416   : > { %v1360_v57 = vrot.slane %v1359_v49, 1  ;;  %v3336_v24 = vadd.f32 %v1250_v9, %v1247_v1  ;;  %v1691_v1 = vmul.f32 %v1690_v56, %v3146_v11 }
 0x417   : > { %v1351_v60 = vsel %vm921_vm0, %v1349_v39, %v1350_v46  ;;  %v1768_v47 = vsel %vm910_vm15, %v1766_v44, %v1767_v14  ;;  %v1556_v39 = vmul.f32 %v1555_v52, %v3146_v11  ;;  %v1440_v52 = vmul.f32 %v1439_v54, %v3146_v11 }
 0x418   : > { %v1353_v48 = vadd.f32 %v1351_v60, %v3251_v13  ;;  %v1770_v26 = vadd.f32 %v1768_v47, %v1759_v23  ;;  %v1361_v7 = vsel %vm932_vm2, %v1359_v49, %v1360_v57  ;;  %v1371_v13 = vsel %vm943_vm3, %v3266_v37, %v1370_v61 }
 0x419   : > { %v1826_v37 = vstv %s3334_s19  ;;  %v1429_v23 = vstv %s3358_s5  ;;  %s3407_s19 = sld [smem:[#allocation7 + $0x59]]  ;;  %v1585_v54 = vstv %s3413_s20  ;;  %s2518_s20 = smov 126  }
 0x41a   : > { %v1363_v12 = vadd.f32 %v1361_v7, %v1353_v48  ;;  %1683 = vrot.lane.b32.xlu1 %v1681_v62, %s2511_s22  ;;  %1548 = vrot.lane.b32.xlu2 %v1546_v27, %s2510_s15  ;;  %v1827_v16 = vmul.f32 %v1826_v37, %v3146_v11  ;;  %v1566_v48 = vmul.f32 %v1565_v53, %v3146_v11  ;;  %s3417_s5 = sld [smem:[#allocation7 + $0x53]]  ;;  %v1531_v53 = vstv %s3397_s17 }
 0x41b   : > { %1422 = vrot.lane.b32.xlu0 %v1420_v36, %s2509_s12  ;;  %v1701_v27 = vmul.f32 %v1700_v59, %v3146_v11 }
 0x41c   : > { %v1475_v42 = vpop.permute.xlu1 %1474  ;;  %v1776_v41 = vpop.permute.xlu2 %1775  ;;  %v3354_v21 = vadd.f32 %v1371_v13, %v1363_v12 }
 0x41d   : > { %v1476_v22 = vrot.slane %v1475_v42, 1  ;;  %v1777_v17 = vrot.slane %v1776_v41, 1  ;;  %v1485_v18 = vpop.permute.xlu0 %1484 }
 0x41e   : > { %v1486_v5 = vrot.slane %v1485_v18, 1 }
 0x41f   : > { %v1477_v28 = vsel %vm910_vm15, %v1475_v42, %v1476_v22  ;;  %v1778_v6 = vsel %vm921_vm0, %v1776_v41, %v1777_v17  ;;  %v1836_v42 = vstv %s3377_s29  ;;  %v1575_v22 = vstv %s2182_s14  ;;  %s3457_s29 = sld [smem:[#allocation7 + $0x31]] }
 0x420   : > { %v1479_v2 = vadd.f32 %v1477_v28, %v1468_v29  ;;  %v3364_v38 = vadd.f32 %v1778_v6, %v1770_v26  ;;  %v1487_v44 = vsel %vm921_vm0, %v1485_v18, %v1486_v5  ;;  %v1430_v26 = vmul.f32 %v1429_v23, %v3146_v11  ;;  %s3466_s14 = sld [smem:[#allocation7 + $0x61]] }
 0x421   : > { %v1837_v29 = vmul.f32 %v1836_v42, %v3146_v11  ;;  %v1576_v37 = vmul.f32 %v1575_v22, %v3146_v11 }
 0x422   : > { %v1489_v9 = vadd.f32 %v1487_v44, %v1479_v2  ;;  %1693 = vrot.lane.b32.xlu1 %v1691_v1, %s2510_s15  ;;  %1558 = vrot.lane.b32.xlu2 %v1556_v39, %s2509_s12 }
 0x423   : > { %1829 = vrot.lane.b32.xlu0 %v1827_v16, %s2511_s22  ;;  %s3388_s22 = sld [smem:[#allocation7 + $0x4c]] }
 0x424   : > { %v1495_v46 = vpop.permute.xlu1 %1494  ;;  %v1650_v14 = vpop.permute.xlu2 %1649 }
 0x425   : > { %v1496_v49 = vrot.slane %v1495_v46, 1  ;;  %v1630_v51 = vpop.permute.xlu0 %1629  ;;  %v1651_v41 = vrot.slane %v1650_v14, 1 }
 0x426   : > { %v1631_v57 = vrot.slane %v1630_v51, 1 }
 0x427   : > { %v1497_v61 = vsel %vm932_vm2, %v1495_v46, %v1496_v49  ;;  %v1652_v28 = vsel %vm943_vm3, %v1650_v14, %v1651_v41  ;;  %v1449_v49 = vstv %s3394_s6  ;;  %v1856_v41 = vstv %s3417_s5  ;;  %s2207_s6 = sld [smem:[#allocation7 + $0x37]]  ;;  %s2519_s5 = smov 125  }
 0x428   : > { %v1499_v60 = vadd.f32 %v1497_v61, %v1489_v9  ;;  %v1632_v47 = vsel %vm921_vm0, %v1630_v51, %v1631_v57  ;;  %v1710_v9 = vstv %s3392_s16 }
 0x429   : > { %v1634_v62 = vadd.f32 %v1632_v47, %v3310_v25  ;;  %v1846_v16 = vstv %s3388_s22  ;;  %v1711_v61 = vmul.f32 %v1710_v9, %v3146_v11  ;;  %v1450_v47 = vmul.f32 %v1449_v49, %v3146_v11 }
 0x42a   : > { %1568 = vrot.lane.b32.xlu1 %v1566_v48, %s2514_s21  ;;  %1432 = vrot.lane.b32.xlu2 %v1430_v26, %s2514_s21  ;;  %v1847_v59 = vmul.f32 %v1846_v16, %v3146_v11  ;;  %v1532_v26 = vmul.f32 %v1531_v53, %v3146_v11  ;;  %v1730_v9 = vstv %s3438_s8  ;;  %v1676_v53 = vstv %s3447_s10  ;;  %s1903_s10 = sld [smem:[#allocation8]] }
 0x42b   : > { %1703 = vrot.lane.b32.xlu0 %v1701_v27, %s2509_s12 }
 0x42c   : > { %v1505_v7 = vpop.permute.xlu1 %1504  ;;  %v1525_v36 = vpop.permute.xlu2 %1524 }
 0x42d   : > { %v1506_v12 = vrot.slane %v1505_v7, 1  ;;  %v1640_v13 = vpop.permute.xlu0 %1639  ;;  %v1526_v46 = vrot.slane %v1525_v36, 1 }
 0x42e   : > { %v1641_v25 = vrot.slane %v1640_v13, 1 }
 0x42f   : > { %v1507_v17 = vsel %vm943_vm3, %v1505_v7, %v1506_v12  ;;  %v1527_v48 = vsel %vm965_vm5, %v1525_v36, %v1526_v46 }
 0x430   : > { %v1509_v18 = vadd.f32 %v1507_v17, %v1499_v60  ;;  %v1642_v56 = vsel %vm932_vm2, %v1640_v13, %v1641_v25  ;;  %v1720_v13 = vstv %s3407_s19  ;;  %s2516_s19 = smov 6  }
 0x431   : > { %v1644_v5 = vadd.f32 %v1642_v56, %v1634_v62  ;;  %v1721_v56 = vmul.f32 %v1720_v13, %v3146_v11 }
 0x432   : > { %1442 = vrot.lane.b32.xlu1 %v1440_v52, %s2513_s18  ;;  %1839 = vrot.lane.b32.xlu2 %v1837_v29, %s2510_s15  ;;  %s3420_s15 = sld [smem:[#allocation7 + $0x34]]  ;;  %v1586_v52 = vmul.f32 %v1585_v54, %v3146_v11 }
 0x433   : > { %1578 = vrot.lane.b32.xlu0 %v1576_v37, %s2513_s18  ;;  %v3409_v6 = vadd.f32 %v1652_v28, %v1644_v5  ;;  %v1857_v5 = vmul.f32 %v1856_v41, %v3146_v11 }
 0x434   : > { %v1379_v2 = vpop.permute.xlu1 %1378  ;;  %v3411_v1 = vpop.permute.xlu2 %1669 }
 0x435   : > { %v1380_v39 = vrot.slane %v1379_v2, 1  ;;  %v1515_v44 = vpop.permute.xlu0 %1514 }
 0x436   : > { %v1516_v14 = vrot.slane %v1515_v44, 1 }
 0x437   : > { %v1381_v51 = vsel %vm954_vm4, %v1379_v2, %v1380_v39  ;;  %v1671_v39 = vrot.slane %v3411_v1, 1 }
 0x438   : > { %v1383_v23 = vadd.f32 %v1381_v51, %v3354_v21  ;;  %v1517_v57 = vsel %vm954_vm4, %v1515_v44, %v1516_v14  ;;  %v1395_v25 = vstv %s3420_s15  ;;  %v2199_v51 = vld [vmem:[%s3654_s4 + $0x5] ss:$8 sm:$0x3]  ;;  %s2521_s15 = smov 122  }
 0x439   : > { %v1519_v60 = vadd.f32 %v1517_v57, %v1509_v18  ;;  %v1396_v37 = vmul.f32 %v1395_v25, %v3146_v11 }
 0x43a   : > { %1849 = vrot.lane.b32.xlu1 %v1847_v59, %s2509_s12  ;;  %1713 = vrot.lane.b32.xlu2 %v1711_v61, %s2514_s21  ;;  %s3443_s12 = sld [smem:[#allocation7 + $0x5a]]  ;;  %v1731_v59 = vmul.f32 %v1730_v9, %v3146_v11  ;;  %v1672_v61 = vsel %vm965_vm5, %v3411_v1, %v1671_v39  ;;  %v1822_v9 = vstv %s2207_s6 }
 0x43b   : > { %v1529_v21 = vadd.f32 %v1527_v48, %v1519_v60  ;;  %1452 = vrot.lane.b32.xlu0 %v1450_v47, %s2512_s11 }
 0x43c   : > { %v1786_v62 = vpop.permute.xlu1 %1785  ;;  %v3434_v27 = vpop.permute.xlu2 %989 }
 0x43d   : > { %v1787_v7 = vrot.slane %v1786_v62, 1  ;;  %v1389_v12 = vpop.permute.xlu0 %1388  ;;  %v3440_v36 = vadd.f32 %v1532_v26, %v1529_v21  ;;  %v970_v21 = vld [vmem:[#allocation2 + $0x1] ss:$2 sm:$0x3]  ;;  %v971_v26 = vstv %s3457_s29  ;;  %v991_v41 = vrot.slane %v3434_v27, 1  ;;  %s2215_s29 = sld [smem:[#allocation8 + $0x1]] }
 0x43e   : > { %v1390_v42 = vrot.slane %v1389_v12, 1  ;;  %v972_v13 = vmul.f32 %v971_v26, %v970_v21 }
 0x43f   : > { %v1788_v22 = vsel %vm932_vm2, %v1786_v62, %v1787_v7 }
 0x440   : > { %v1790_v17 = vadd.f32 %v1788_v22, %v3364_v38  ;;  %v1391_v18 = vsel %vm965_vm5, %v1389_v12, %v1390_v42  ;;  %v1866_v14 = vstv %s3443_s12  ;;  %v1876_v42 = vstv %s3466_s14  ;;  %s3587_s14 = scalar_lea.vmem [#allocation10], %s2101_s30  ;;  %s2223_s30 = sshll.u32 %s2585_s28, 7 }
 0x441   : > { %v1393_v29 = vadd.f32 %v1391_v18, %v1383_v23  ;;  %v1867_v47 = vmul.f32 %v1866_v14, %v3146_v11  ;;  %s1994_s28 = sshll.u32 %s3587_s14, 4  ;;  %s1995_s28 = int_to_ptr.vmem [resolvable:$true] %s1994_s28 }
 0x442   : > { %1723 = vrot.lane.b32.xlu1 %v1721_v56, %s2513_s18  ;;  %1588 = vrot.lane.b32.xlu2 %v1586_v52, %s2512_s11  ;;  %v1877_v52 = vmul.f32 %v1876_v42, %v3146_v11 }
 0x443   : > { %1859 = vrot.lane.b32.xlu0 %v1857_v5, %s2514_s21  ;;  %v3460_v38 = vadd.f32 %v1396_v37, %v1393_v29  ;;  %s2515_s21 = smov 5   ;;  %v2214_v29 = vld [vmem:[%s3654_s4 + $0x6] ss:$8 sm:$0x3]  ;;  %v992_v37 = vsel %vm921_vm0, %v3434_v27, %v991_v41 }
 0x444   : > { %v1660_v28 = vpop.permute.xlu1 %1659  ;;  %v3462_v2 = vpop.permute.xlu2 %1019 }
 0x445   : > { %v1661_v44 = vrot.slane %v1660_v28, 1  ;;  %v1796_v16 = vpop.permute.xlu0 %1795 }
 0x446   : > { %v1797_v46 = vrot.slane %v1796_v16, 1 }
 0x447   : > { %v1662_v49 = vsel %vm954_vm4, %v1660_v28, %v1661_v44 }
 0x448   : > { %v1664_v23 = vadd.f32 %v1662_v49, %v3409_v6  ;;  %v1798_v57 = vsel %vm943_vm3, %v1796_v16, %v1797_v46  ;;  %v1677_v6 = vmul.f32 %v1676_v53, %v3146_v11  ;;  %v1823_v49 = vmul.f32 %v1822_v9, %v3146_v11 }
 0x449   : > { %v1800_v60 = vadd.f32 %v1798_v57, %v1790_v17  ;;  %v973_v17 = vadd.f32 %v972_v13, %v3216_v30 }
 0x44a   : > { %v1674_v48 = vadd.f32 %v1672_v61, %v1664_v23  ;;  %1733 = vrot.lane.b32.xlu1 %v1731_v59, %s2512_s11  ;;  %1742 = vrot.lane.b32.xlu2 %v2199_v51, %s2515_s21  ;;  %v1021_v61 = vrot.slane %v3462_v2, 1  ;;  %s1993_s21 = scalar_lea.hbm %s3657_s7, %s2223_s30 }
 0x44b   : > { %1869 = vrot.lane.b32.xlu0 %v1867_v47, %s2513_s18  ;;  %s1996_s6 = sshll.u32 %s1993_s21, 4  ;;  %s1982_s18 = scalar_lea.sflag [#allocation5], %s2664_s9  ;;  %s1997_s6 = int_to_ptr.hbm [resolvable:$true] %s1996_s6 }
 0x44c   : > { %v1806_v62 = vpop.permute.xlu1 %1805  ;;  %v1121_v7 = vpop.permute.xlu2 %1120  ;;  %v3484_v12 = vadd.f32 %v1677_v6, %v1674_v48  ;;  %v1022_v26 = vsel %vm954_vm4, %v3462_v2, %v1021_v61  ;;  %s2434_s17 = sshra.s32 %s1997_s6, 4  ;;  %s2435_s17 = int_to_ptr.hbm [resolvable:$true] %s2434_s17 }
 0x44d   : > { %v1807_v1 = vrot.slane %v1806_v62, 1  ;;  %v980_v54 = vpop.permute.xlu0 %979  ;;  %p2441_p0 = scmp.lt.s32.totalorder %s2435_s17, %s3657_s7 }
 0x44e   : > { %v981_v25 = vrot.slane %v980_v54, 1 }
 0x44f   : > { %v1808_v22 = vsel %vm954_vm4, %v1806_v62, %v1807_v1 }
 0x450   : > { %v1810_v18 = vadd.f32 %v1808_v22, %v1800_v60  ;;  %v982_v56 = vsel %vm910_vm15, %v980_v54, %v981_v25  ;;  %v1122_v22 = vrot.slane %v1121_v7, 1 }
 0x451   : > { %v984_v5 = vadd.f32 %v982_v56, %v973_v17 }
 0x452   : > { %1879 = vrot.lane.b32.xlu1 %v1877_v52, %s2512_s11  ;;  %v1123_v2 = vsel %vm921_vm0, %v1121_v7, %v1122_v22  ;;  %s2517_s11 = smov 127  }
 0x453   : > { %1888 = vrot.lane.b32.xlu0 %v2214_v29, %s2516_s19  ;;  %v994_v28 = vadd.f32 %v992_v37, %v984_v5  ;;  %s2436_s19 = scalar_lea.hbm %s2435_s17, 128 }
 0x454   : > { %v1816_v39 = vpop.permute.xlu1 %1815  ;;  %v1151_v30 = vpop.permute.xlu2 %1150  ;;  %p2437_p4 = scmp.ne.s32.totalorder %s2435_s17, %s2436_s19 }
 0x455   : > { %v1817_v44 = vrot.slane %v1816_v39, 1  ;;  %v1010_v16 = vpop.permute.xlu0 %1009 }
 0x456   : > { %v1011_v27 = vrot.slane %v1010_v16, 1  ;;  %p2438_p6 = pnand %p2437_p4, %p2616_p11 }
 0x457   : > { %v1818_v46 = vsel %vm965_vm5, %v1816_v39, %v1817_v44  ;;  %v1152_v44 = vrot.slane %v1151_v30, 1 }
 0x458   : > { %v1820_v14 = vadd.f32 %v1818_v46, %v1810_v18  ;;  %v1012_v48 = vsel %vm943_vm3, %v1010_v16, %v1011_v27  ;;  %p2439_p13 = pneg %p2438_p6 }
 0x45a   : > { %v3500_v51 = vadd.f32 %v1823_v49, %v1820_v14  ;;  %v1153_v49 = vsel %vm954_vm4, %v1151_v30, %v1152_v44 }
 0x45c   : > { %v1000_v53 = vpop.permute.xlu1 %999  ;;  %v1277_v23 = vpop.permute.xlu2 %1276 }
 0x45d   : > { %v1001_v57 = vrot.slane %v1000_v53, 1  ;;  %v1111_v59 = vpop.permute.xlu0 %1110 }
 0x45e   : > { %v1112_v6 = vrot.slane %v1111_v59, 1 }
 0x45f   : > { %v1002_v60 = vsel %vm932_vm2, %v1000_v53, %v1001_v57 }
 0x460   : > { %v1004_v47 = vadd.f32 %v1002_v60, %v994_v28  ;;  %v1113_v42 = vsel %vm910_vm15, %v1111_v59, %v1112_v6 }
 0x461   : > { %v1115_v17 = vadd.f32 %v1113_v42, %v3281_v15  ;;  %v1171_v15 = vrot.slane %v2870_v8, 7 }
 0x462   : > { %v1014_v21 = vadd.f32 %v1012_v48, %v1004_v47 }
 0x463   : > { %v1125_v37 = vadd.f32 %v1123_v2, %v1115_v17  ;;  %v1173_v61 = vsel %vm1172_vm6, %v1171_v15, %v2870_v8 }
 0x464   : > { %v1030_v11 = vpop.permute.xlu1 %1029  ;;  %v1024_v62 = vadd.f32 %v1022_v26, %v1014_v21  ;;  %v1307_v1 = vpop.permute.xlu2 %1306 }
 0x465   : > { %v1031_v13 = vrot.slane %v1030_v11, 1  ;;  %v1141_v54 = vpop.permute.xlu0 %1140 }
 0x466   : > { %v1142_v52 = vrot.slane %v1141_v54, 1 }
 0x467   : > { %v1032_v41 = vsel %vm965_vm5, %v1030_v11, %v1031_v13 }
 0x468   : > { %v3509_v25 = vadd.f32 %v1032_v41, %v1024_v62  ;;  %v1143_v16 = vsel %vm943_vm3, %v1141_v54, %v1142_v52  ;;  %v1278_v62 = vrot.slane %v1277_v23, 1  ;;  %v1308_v52 = vrot.slane %v1307_v1, 1 }
 0x46a   : > { %v1279_v41 = vsel %vm932_vm2, %v1277_v23, %v1278_v62 }
 0x46c   : > { %v1131_v18 = vpop.permute.xlu1 %1130  ;;  %v3512_v56 = vpop.permute.xlu2 %1538 }
 0x46d   : > { %v1132_v29 = vrot.slane %v1131_v18, 1  ;;  %v1267_v5 = vpop.permute.xlu0 %1266 }
 0x46e   : > { %v1268_v21 = vrot.slane %v1267_v5, 1 }
 0x46f   : > { %v1133_v28 = vsel %vm932_vm2, %v1131_v18, %v1132_v29 }
 0x470   : > { %v1135_v39 = vadd.f32 %v1133_v28, %v1125_v37  ;;  %v1269_v13 = vsel %vm921_vm0, %v1267_v5, %v1268_v21  ;;  %v1317_v28 = vrot.slane %v2848_v55, 7  ;;  %v1309_v5 = vsel %vm965_vm5, %v1307_v1, %v1308_v52 }
 0x472   : > { %v1145_v9 = vadd.f32 %v1143_v16, %v1135_v39  ;;  %v1319_v23 = vsel %vm1318_vm7, %v1317_v28, %v2848_v55 }
 0x474   : > { %v1161_v46 = vpop.permute.xlu1 %1160  ;;  %v1549_v14 = vpop.permute.xlu2 %1548  ;;  %v1155_v7 = vadd.f32 %v1153_v49, %v1145_v9 }
 0x475   : > { %v1162_v53 = vrot.slane %v1161_v46, 1  ;;  %v1297_v27 = vpop.permute.xlu0 %1296 }
 0x476   : > { %v1298_v8 = vrot.slane %v1297_v27, 1 }
 0x477   : > { %v1163_v57 = vsel %vm965_vm5, %v1161_v46, %v1162_v53 }
 0x478   : > { %v1165_v59 = vadd.f32 %v1163_v57, %v1155_v7  ;;  %v1550_v57 = vrot.slane %v1549_v14, 1 }
 0x47a   : > { %v1175_v60 = vmul.f32 %v1173_v61, %v1165_v59 }
 0x47c   : > { %v1257_v47 = vpop.permute.xlu1 %1256  ;;  %v1559_v48 = vpop.permute.xlu2 %1558  ;;  %1177 = vrot.lane.b32.xlu2 %v1175_v60, %s2517_s11 }
 0x47d   : > { %v1258_v26 = vrot.slane %v1257_v47, 1  ;;  %v1403_v6 = vpop.permute.xlu0 %1402  ;;  %v1560_v55 = vrot.slane %v1559_v48, 1 }
 0x47e   : > { %v1404_v60 = vrot.slane %v1403_v6, 1 }
 0x47f   : > { %v1259_v11 = vsel %vm910_vm15, %v1257_v47, %v1258_v26  ;;  %v1551_v47 = vsel %vm921_vm0, %v1549_v14, %v1550_v57 }
 0x480   : > { %v1261_v30 = vadd.f32 %v1259_v11, %v3336_v24  ;;  %v1299_v24 = vsel %vm954_vm4, %v1297_v27, %v1298_v8  ;;  %v1540_v27 = vrot.slane %v3512_v56, 1  ;;  %v1405_v62 = vsel %vm910_vm15, %v1403_v6, %v1404_v60 }
 0x481   : > { %v1599_v6 = vrot.slane %v2866_v58, 7 }
 0x482   : > { %v1271_v54 = vadd.f32 %v1269_v13, %v1261_v30  ;;  %v1541_v61 = vsel %vm910_vm15, %v3512_v56, %v1540_v27  ;;  %v1561_v30 = vsel %vm932_vm2, %v1559_v48, %v1560_v55 }
 0x483   : > { %v1543_v11 = vadd.f32 %v1541_v61, %v3440_v36 }
 0x484   : > { %v1287_v42 = vpop.permute.xlu1 %1286  ;;  %v1433_v17 = vpop.permute.xlu2 %1432  ;;  %v1281_v2 = vadd.f32 %v1279_v41, %v1271_v54 }
 0x485   : > { %v1288_v22 = vrot.slane %v1287_v42, 1  ;;  %v1413_v18 = vpop.permute.xlu0 %1412  ;;  %v1553_v54 = vadd.f32 %v1551_v47, %v1543_v11  ;;  %v1434_v28 = vrot.slane %v1433_v17, 1 }
 0x486   : > { %v1414_v21 = vrot.slane %v1413_v18, 1 }
 0x487   : > { %v1289_v29 = vsel %vm943_vm3, %v1287_v42, %v1288_v22  ;;  %v1563_v22 = vadd.f32 %v1561_v30, %v1553_v54 }
 0x488   : > { %v1291_v37 = vadd.f32 %v1289_v29, %v1281_v2  ;;  %v1415_v41 = vsel %vm921_vm0, %v1413_v18, %v1414_v21  ;;  %v1407_v2 = vadd.f32 %v1405_v62, %v3460_v38  ;;  %v1600_v38 = vsel %vm422_vm1, %v1599_v6, %v2866_v58 }
 0x489   : > { %vm1745_vm1 = vcmask 39936  }
 0x48a   : > { %v1301_v39 = vadd.f32 %v1299_v24, %v1291_v37  ;;  %v1417_v37 = vadd.f32 %v1415_v41, %v1407_v2 }
 0x48c   : > { %v1684_v44 = vpop.permute.xlu1 %1683  ;;  %v1311_v16 = vadd.f32 %v1309_v5, %v1301_v39  ;;  %v3530_v15 = vpop.permute.xlu2 %1839 }
 0x48d   : > { %v1423_v9 = vpop.permute.xlu0 %1422  ;;  %v1685_v57 = vrot.slane %v1684_v44, 1 }
 0x48e   : > { %v1321_v46 = vmul.f32 %v1319_v23, %v1311_v16  ;;  %v1424_v13 = vrot.slane %v1423_v9, 1 }
 0x48f   : > { %v1686_v11 = vsel %vm910_vm15, %v1684_v44, %v1685_v57 }
 0x490   : > { %1323 = vrot.lane.b32.xlu0 %v1321_v46, %s2518_s20  ;;  %v1425_v52 = vsel %vm932_vm2, %v1423_v9, %v1424_v13  ;;  %v1435_v9 = vsel %vm943_vm3, %v1433_v17, %v1434_v28  ;;  %v1688_v62 = vadd.f32 %v1686_v11, %v3484_v12 }
 0x491   : > { %v1427_v18 = vadd.f32 %v1425_v52, %v1417_v37 }
 0x494   : > { %v1694_v49 = vpop.permute.xlu1 %1693  ;;  %v3534_v7 = vpop.permute.xlu2 %1713 }
 0x495   : > { %v3532_v53 = vpop.permute.xlu0 %1829  ;;  %v1695_v47 = vrot.slane %v1694_v49, 1 }
 0x496   : > { %v1831_v54 = vrot.slane %v3532_v53, 1 }
 0x497   : > { %v1696_v17 = vsel %vm921_vm0, %v1694_v49, %v1695_v47  ;;  %v1841_v49 = vrot.slane %v3530_v15, 1 }
 0x498   : > { %v1832_v44 = vsel %vm910_vm15, %v3532_v53, %v1831_v54 }
 0x499   : > { %v1842_v53 = vsel %vm921_vm0, %v3530_v15, %v1841_v49 }
 0x49c   : > { %v1569_v59 = vpop.permute.xlu1 %1568  ;;  %v1589_v42 = vpop.permute.xlu2 %1588 }
 0x49d   : > { %v1704_v1 = vpop.permute.xlu0 %1703  ;;  %v1570_v26 = vrot.slane %v1569_v59, 1  ;;  %v1590_v29 = vrot.slane %v1589_v42, 1 }
 0x49e   : > { %v1705_v30 = vrot.slane %v1704_v1, 1 }
 0x49f   : > { %v1571_v8 = vsel %vm943_vm3, %v1569_v59, %v1570_v26  ;;  %v1591_v16 = vsel %vm965_vm5, %v1589_v42, %v1590_v29  ;;  %v1437_v59 = vadd.f32 %v1435_v9, %v1427_v18 }
 0x4a0   : > { %v1573_v48 = vadd.f32 %v1571_v8, %v1563_v22  ;;  %v1706_v42 = vsel %vm932_vm2, %v1704_v1, %v1705_v30  ;;  %v1698_v8 = vadd.f32 %v1696_v17, %v1688_v62  ;;  %v1834_v1 = vadd.f32 %v1832_v44, %v3500_v51 }
 0x4a2   : > { %v1708_v2 = vadd.f32 %v1706_v42, %v1698_v8 }
 0x4a4   : > { %v1443_v56 = vpop.permute.xlu1 %1442 }
 0x4a5   : > { %v1579_v14 = vpop.permute.xlu0 %1578  ;;  %v1444_v24 = vrot.slane %v1443_v56, 1 }
 0x4a6   : > { %v1580_v36 = vrot.slane %v1579_v14, 1 }
 0x4a7   : > { %v1445_v46 = vsel %vm954_vm4, %v1443_v56, %v1444_v24  ;;  %v1715_v56 = vrot.slane %v3534_v7, 1 }
 0x4a8   : > { %v1581_v39 = vsel %vm954_vm4, %v1579_v14, %v1580_v36  ;;  %v1447_v21 = vadd.f32 %v1445_v46, %v1437_v59  ;;  %v1743_v14 = vpop.permute.xlu2 %1742 }
 0x4a9   : > { %v1583_v5 = vadd.f32 %v1581_v39, %v1573_v48  ;;  %v1716_v12 = vsel %vm943_vm3, %v3534_v7, %v1715_v56  ;;  %v1744_v28 = vrot.slane %v1743_v14, 7 }
 0x4aa   : > { %v1718_v36 = vadd.f32 %v1716_v12, %v1708_v2 }
 0x4ab   : > { %v1593_v23 = vadd.f32 %v1591_v16, %v1583_v5  ;;  %v1844_v16 = vadd.f32 %v1842_v53, %v1834_v1  ;;  %v1907_v53 = vstv %s2215_s29 }
 0x4ac   : > { %v1850_v27 = vpop.permute.xlu1 %1849 }
 0x4ad   : > { %v1453_v61 = vpop.permute.xlu0 %1452  ;;  %v1602_v55 = vmul.f32 %v1600_v38, %v1593_v23  ;;  %v1851_v52 = vrot.slane %v1850_v27, 1  ;;  %v1746_v38 = vsel %vm1745_vm1, %v1744_v28, %v1743_v14 }
 0x4ae   : > { %v1454_v60 = vrot.slane %v1453_v61, 1 }
 0x4af   : > { %1604 = vrot.lane.b32.xlu1 %v1602_v55, %s2504_s23  ;;  %v1852_v18 = vsel %vm932_vm2, %v1850_v27, %v1851_v52  ;;  %s2520_s23 = smov 123  }
 0x4b0   : > { %v1455_v26 = vsel %vm965_vm5, %v1453_v61, %v1454_v60  ;;  %v1854_v9 = vadd.f32 %v1852_v18, %v1844_v16 }
 0x4b1   : > { %v1457_v58 = vadd.f32 %v1455_v26, %v1447_v21 }
 0x4b3   : > { %1459 = vrot.lane.b32.xlu2 %v1457_v58, %s2519_s5  ;;  %s2440_s5 = scalar_lea.hbm %s3657_s7, 256 }
 0x4b4   : > { %v1724_v13 = vpop.permute.xlu1 %1723  ;;  %p2442_p7 = scmp.lt.s32.totalorder %s2440_s5, %s2436_s19 }
 0x4b5   : > { %v1860_v41 = vpop.permute.xlu0 %1859  ;;  %v1725_v22 = vrot.slane %v1724_v13, 1 }
 0x4b6   : > { %v1861_v48 = vrot.slane %v1860_v41, 1  ;;  %p2443_p5 = por %p2442_p7, %p2441_p0 }
 0x4b7   : > { %v1726_v29 = vsel %vm954_vm4, %v1724_v13, %v1725_v22  ;;  %v1035_v13 = vld [vmem:[%s3654_s4] ss:$8 sm:$0x3] }
 0x4b8   : > { %v1728_v39 = vadd.f32 %v1726_v29, %v1718_v36  ;;  %v1862_v51 = vsel %vm943_vm3, %v1860_v41, %v1861_v48  ;;  %v1036_v56 = vmul.f32 %v1035_v13, %v3509_v25  ;;  %p2444_p8 = pnand %p2443_p5, %p2439_p13 }
 0x4b9   : > { %v1864_v59 = vadd.f32 %v1862_v51, %v1854_v9 }
 0x4bc   : > { %v1734_v37 = vpop.permute.xlu1 %1733 }
 0x4bd   : > { %v1735_v6 = vrot.slane %v1734_v37, 1  ;;  %v1870_v24 = vpop.permute.xlu0 %1869 }
 0x4be   : > { %v1871_v5 = vrot.slane %v1870_v24, 1 }
 0x4bf   : > { %v1736_v7 = vsel %vm965_vm5, %v1734_v37, %v1735_v6 }
 0x4c0   : > { %v1738_v23 = vadd.f32 %v1736_v7, %v1728_v39  ;;  %v1872_v57 = vsel %vm954_vm4, %v1870_v24, %v1871_v5  ;;  %v1904_v24 = vstv %s1903_s10 }
 0x4c1   : > { %v1874_v27 = vadd.f32 %v1872_v57, %v1864_v59 }
 0x4c2   : > { %v1748_v46 = vmul.f32 %v1746_v38, %v1738_v23 }
 0x4c4   : > { %v1880_v61 = vpop.permute.xlu1 %1879  ;;  %1750 = vrot.lane.b32.xlu0 %v1748_v46, %s2520_s23 }
 0x4c5   : > { %v1881_v55 = vrot.slane %v1880_v61, 1  ;;  %v1889_v15 = vpop.permute.xlu0 %1888 }
 0x4c6   : > { %v1890_v60 = vrot.slane %v1889_v15, 7 }
 0x4c7   : > { %v1882_v47 = vsel %vm965_vm5, %v1880_v61, %v1881_v55 }
 0x4c8   : > { %v1884_v21 = vadd.f32 %v1882_v47, %v1874_v27  ;;  %v1892_v26 = vsel %vm1891_vm8, %v1890_v60, %v1889_v15 }
 0x4ca   : > { %v1894_v11 = vmul.f32 %v1892_v26, %v1884_v21 }
 0x4cc   : > { %1896 = vrot.lane.b32.xlu2 %v1894_v11, %s2521_s15 }
 0x4d6   : > { %v1178_v30 = vpop.permute.xlu2 %1177 }
 0x4d7   : > { %v1179_v17 = vrot.slane %v1178_v30, 1 }
 0x4d9   : > { %v1181_v41 = vsel %vm1180_vm9, %v1178_v30, %v1179_v17 }
 0x4da   : > { %v1183_v44 = vadd.f32 %v1181_v41, %v1036_v56 }
 0x502   : > { %v1324_v58 = vpop.permute.xlu0 %1323 }
 0x503   : > { %v1325_v54 = vrot.slane %v1324_v58, 1 }
 0x505   : > { %v1327_v22 = vsel %vm1326_vm10, %v1324_v58, %v1325_v54 }
 0x506   : > { %v1329_v49 = vadd.f32 %v1327_v22, %v1183_v44 }
 0x50d   : > { %v1460_v62 = vpop.permute.xlu2 %1459 }
 0x50e   : > { %v1461_v8 = vrot.slane %v1460_v62, 1 }
 0x510   : > { %v1463_v14 = vsel %vm1462_vm11, %v1460_v62, %v1461_v8 }
 0x511   : > { %v1465_v29 = vadd.f32 %v1463_v14, %v1329_v49 }
 0x521   : > { %v1605_v42 = vpop.permute.xlu1 %1604 }
 0x522   : > { %v1606_v2 = vrot.slane %v1605_v42, 1 }
 0x524   : > { %v1608_v52 = vsel %vm1607_vm12, %v1605_v42, %v1606_v2 }
 0x525   : > { %v1610_v48 = vadd.f32 %v1608_v52, %v1465_v29 }
 0x526   : > { %v1897_v12 = vpop.permute.xlu2 %1896 }
 0x527   : > { %v1898_v36 = vrot.slane %v1897_v12, 1 }
 0x529   : > { %v1900_v28 = vsel %vm1899_vm14, %v1897_v12, %v1898_v36 }
 0x536   : > { %v1751_v1 = vpop.permute.xlu0 %1750 }
 0x537   : > { %v1752_v37 = vrot.slane %v1751_v1, 1 }
 0x539   : > { %v1754_v6 = vsel %vm1753_vm13, %v1751_v1, %v1752_v37 }
 0x53a   : > { %v1756_v25 = vadd.f32 %v1754_v6, %v1610_v48 }
 0x53c   : > { %v1902_v39 = vadd.f32 %v1900_v28, %v1756_v25 }
 0x53e   : > { %v1905_v18 = vmul.f32 %v1904_v24, %v1902_v39 }
 0x540   : > { %v1908_v7 = vadd.f32 %v1907_v53, %v1905_v18 }
 0x542   : > { %v2216_v5 = vmul.f32 -1.442695, %v1908_v7 }
 0x544   : > { %2356 = vpow2.f32 %v2216_v5 }
 0x54a   : > { %v2357_v16 = vpop.eup %2356 }
 0x54b   : > { %v1912_v23 = vadd.f32 1.0, %v2357_v16 }
 0x54d   : > { %2358 = vrcp.f32 %v1912_v23  ;;  %v1924_v46 = vand.u32 2147483648, %v1912_v23  ;;  %v1922_v59 = vand.u32 2147483647, %v1912_v23  ;;  %vm1918_vm0 = vweird.f32 %v1912_v23 }
 0x54f   : > { %v1925_v55 = vor.u32 1.1754944e-38, %v1924_v46  ;;  %vm1923_vm3 = vcmp.eq.f32.partialorder %v1922_v59, 8.507059e+37 }
 0x553   : > { %v2359_v51 = vpop.eup %2358 }
 0x554   : > { %v1914_v38 = vmul.f32 %v2359_v51, %v1912_v23  ;;  %vm1919_vm15 = vweird.f32 %v2359_v51 }
 0x555   : > { %vm1920_vm2 = vmor %vm1918_vm0, %vm1919_vm15 }
 0x556   : > { %v1915_v9 = vsub.f32 1.0, %v1914_v38 }
 0x558   : > { %v1916_v57 = vmul.f32 %v2359_v51, %v1915_v9 }
 0x55a   : > { %v1917_v61 = vadd.f32 %v2359_v51, %v1916_v57 }
 0x55c   : > { %v1921_v15 = vsel %vm1920_vm2, %v2359_v51, %v1917_v61 }
 0x55d   : > { %v1926_v27 = vsel %vm1923_vm3, %v1925_v55, %v1921_v15 }
 0x55e   : > { %v1945_v60 = vperm.slane %v1926_v27, 0  ;;  %v1946_v47 = vperm.slane %v1926_v27, 1 }
 0x560   : > { %v1949_v21 = vmul.f32 %v1945_v60, %v2965_v50  ;;  %v1950_v26 = vmul.f32 %v1946_v47, %v2968_v33  ;;  %v1951_v11 = vmul.f32 %v1945_v60, %v2959_v3  ;;  %v1952_v30 = vmul.f32 %v1946_v47, %v2962_v32 }
 0x561   : > { %v1953_v58 = vmul.f32 %v1945_v60, %v2971_v34  ;;  %v1954_v50 = vmul.f32 %v1946_v47, %v2974_v35  ;;  %v1955_v3 = vmul.f32 %v1945_v60, %v2983_v4  ;;  %v1956_v32 = vmul.f32 %v1946_v47, %v2986_v0 }
 0x562   : > { %1965 = vst [vmem:[%s3587_s14] sm:$0xff] %v1949_v21  ;;  %v1957_v33 = vmul.f32 %v1945_v60, %v2989_v40  ;;  %v1958_v34 = vmul.f32 %v1946_v47, %v2992_v43  ;;  %v1959_v35 = vmul.f32 %v1945_v60, %v2997_v10  ;;  %v1960_v4 = vmul.f32 %v1946_v47, %v3000_v45 }
 0x563   : > { %1966 = vst [vmem:[%s3587_s14 + $0x8] sm:$0xff] %v1950_v26  ;;  %v1961_v0 = vmul.f32 %v1945_v60, %v3025_v31  ;;  %v1962_v40 = vmul.f32 %v1946_v47, %v3028_v63  ;;  %v1963_v43 = vmul.f32 %v1945_v60, %v3009_v19  ;;  %v1964_v10 = vmul.f32 %v1946_v47, %v3012_v20 }
 0x564   : > { %1967 = vst [vmem:[%s3587_s14 + $0x10] sm:$0xff] %v1951_v11 }
 0x565   : > { %1968 = vst [vmem:[%s3587_s14 + $0x18] sm:$0xff] %v1952_v30 }
 0x566   : > { %1969 = vst [vmem:[%s3587_s14 + $0x20] sm:$0xff] %v1953_v58 }
 0x567   : > { %1970 = vst [vmem:[%s3587_s14 + $0x28] sm:$0xff] %v1954_v50 }
 0x568   : > { %1971 = vst [vmem:[%s3587_s14 + $0x30] sm:$0xff] %v1955_v3 }
 0x569   : > { %1972 = vst [vmem:[%s3587_s14 + $0x38] sm:$0xff] %v1956_v32 }
 0x56a   : > { %1973 = vst [vmem:[%s3587_s14 + $0x40] sm:$0xff] %v1957_v33 }
 0x56b   : > { %1974 = vst [vmem:[%s3587_s14 + $0x48] sm:$0xff] %v1958_v34 }
 0x56c   : > { %1975 = vst [vmem:[%s3587_s14 + $0x50] sm:$0xff] %v1959_v35 }
 0x56d   : > { %1976 = vst [vmem:[%s3587_s14 + $0x58] sm:$0xff] %v1960_v4 }
 0x56e   : > { %1977 = vst [vmem:[%s3587_s14 + $0x60] sm:$0xff] %v1961_v0 }
 0x56f   : > { %1978 = vst [vmem:[%s3587_s14 + $0x68] sm:$0xff] %v1962_v40 }
 0x570   : > { %1979 = vst [vmem:[%s3587_s14 + $0x70] sm:$0xff] %v1963_v43 }
 0x571   : > { %1980 = vst [vmem:[%s3587_s14 + $0x78] sm:$0xff] %v1964_v10 }
 0x572   : > { %2447 = shalt.err (!%p2444_p8)
}
 0x573   : > { %s2522_s9 = smov 256   ;;  %s2523_s8 = smov 16  }
 0x574   : > { %2234 = dma.vmem_to_hbm [thread:$0]  (%p2616_p11), %s1995_s28, 2048, %s1997_s6, %s1982_s18, %s2522_s9, %s2522_s9, %s2523_s8  }
 0x575 PF: > { %s2011_s10 = sand.u32 1, %s2482_s24   ;;  %p3683_p9 = scmp.ge.s32.totalorder %s2494_s27, 2 }
 0x576   : > { %s2012_s29 = scalar_lea.sflag [#allocation5], %s2011_s10 }
 0x577   : > { %p2248_p10 = pnand %p3683_p9, %p2620_p12 }
 0x579   : > { %p2249_p1 = pneg %p2248_p10 }
 0x57b   : > { %2477 = dma.done.wait (%p2249_p1), %s2012_s29, 2048  }
 0x57c   : > { %2479 = vsyncadd (%p2249_p1), %s2012_s29, 4294965248  ;;  %s3684_s27 = sld [smem:[#allocation15_spill]]  ;;  %s3686_s24 = smov %s2486_s25 }
 0x57d   : > { %s3685_s14 = sld [smem:[#allocation16_spill]]  ;;  %s3687_s25 = smov %s2490_s26 }
 0x582   : > { %p22_p2 = scmp.ge.s32.totalorder %s3684_s27, 4  }
 0x583   : > { %s3688_s26 = smov %s3685_s14 }
 0x584   :  { %24 = sbr.rel (!%p22_p2) target bundleno = 10 (0xa), region = 108 }
 0x589   :  { %2018 = vsyncpa [#allocation4], 1 }
 0x58a   :  { %2020 = vsyncpa [#allocation4 + $0x1], 1 }
 0x58b   :  { %2021 = vsyncpa [#allocation5], 1 }
 0x58c   :  { %2023 = vsyncpa [#allocation5 + $0x1], 1 }
 0x58d   :  { %2024 = vsyncpa [#allocation6], 1 }
 0x58e   :  { %2026 = vsyncpa [#allocation6 + $0x1], 1 }
 0x58f   :  { %2027 = vsyncpa [#allocation9], 1 }

</bundles_post_ra>
